<compile_context>
chip_gen: v7x
topology: tpu7x:2x2x1
jax: 0.10.0
libtpu: 0.0.40
codegen_flags: <defaults>
</compile_context>

<pallas_src>
import jax
import jax.numpy as jnp
from jax.experimental import pallas as pl
from jax.experimental.pallas import tpu as pltpu


IMAGE_CHANNELS = 3
LATENT_DIM = 128
N_CHANSL = 32
IMG_SIZE = 32
HW = IMG_SIZE // 2              # 16
FLAT = N_CHANSL * HW * HW       # 8192
OUT_FLAT = IMAGE_CHANNELS * IMG_SIZE * IMG_SIZE   # 3072
K_CONV = IMAGE_CHANNELS * 9     # 27
K_CONV_PAD = 32                 # 27 padded to an 8-aligned K


# ---------------------------------------------------------------------------
# Pallas kernel 1: encoder conv (im2col matmul) + ReLU, bf16 output
# ---------------------------------------------------------------------------
def _conv_relu_kernel(p_ref, wc_ref, bc_ref, fm_ref):
    acc = jnp.dot(p_ref[...], wc_ref[...], preferred_element_type=jnp.float32)
    acc = jnp.maximum(acc + bc_ref[...], 0.0)
    fm_ref[...] = acc.astype(fm_ref.dtype)


def conv_relu(patches, wc, bc):
    """patches: (M, 32) f32, wc: (32, 32) f32, bc: (1, 32) f32 -> (M, 32) bf16."""
    m, k = patches.shape
    k2, n = wc.shape
    assert k == k2, (k, k2)
    return pl.pallas_call(
        _conv_relu_kernel,
        out_shape=jax.ShapeDtypeStruct((m, n), jnp.bfloat16),
        grid=(1,),
        in_specs=[
            pl.BlockSpec((m, k), lambda i: (0, 0)),
            pl.BlockSpec((k, n), lambda i: (0, 0)),
            pl.BlockSpec((1, n), lambda i: (0, 0)),
        ],
        out_specs=pl.BlockSpec((m, n), lambda i: (0, 0)),
        compiler_params=pltpu.CompilerParams(dimension_semantics=("arbitrary",)),
    )(patches, wc, bc)


# ---------------------------------------------------------------------------
# Pallas kernel 2: fused fc1 + (fc2 ∘ ConvTranspose2d) decoder
#   latent = flat @ w1 + b1                       (bf16 x bf16, f32 acc)
#   x_res  = relu(latent @ wcomb + bcomb)         (NCHW-flat, lane-dense 3072)
# All weights (w1 2 MiB + wcomb 0.75 MiB, bf16) are VMEM-resident; single step.
# ---------------------------------------------------------------------------
def _fc_decoder_kernel(flat_ref, w1_ref, b1_ref, wcomb_ref, bcomb_ref,
                       latent_ref, xres_ref):
    lat = jnp.dot(flat_ref[...], w1_ref[...],
                  preferred_element_type=jnp.float32) + b1_ref[...]
    latent_ref[...] = lat.astype(latent_ref.dtype)
    x = jnp.dot(lat.astype(jnp.bfloat16), wcomb_ref[...],
                preferred_element_type=jnp.float32) + bcomb_ref[...]
    xres_ref[...] = jnp.maximum(x, 0.0).astype(xres_ref.dtype)


def fc_decoder(flat, w1, b1, wcomb, bcomb):
    bsz, k = flat.shape
    k1, l = w1.shape
    l2, q = wcomb.shape
    assert k == k1 and l == l2, (k, k1, l, l2)
    return pl.pallas_call(
        _fc_decoder_kernel,
        out_shape=(jax.ShapeDtypeStruct((bsz, l), jnp.float32),
                   jax.ShapeDtypeStruct((bsz, q), jnp.float32)),
        grid=(1,),
        in_specs=[
            pl.BlockSpec((bsz, k), lambda i: (0, 0)),   # flat (bf16)
            pl.BlockSpec((k, l), lambda i: (0, 0)),     # w1 (bf16, resident)
            pl.BlockSpec((1, l), lambda i: (0, 0)),     # b1
            pl.BlockSpec((l, q), lambda i: (0, 0)),     # wcomb (bf16, resident)
            pl.BlockSpec((1, q), lambda i: (0, 0)),     # bcomb
        ],
        out_specs=[pl.BlockSpec((bsz, l), lambda i: (0, 0)),
                   pl.BlockSpec((bsz, q), lambda i: (0, 0))],
        compiler_params=pltpu.CompilerParams(dimension_semantics=("arbitrary",)),
    )(flat, w1, b1, wcomb, bcomb)


# ---------------------------------------------------------------------------
# Parameters: torch-layout init + one-time inference-layout preparation
# ---------------------------------------------------------------------------
def init_params(key):
    ks = jax.random.split(key, 8)

    def u(k, shape, fan_in):
        bound = 1.0 / jnp.sqrt(fan_in)
        return jax.random.uniform(k, shape, jnp.float32, -bound, bound)

    return {
        # Conv2d(3, 32, k=3, s=2, p=1): weight (O, C, kH, kW)
        "conv_w": u(ks[0], (N_CHANSL, IMAGE_CHANNELS, 3, 3), IMAGE_CHANNELS * 9),
        "conv_b": u(ks[1], (N_CHANSL,), IMAGE_CHANNELS * 9),
        # Linear(8192, 128): weight (out, in)
        "fc1_w": u(ks[2], (LATENT_DIM, FLAT), FLAT),
        "fc1_b": u(ks[3], (LATENT_DIM,), FLAT),
        # Linear(128, 8192)
        "fc2_w": u(ks[4], (FLAT, LATENT_DIM), LATENT_DIM),
        "fc2_b": u(ks[5], (FLAT,), LATENT_DIM),
        # ConvTranspose2d(32, 3, k=3, s=2, p=1, op=1): weight (Cin, Cout, kH, kW)
        "deconv_w": u(ks[6], (N_CHANSL, IMAGE_CHANNELS, 3, 3), N_CHANSL * 9),
        "deconv_b": u(ks[7], (IMAGE_CHANNELS,), N_CHANSL * 9),
    }


def prepare_inference_params(p):
    """One-time re-layout / composition of the torch parameters."""
    # --- encoder conv: (O,C,kh,kw) -> (C*9, O), K padded 27 -> 32 ---
    wc = p["conv_w"].reshape(N_CHANSL, -1).T                      # (27, 32)
    wc = jnp.pad(wc, ((0, K_CONV_PAD - K_CONV), (0, 0)))          # (32, 32)
    bc = p["conv_b"].reshape(1, -1)

    # Permutation mapping NHWC flatten index n = (i*16+j)*32 + c to the torch
    # NCHW flatten index m = c*256 + (i*16+j) (conv kernel emits NHWC rows).
    s_idx = jnp.arange(HW * HW)
    c_idx = jnp.arange(N_CHANSL)
    perm = (c_idx[None, :] * (HW * HW) + s_idx[:, None]).reshape(-1)

    # fc1: rows permuted to NHWC input order, stored (K, L), bf16.
    w1 = p["fc1_w"][:, perm].T.astype(jnp.bfloat16)               # (8192, 128)
    b1 = p["fc1_b"].reshape(1, -1)

    # --- decoder: compose fc2 with ConvTranspose2d (both linear, no activation
    # between them) into a single (128, 3072) map latent -> NCHW image. -------
    # ConvTranspose2d(k=3, s=2, p=1, op=1) == conv with flipped/transposed
    # kernel, lhs_dilation=2, padding=((1,2),(1,2))  (validated vs reference).
    w_eq = jnp.flip(p["deconv_w"], axis=(2, 3)).transpose(1, 0, 2, 3)   # (3,32,3,3)
    fc2_maps = p["fc2_w"].T.reshape(LATENT_DIM, N_CHANSL, HW, HW)       # (128,32,16,16)
    wcomb_maps = jax.lax.conv_general_dilated(
        fc2_maps, w_eq, window_strides=(1, 1), padding=((1, 2), (1, 2)),
        lhs_dilation=(2, 2), dimension_numbers=("NCHW", "OIHW", "NCHW"))
    wcomb = wcomb_maps.reshape(LATENT_DIM, OUT_FLAT).astype(jnp.bfloat16)  # (128,3072)

    bias_map = jax.lax.conv_general_dilated(
        p["fc2_b"].reshape(1, N_CHANSL, HW, HW), w_eq, window_strides=(1, 1),
        padding=((1, 2), (1, 2)), lhs_dilation=(2, 2),
        dimension_numbers=("NCHW", "OIHW", "NCHW"))                      # (1,3,32,32)
    bcomb = (bias_map + p["deconv_b"][None, :, None, None]).reshape(1, OUT_FLAT)

    return {"wc": wc, "bc": bc, "w1": w1, "b1": b1,
            "wcomb": wcomb, "bcomb": bcomb}


# ---------------------------------------------------------------------------
# Forward (returns (latent_vec, x_res), matching the PyTorch module)
# ---------------------------------------------------------------------------
def net_forward(x, ip):
    bsz = x.shape[0]

    # ----- im2col for Conv2d(3->32, k3, s2, p1): tiny XLA glue, fused -----
    xp = jnp.pad(x, ((0, 0), (0, 0), (1, 1), (1, 1)))             # (B,3,34,34)
    cols = [xp[:, :, kh:kh + 2 * (HW - 1) + 1:2, kw:kw + 2 * (HW - 1) + 1:2]
            for kh in range(3) for kw in range(3)]                # 9 x (B,3,16,16)
    patches = jnp.stack(cols, axis=2)                             # (B,3,9,16,16)
    patches = patches.transpose(0, 3, 4, 1, 2)                    # (B,16,16,3,9)
    patches = patches.reshape(bsz * HW * HW, K_CONV)
    patches = jnp.pad(patches, ((0, 0), (0, K_CONV_PAD - K_CONV)))  # K 27->32

    # ----- kernel 1: conv matmul + ReLU, bf16 NHWC rows -----
    fm = conv_relu(patches, ip["wc"], ip["bc"])                   # (B*256, 32) bf16
    flat = fm.reshape(bsz, FLAT)                                  # free reshape

    # ----- kernel 2: fused fc1 + composed (fc2 ∘ ConvTranspose2d) decoder ----
    latent, xres = fc_decoder(flat, ip["w1"], ip["b1"], ip["wcomb"], ip["bcomb"])

    x_res = xres.reshape(bsz, IMAGE_CHANNELS, IMG_SIZE, IMG_SIZE)  # free reshape
    return latent, x_res


# ---------------------------------------------------------------------------
# Pure-JAX f32 reference (lax convolutions) for a correctness check
# ---------------------------------------------------------------------------
def net_forward_ref(x, params):
    bsz = x.shape[0]
    fm = jax.lax.conv_general_dilated(
        x, params["conv_w"], window_strides=(2, 2), padding=((1, 1), (1, 1)),
        dimension_numbers=("NCHW", "OIHW", "NCHW"))
    fm = jnp.maximum(fm + params["conv_b"][None, :, None, None], 0.0)
    latent = fm.reshape(bsz, -1) @ params["fc1_w"].T + params["fc1_b"]
    fm2 = (latent @ params["fc2_w"].T + params["fc2_b"]).reshape(bsz, N_CHANSL, HW, HW)
    w_eq = jnp.flip(params["deconv_w"], axis=(2, 3)).transpose(1, 0, 2, 3)
    x_res = jax.lax.conv_general_dilated(
        fm2, w_eq, window_strides=(1, 1), padding=((1, 2), (1, 2)),
        lhs_dilation=(2, 2), dimension_numbers=("NCHW", "OIHW", "NCHW"))
    x_res = jnp.maximum(x_res + params["deconv_b"][None, :, None, None], 0.0)
    return latent, x_res


if __name__ == "__main__":
    key = jax.random.PRNGKey(0)
    k_param, k_x = jax.random.split(key)
    params = init_params(k_param)
    infer_params = prepare_inference_params(params)      # one-time re-layout
    x = jax.random.normal(k_x, (2, IMAGE_CHANNELS, IMG_SIZE, IMG_SIZE), jnp.float32)

    latent, x_res = jax.jit(net_forward)(x, infer_params)
    jax.block_until_ready((latent, x_res))

    latent_ref, x_res_ref = jax.jit(net_forward_ref)(x, params)
    jax.block_until_ready((latent_ref, x_res_ref))

    assert latent.shape == (2, LATENT_DIM), latent.shape
    assert x_res.shape == (2, IMAGE_CHANNELS, IMG_SIZE, IMG_SIZE), x_res.shape
    # FC / decoder weights and activations are bf16 on the MXU (f32 accumulation),
    # so compare against the f32 reference with a correspondingly loose tolerance.
    assert jnp.allclose(latent, latent_ref, atol=3e-2, rtol=3e-2)
    assert jnp.allclose(x_res, x_res_ref, atol=3e-2, rtol=3e-2)

    print("KERNEL_OK")
</pallas_src>

<mosaic_0001>
module attributes {stable_mosaic.version = 11 : i64} {
  func.func @_conv_relu_kernel(%arg0: i32, %arg1: memref<512x32xf32, #tpu.memory_space<vmem>>, %arg2: memref<32x32xf32, #tpu.memory_space<vmem>>, %arg3: memref<1x32xf32, #tpu.memory_space<vmem>>, %arg4: memref<512x32xbf16, #tpu.memory_space<vmem>>) attributes {dimension_semantics = [#tpu.dimension_semantics<arbitrary>], iteration_bounds = array<i64: 1>, scalar_prefetch = 0 : i64, scratch_operands = 0 : i64, tpu.core_type = #tpu.core_type<tc>, window_params = [{pipeline_mode = #tpu.pipeline_mode<synchronous>, transform_indices = @transform_0, window_bounds = array<i64: 512, 32>}, {pipeline_mode = #tpu.pipeline_mode<synchronous>, transform_indices = @transform_1, window_bounds = array<i64: 32, 32>}, {pipeline_mode = #tpu.pipeline_mode<synchronous>, transform_indices = @transform_2, window_bounds = array<i64: 1, 32>}, {pipeline_mode = #tpu.pipeline_mode<synchronous>, transform_indices = @transform_3, window_bounds = array<i64: 512, 32>}]} {
    %c0 = arith.constant 0 : index
    %c0_0 = arith.constant 0 : index
    %0 = vector.load %arg1[%c0, %c0_0] : memref<512x32xf32, #tpu.memory_space<vmem>>, vector<512x32xf32>
    %c0_1 = arith.constant 0 : index
    %c0_2 = arith.constant 0 : index
    %1 = vector.load %arg2[%c0_1, %c0_2] : memref<32x32xf32, #tpu.memory_space<vmem>>, vector<32x32xf32>
    %cst = arith.constant dense<0.000000e+00> : vector<512x32xf32>
    %2 = tpu.matmul %0, %1, %cst {dimension_numbers = #tpu.dot_dimension_numbers<[1], [0], [0], [1], [0, 0, 1, 1], [], []>} : vector<512x32xf32>, vector<32x32xf32>, vector<512x32xf32> -> vector<512x32xf32>
    %c0_3 = arith.constant 0 : index
    %c0_4 = arith.constant 0 : index
    %3 = vector.load %arg3[%c0_3, %c0_4] : memref<1x32xf32, #tpu.memory_space<vmem>>, vector<1x32xf32>
    %4 = vector.broadcast %3 : vector<1x32xf32> to vector<512x32xf32>
    %5 = arith.addf %2, %4 : vector<512x32xf32>
    %cst_5 = arith.constant 0.000000e+00 : f32
    %6 = vector.broadcast %cst_5 : f32 to vector<512x32xf32>
    %7 = arith.maximumf %5, %6 : vector<512x32xf32>
    %8 = arith.truncf %7 : vector<512x32xf32> to vector<512x32xbf16>
    %c0_6 = arith.constant 0 : index
    %c0_7 = arith.constant 0 : index
    %9 = vector.load %arg4[%c0_6, %c0_7] : memref<512x32xbf16, #tpu.memory_space<vmem>>, vector<512x32xbf16>
    tpu.vector_store %arg4[%c0_6, %c0_7], %8 {strides = array<i32>} : memref<512x32xbf16, #tpu.memory_space<vmem>>, vector<512x32xbf16>,
    return
  }
  func.func @transform_0(%arg0: i32) -> (i32, i32) {
    %c0_i32 = arith.constant 0 : i32
    %c0_i32_0 = arith.constant 0 : i32
    %c0_i32_1 = arith.constant 0 : i32
    return %c0_i32, %c0_i32_0 : i32, i32
  }
  func.func @transform_1(%arg0: i32) -> (i32, i32) {
    %c0_i32 = arith.constant 0 : i32
    %c0_i32_0 = arith.constant 0 : i32
    %c0_i32_1 = arith.constant 0 : i32
    return %c0_i32, %c0_i32_0 : i32, i32
  }
  func.func @transform_2(%arg0: i32) -> (i32, i32) {
    %c0_i32 = arith.constant 0 : i32
    %c0_i32_0 = arith.constant 0 : i32
    %c0_i32_1 = arith.constant 0 : i32
    return %c0_i32, %c0_i32_0 : i32, i32
  }
  func.func @transform_3(%arg0: i32) -> (i32, i32) {
    %c0_i32 = arith.constant 0 : i32
    %c0_i32_0 = arith.constant 0 : i32
    %c0_i32_1 = arith.constant 0 : i32
    return %c0_i32, %c0_i32_0 : i32, i32
  }
}

module attributes {stable_mosaic.version = 11 : i64} {
  func.func @_fc_decoder_kernel(%arg0: i32, %arg1: memref<2x8192xbf16, #tpu.memory_space<vmem>>, %arg2: memref<8192x128xbf16, #tpu.memory_space<vmem>>, %arg3: memref<1x128xf32, #tpu.memory_space<vmem>>, %arg4: memref<128x3072xbf16, #tpu.memory_space<vmem>>, %arg5: memref<1x3072xf32, #tpu.memory_space<vmem>>, %arg6: memref<2x128xf32, #tpu.memory_space<vmem>>, %arg7: memref<2x3072xf32, #tpu.memory_space<vmem>>) attributes {dimension_semantics = [#tpu.dimension_semantics<arbitrary>], iteration_bounds = array<i64: 1>, scalar_prefetch = 0 : i64, scratch_operands = 0 : i64, tpu.core_type = #tpu.core_type<tc>, window_params = [{pipeline_mode = #tpu.pipeline_mode<synchronous>, transform_indices = @transform_0, window_bounds = array<i64: 2, 8192>}, {pipeline_mode = #tpu.pipeline_mode<synchronous>, transform_indices = @transform_1, window_bounds = array<i64: 8192, 128>}, {pipeline_mode = #tpu.pipeline_mode<synchronous>, transform_indices = @transform_2, window_bounds = array<i64: 1, 128>}, {pipeline_mode = #tpu.pipeline_mode<synchronous>, transform_indices = @transform_3, window_bounds = array<i64: 128, 3072>}, {pipeline_mode = #tpu.pipeline_mode<synchronous>, transform_indices = @transform_4, window_bounds = array<i64: 1, 3072>}, {pipeline_mode = #tpu.pipeline_mode<synchronous>, transform_indices = @transform_5, window_bounds = array<i64: 2, 128>}, {pipeline_mode = #tpu.pipeline_mode<synchronous>, transform_indices = @transform_6, window_bounds = array<i64: 2, 3072>}]} {
    %c0 = arith.constant 0 : index
    %c0_0 = arith.constant 0 : index
    %0 = vector.load %arg1[%c0, %c0_0] : memref<2x8192xbf16, #tpu.memory_space<vmem>>, vector<2x8192xbf16>
    %c0_1 = arith.constant 0 : index
    %c0_2 = arith.constant 0 : index
    %1 = vector.load %arg2[%c0_1, %c0_2] : memref<8192x128xbf16, #tpu.memory_space<vmem>>, vector<8192x128xbf16>
    %cst = arith.constant dense<0.000000e+00> : vector<2x128xf32>
    %2 = tpu.matmul %0, %1, %cst {dimension_numbers = #tpu.dot_dimension_numbers<[1], [0], [0], [1], [0, 0, 1, 1], [], []>} : vector<2x8192xbf16>, vector<8192x128xbf16>, vector<2x128xf32> -> vector<2x128xf32>
    %c0_3 = arith.constant 0 : index
    %c0_4 = arith.constant 0 : index
    %3 = vector.load %arg3[%c0_3, %c0_4] : memref<1x128xf32, #tpu.memory_space<vmem>>, vector<1x128xf32>
    %4 = vector.broadcast %3 : vector<1x128xf32> to vector<2x128xf32>
    %5 = arith.addf %2, %4 : vector<2x128xf32>
    %c0_5 = arith.constant 0 : index
    %c0_6 = arith.constant 0 : index
    %6 = vector.load %arg6[%c0_5, %c0_6] : memref<2x128xf32, #tpu.memory_space<vmem>>, vector<2x128xf32>
    tpu.vector_store %arg6[%c0_5, %c0_6], %5 {strides = array<i32>} : memref<2x128xf32, #tpu.memory_space<vmem>>, vector<2x128xf32>,
    %7 = arith.truncf %5 : vector<2x128xf32> to vector<2x128xbf16>
    %c0_7 = arith.constant 0 : index
    %c0_8 = arith.constant 0 : index
    %8 = vector.load %arg4[%c0_7, %c0_8] : memref<128x3072xbf16, #tpu.memory_space<vmem>>, vector<128x3072xbf16>
    %cst_9 = arith.constant dense<0.000000e+00> : vector<2x3072xf32>
    %9 = tpu.matmul %7, %8, %cst_9 {dimension_numbers = #tpu.dot_dimension_numbers<[1], [0], [0], [1], [0, 0, 1, 1], [], []>} : vector<2x128xbf16>, vector<128x3072xbf16>, vector<2x3072xf32> -> vector<2x3072xf32>
    %c0_10 = arith.constant 0 : index
    %c0_11 = arith.constant 0 : index
    %10 = vector.load %arg5[%c0_10, %c0_11] : memref<1x3072xf32, #tpu.memory_space<vmem>>, vector<1x3072xf32>
    %11 = vector.broadcast %10 : vector<1x3072xf32> to vector<2x3072xf32>
    %12 = arith.addf %9, %11 : vector<2x3072xf32>
    %cst_12 = arith.constant 0.000000e+00 : f32
    %13 = vector.broadcast %cst_12 : f32 to vector<2x3072xf32>
    %14 = arith.maximumf %12, %13 : vector<2x3072xf32>
    %c0_13 = arith.constant 0 : index
    %c0_14 = arith.constant 0 : index
    %15 = vector.load %arg7[%c0_13, %c0_14] : memref<2x3072xf32, #tpu.memory_space<vmem>>, vector<2x3072xf32>
    tpu.vector_store %arg7[%c0_13, %c0_14], %14 {strides = array<i32>} : memref<2x3072xf32, #tpu.memory_space<vmem>>, vector<2x3072xf32>,
    return
  }
  func.func @transform_0(%arg0: i32) -> (i32, i32) {
    %c0_i32 = arith.constant 0 : i32
    %c0_i32_0 = arith.constant 0 : i32
    %c0_i32_1 = arith.constant 0 : i32
    return %c0_i32, %c0_i32_0 : i32, i32
  }
  func.func @transform_1(%arg0: i32) -> (i32, i32) {
    %c0_i32 = arith.constant 0 : i32
    %c0_i32_0 = arith.constant 0 : i32
    %c0_i32_1 = arith.constant 0 : i32
    return %c0_i32, %c0_i32_0 : i32, i32
  }
  func.func @transform_2(%arg0: i32) -> (i32, i32) {
    %c0_i32 = arith.constant 0 : i32
    %c0_i32_0 = arith.constant 0 : i32
    %c0_i32_1 = arith.constant 0 : i32
    return %c0_i32, %c0_i32_0 : i32, i32
  }
  func.func @transform_3(%arg0: i32) -> (i32, i32) {
    %c0_i32 = arith.constant 0 : i32
    %c0_i32_0 = arith.constant 0 : i32
    %c0_i32_1 = arith.constant 0 : i32
    return %c0_i32, %c0_i32_0 : i32, i32
  }
  func.func @transform_4(%arg0: i32) -> (i32, i32) {
    %c0_i32 = arith.constant 0 : i32
    %c0_i32_0 = arith.constant 0 : i32
    %c0_i32_1 = arith.constant 0 : i32
    return %c0_i32, %c0_i32_0 : i32, i32
  }
  func.func @transform_5(%arg0: i32) -> (i32, i32) {
    %c0_i32 = arith.constant 0 : i32
    %c0_i32_0 = arith.constant 0 : i32
    %c0_i32_1 = arith.constant 0 : i32
    return %c0_i32, %c0_i32_0 : i32, i32
  }
  func.func @transform_6(%arg0: i32) -> (i32, i32) {
    %c0_i32 = arith.constant 0 : i32
    %c0_i32_0 = arith.constant 0 : i32
    %c0_i32_1 = arith.constant 0 : i32
    return %c0_i32, %c0_i32_0 : i32, i32
  }
}

</mosaic_0001>

<bundles_post_ra>
// kernel: net_forward.2
= control target key start
LH: loop header
LB: loop body
LE: loop exit
PB: predicated region body
PF: predicated region fallthrough
CT: control target
= control target key end

     0   :  { %vm89_vm0 = vcmask 261120   ;;  %vm987_vm1 = vcmask 257024   ;;  %s2046_s1 = inlined_call_operand.vmem [shape: f32[32,32], index: 1, kind: input, shape index: {}]   ;;  %s2047_s0 = inlined_call_operand.vmem [shape: f32[512,32], index: 0, kind: input, shape index: {}]   ;;  %s2048_s2 = inlined_call_operand.vmem [shape: f32[1,32], index: 2, kind: input, shape index: {}]   ;;  %s2049_s3 = inlined_call_operand.vmem [shape: bf16[512,32], index: 3, kind: output, shape index: {}]  }
   0x1   :  { %v78_v0 = vld [vmem:[%s2046_s1] sm:$0xff]  ;;  %v79_v1 = vld [vmem:[%s2046_s1 + $0x8] sm:$0xff]  ;;  %v80_v2 = vld [vmem:[%s2046_s1 + $0x10] sm:$0xff] }
   0x2   :  { %v1421_v3 = vpack.c.bf16 %v79_v1, %v78_v0  ;;  %v81_v4 = vld [vmem:[%s2046_s1 + $0x18] sm:$0xff]  ;;  %v14_v5 = vld [vmem:[%s2047_s0] sm:$0xff]  ;;  %v15_v8 = vld [vmem:[%s2047_s0 + $0x8] sm:$0xff] }
   0x3   :  { %v46_v6 = vld [vmem:[%s2047_s0 + $0x100] sm:$0xff]  ;;  %v1425_v7 = vpack.c.bf16 %v81_v4, %v80_v2  ;;  %1325 = vmatprep.mubr.msk.f32.mxu0 %vm89_vm0, %v14_v5  ;;  %v47_v9 = vld [vmem:[%s2047_s0 + $0x108] sm:$0xff]  ;;  %v16_v10 = vld [vmem:[%s2047_s0 + $0x10] sm:$0xff] }
   0x4   :  { %1373 = vmatprep.mubr.msk.f32.mxu1 %vm89_vm0, %v46_v6  ;;  %1422 = vmatprep.subr.bf16.mxu0 %v1421_v3  ;;  %v48_v11 = vld [vmem:[%s2047_s0 + $0x110] sm:$0xff]  ;;  %v17_v12 = vld [vmem:[%s2047_s0 + $0x18] sm:$0xff]  ;;  %v18_v14 = vld [vmem:[%s2047_s0 + $0x20] sm:$0xff] }
   0x5   :  { %1429 = vmatprep.subr.bf16.mxu1 %v1421_v3  ;;  %1424 = vmatpush3.bf16.msra.mxu0 %v1421_v3  ;;  %v49_v13 = vld [vmem:[%s2047_s0 + $0x118] sm:$0xff]  ;;  %v50_v15 = vld [vmem:[%s2047_s0 + $0x120] sm:$0xff]  ;;  %v19_v16 = vld [vmem:[%s2047_s0 + $0x28] sm:$0xff] }
   0x6   :  { %1431 = vmatpush3.bf16.msra.mxu1 %v1421_v3  ;;  %1426 = vmatprep.subr.bf16.mxu0 %v1425_v7  ;;  %v51_v17 = vld [vmem:[%s2047_s0 + $0x128] sm:$0xff]  ;;  %v20_v18 = vld [vmem:[%s2047_s0 + $0x30] sm:$0xff]  ;;  %v21_v20 = vld [vmem:[%s2047_s0 + $0x38] sm:$0xff] }
   0x7   :  { %1430 = vmatprep.subr.bf16.mxu1 %v1425_v7  ;;  %v52_v19 = vld [vmem:[%s2047_s0 + $0x130] sm:$0xff]  ;;  %v53_v21 = vld [vmem:[%s2047_s0 + $0x138] sm:$0xff]  ;;  %v22_v22 = vld [vmem:[%s2047_s0 + $0x40] sm:$0xff] }
   0x8   :  { %v54_v23 = vld [vmem:[%s2047_s0 + $0x140] sm:$0xff]  ;;  %v23_v24 = vld [vmem:[%s2047_s0 + $0x48] sm:$0xff]  ;;  %v24_v26 = vld [vmem:[%s2047_s0 + $0x50] sm:$0xff] }
   0x9   :  { %1428 = vmatpush3.bf16.msra.mxu0 %v1425_v7  ;;  %v55_v25 = vld [vmem:[%s2047_s0 + $0x148] sm:$0xff]  ;;  %v56_v27 = vld [vmem:[%s2047_s0 + $0x150] sm:$0xff]  ;;  %v25_v28 = vld [vmem:[%s2047_s0 + $0x58] sm:$0xff] }
   0xa   :  { %1432 = vmatpush3.bf16.msra.mxu1 %v1425_v7  ;;  %v57_v29 = vld [vmem:[%s2047_s0 + $0x158] sm:$0xff]  ;;  %v26_v30 = vld [vmem:[%s2047_s0 + $0x60] sm:$0xff]  ;;  %v27_v32 = vld [vmem:[%s2047_s0 + $0x68] sm:$0xff] }
   0xb   :  { %v58_v31 = vld [vmem:[%s2047_s0 + $0x160] sm:$0xff]  ;;  %v59_v33 = vld [vmem:[%s2047_s0 + $0x168] sm:$0xff]  ;;  %v28_v34 = vld [vmem:[%s2047_s0 + $0x70] sm:$0xff] }
   0xc   :  { %1326 = vmatmul.mubr.msk.f32.vlgmr.msra.gmra.mrb[0].mxu0 %vm89_vm0, %v15_v8  ;;  %v60_v35 = vld [vmem:[%s2047_s0 + $0x170] sm:$0xff]  ;;  %v29_v36 = vld [vmem:[%s2047_s0 + $0x78] sm:$0xff]  ;;  %v30_v38 = vld [vmem:[%s2047_s0 + $0x80] sm:$0xff] }
   0xd   :  { %1374 = vmatmul.mubr.msk.f32.vlgmr.msra.gmra.mrb[0].mxu1 %vm89_vm0, %v47_v9  ;;  %1328 = vmatprep.mubr.msk.f32.mxu0 %vm89_vm0, %v16_v10  ;;  %v61_v37 = vld [vmem:[%s2047_s0 + $0x178] sm:$0xff]  ;;  %v62_v39 = vld [vmem:[%s2047_s0 + $0x180] sm:$0xff]  ;;  %v31_v40 = vld [vmem:[%s2047_s0 + $0x88] sm:$0xff] }
   0xe   :  { %1376 = vmatprep.mubr.msk.f32.mxu1 %vm89_vm0, %v48_v11  ;;  %v63_v41 = vld [vmem:[%s2047_s0 + $0x188] sm:$0xff]  ;;  %v32_v42 = vld [vmem:[%s2047_s0 + $0x90] sm:$0xff]  ;;  %v33_v44 = vld [vmem:[%s2047_s0 + $0x98] sm:$0xff] }
   0xf   :  { %v64_v43 = vld [vmem:[%s2047_s0 + $0x190] sm:$0xff]  ;;  %v65_v45 = vld [vmem:[%s2047_s0 + $0x198] sm:$0xff]  ;;  %v34_v46 = vld [vmem:[%s2047_s0 + $0xa0] sm:$0xff] }
  0x10   :  { %1329 = vmatmul.mubr.msk.f32.gmra.mrb[2].mxu0 %vm89_vm0, %v17_v12  ;;  %v66_v47 = vld [vmem:[%s2047_s0 + $0x1a0] sm:$0xff]  ;;  %v35_v48 = vld [vmem:[%s2047_s0 + $0xa8] sm:$0xff]  ;;  %v36_v50 = vld [vmem:[%s2047_s0 + $0xb0] sm:$0xff] }
  0x11   :  { %1377 = vmatmul.mubr.msk.f32.gmra.mrb[2].mxu1 %vm89_vm0, %v49_v13  ;;  %1331 = vmatprep.mubr.msk.f32.mxu0 %vm89_vm0, %v18_v14  ;;  %v67_v49 = vld [vmem:[%s2047_s0 + $0x1a8] sm:$0xff]  ;;  %v68_v51 = vld [vmem:[%s2047_s0 + $0x1b0] sm:$0xff]  ;;  %v37_v52 = vld [vmem:[%s2047_s0 + $0xb8] sm:$0xff] }
  0x12   :  { %1379 = vmatprep.mubr.msk.f32.mxu1 %vm89_vm0, %v50_v15  ;;  %v69_v53 = vld [vmem:[%s2047_s0 + $0x1b8] sm:$0xff]  ;;  %v38_v54 = vld [vmem:[%s2047_s0 + $0xc0] sm:$0xff]  ;;  %v39_v56 = vld [vmem:[%s2047_s0 + $0xc8] sm:$0xff] }
  0x13   :  { %v70_v55 = vld [vmem:[%s2047_s0 + $0x1c0] sm:$0xff]  ;;  %v71_v57 = vld [vmem:[%s2047_s0 + $0x1c8] sm:$0xff]  ;;  %v40_v58 = vld [vmem:[%s2047_s0 + $0xd0] sm:$0xff] }
  0x14   :  { %1332 = vmatmul.mubr.msk.f32.gmra.mrb[4].mxu0 %vm89_vm0, %v19_v16  ;;  %v72_v59 = vld [vmem:[%s2047_s0 + $0x1d0] sm:$0xff]  ;;  %v41_v60 = vld [vmem:[%s2047_s0 + $0xd8] sm:$0xff]  ;;  %v42_v62 = vld [vmem:[%s2047_s0 + $0xe0] sm:$0xff] }
  0x15   :  { %1380 = vmatmul.mubr.msk.f32.gmra.mrb[4].mxu1 %vm89_vm0, %v51_v17  ;;  %1334 = vmatprep.mubr.msk.f32.mxu0 %vm89_vm0, %v20_v18  ;;  %v73_v61 = vld [vmem:[%s2047_s0 + $0x1d8] sm:$0xff]  ;;  %v74_v63 = vld [vmem:[%s2047_s0 + $0x1e0] sm:$0xff]  ;;  %v43_v0 = vld [vmem:[%s2047_s0 + $0xe8] sm:$0xff] }
  0x16   :  { %1382 = vmatprep.mubr.msk.f32.mxu1 %vm89_vm0, %v52_v19  ;;  %v75_v1 = vld [vmem:[%s2047_s0 + $0x1e8] sm:$0xff]  ;;  %v44_v2 = vld [vmem:[%s2047_s0 + $0xf0] sm:$0xff]  ;;  %v45_v4 = vld [vmem:[%s2047_s0 + $0xf8] sm:$0xff] }
  0x17   :  { %v76_v3 = vld [vmem:[%s2047_s0 + $0x1f0] sm:$0xff]  ;;  %v77_v5 = vld [vmem:[%s2047_s0 + $0x1f8] sm:$0xff]  ;;  %v1724_v6 = vld [vmem:[%s2048_s2] ss:$0 sm:$0xff] }
  0x18   :  { %1335 = vmatmul.mubr.msk.f32.gmra.mrb[6].mxu0 %vm89_vm0, %v21_v20 }
  0x19   :  { %1383 = vmatmul.mubr.msk.f32.gmra.mrb[6].mxu1 %vm89_vm0, %v53_v21  ;;  %1337 = vmatprep.mubr.msk.f32.mxu0 %vm89_vm0, %v22_v22 }
  0x1a   :  { %1385 = vmatprep.mubr.msk.f32.mxu1 %vm89_vm0, %v54_v23 }
  0x1c   :  { %1338 = vmatmul.mubr.msk.f32.gmra.mrb[8].mxu0 %vm89_vm0, %v23_v24 }
  0x1d   :  { %1386 = vmatmul.mubr.msk.f32.gmra.mrb[8].mxu1 %vm89_vm0, %v55_v25  ;;  %1340 = vmatprep.mubr.msk.f32.mxu0 %vm89_vm0, %v24_v26 }
  0x1e   :  { %1388 = vmatprep.mubr.msk.f32.mxu1 %vm89_vm0, %v56_v27 }
  0x20   :  { %1341 = vmatmul.mubr.msk.f32.gmra.mrb[10].mxu0 %vm89_vm0, %v25_v28 }
  0x21   :  { %1389 = vmatmul.mubr.msk.f32.gmra.mrb[10].mxu1 %vm89_vm0, %v57_v29  ;;  %1343 = vmatprep.mubr.msk.f32.mxu0 %vm89_vm0, %v26_v30 }
  0x22   :  { %1391 = vmatprep.mubr.msk.f32.mxu1 %vm89_vm0, %v58_v31 }
  0x24   :  { %1344 = vmatmul.mubr.msk.f32.gmra.mrb[12].mxu0 %vm89_vm0, %v27_v32 }
  0x25   :  { %1392 = vmatmul.mubr.msk.f32.gmra.mrb[12].mxu1 %vm89_vm0, %v59_v33  ;;  %1346 = vmatprep.mubr.msk.f32.mxu0 %vm89_vm0, %v28_v34 }
  0x26   :  { %1394 = vmatprep.mubr.msk.f32.mxu1 %vm89_vm0, %v60_v35 }
  0x28   :  { %1347 = vmatmul.mubr.msk.f32.gmra.mrb[14].mxu0 %vm89_vm0, %v29_v36 }
  0x29   :  { %1395 = vmatmul.mubr.msk.f32.gmra.mrb[14].mxu1 %vm89_vm0, %v61_v37  ;;  %1349 = vmatprep.mubr.msk.f32.mxu0 %vm89_vm0, %v30_v38 }
  0x2a   :  { %1397 = vmatprep.mubr.msk.f32.mxu1 %vm89_vm0, %v62_v39 }
  0x2c   :  { %1350 = vmatmul.mubr.msk.f32.gmra.mrb[16].mxu0 %vm89_vm0, %v31_v40 }
  0x2d   :  { %1398 = vmatmul.mubr.msk.f32.gmra.mrb[16].mxu1 %vm89_vm0, %v63_v41  ;;  %1352 = vmatprep.mubr.msk.f32.mxu0 %vm89_vm0, %v32_v42 }
  0x2e   :  { %1400 = vmatprep.mubr.msk.f32.mxu1 %vm89_vm0, %v64_v43 }
  0x30   :  { %1353 = vmatmul.mubr.msk.f32.gmra.mrb[18].mxu0 %vm89_vm0, %v33_v44 }
  0x31   :  { %1401 = vmatmul.mubr.msk.f32.gmra.mrb[18].mxu1 %vm89_vm0, %v65_v45  ;;  %1355 = vmatprep.mubr.msk.f32.mxu0 %vm89_vm0, %v34_v46 }
  0x32   :  { %1403 = vmatprep.mubr.msk.f32.mxu1 %vm89_vm0, %v66_v47 }
  0x34   :  { %1356 = vmatmul.mubr.msk.f32.gmra.mrb[20].mxu0 %vm89_vm0, %v35_v48 }
  0x35   :  { %1404 = vmatmul.mubr.msk.f32.gmra.mrb[20].mxu1 %vm89_vm0, %v67_v49  ;;  %1358 = vmatprep.mubr.msk.f32.mxu0 %vm89_vm0, %v36_v50 }
  0x36   :  { %1406 = vmatprep.mubr.msk.f32.mxu1 %vm89_vm0, %v68_v51 }
  0x38   :  { %1359 = vmatmul.mubr.msk.f32.gmra.mrb[22].mxu0 %vm89_vm0, %v37_v52 }
  0x39   :  { %1407 = vmatmul.mubr.msk.f32.gmra.mrb[22].mxu1 %vm89_vm0, %v69_v53  ;;  %1361 = vmatprep.mubr.msk.f32.mxu0 %vm89_vm0, %v38_v54 }
  0x3a   :  { %1409 = vmatprep.mubr.msk.f32.mxu1 %vm89_vm0, %v70_v55 }
  0x3c   :  { %1362 = vmatmul.mubr.msk.f32.gmra.mrb[24].mxu0 %vm89_vm0, %v39_v56 }
  0x3d   :  { %1410 = vmatmul.mubr.msk.f32.gmra.mrb[24].mxu1 %vm89_vm0, %v71_v57  ;;  %1364 = vmatprep.mubr.msk.f32.mxu0 %vm89_vm0, %v40_v58 }
  0x3e   :  { %1412 = vmatprep.mubr.msk.f32.mxu1 %vm89_vm0, %v72_v59 }
  0x40   :  { %1365 = vmatmul.mubr.msk.f32.gmra.mrb[26].mxu0 %vm89_vm0, %v41_v60 }
  0x41   :  { %1413 = vmatmul.mubr.msk.f32.gmra.mrb[26].mxu1 %vm89_vm0, %v73_v61  ;;  %1367 = vmatprep.mubr.msk.f32.mxu0 %vm89_vm0, %v42_v62 }
  0x42   :  { %1415 = vmatprep.mubr.msk.f32.mxu1 %vm89_vm0, %v74_v63 }
  0x44   :  { %1368 = vmatmul.mubr.msk.f32.gmra.mrb[28].mxu0 %vm89_vm0, %v43_v0 }
  0x45   :  { %1416 = vmatmul.mubr.msk.f32.gmra.mrb[28].mxu1 %vm89_vm0, %v75_v1  ;;  %1370 = vmatprep.mubr.msk.f32.mxu0 %vm89_vm0, %v44_v2 }
  0x46   :  { %1418 = vmatprep.mubr.msk.f32.mxu1 %vm89_vm0, %v76_v3 }
  0x48   :  { %1371 = vmatmul.mubr.msk.f32.gmra.mrb[30].mxu0 %vm89_vm0, %v45_v4 }
  0x49   :  { %1419 = vmatmul.mubr.msk.f32.gmra.mrb[30].mxu1 %vm89_vm0, %v77_v5 }
  0xdf   :  { %v1327_v7 = vpop.f32.mrb[0].mxu0 }
  0xe0   :  { %v1375_v8 = vpop.f32.mrb[0].mxu1  ;;  %v354_v9 = vadd.f32 %v1327_v7, %v1724_v6  ;;  %v348_v11 = vpop.f32.mrb[1].mxu0 }
  0xe1   :  { %v514_v10 = vadd.f32 %v1375_v8, %v1724_v6  ;;  %v508_v12 = vpop.f32.mrb[1].mxu1  ;;  %v349_v13 = vadd.f32 %v1724_v6, %v348_v11 }
  0xe2   :  { %v509_v14 = vadd.f32 %v1724_v6, %v508_v12  ;;  %v668_v15 = vmax.f32 %v354_v9, 0.0 }
  0xe3   :  { %v700_v16 = vmax.f32 %v514_v10, 0.0  ;;  %v667_v17 = vmax.f32 %v349_v13, 0.0  ;;  %v1330_v19 = vpop.f32.mrb[2].mxu0 }
  0xe4   :  { %v699_v18 = vmax.f32 %v509_v14, 0.0  ;;  %v1378_v20 = vpop.f32.mrb[2].mxu1  ;;  %v1186_v21 = vpack.c.bf16 %v668_v15, %v668_v15  ;;  %v364_v23 = vadd.f32 %v1330_v19, %v1724_v6  ;;  %v358_v25 = vpop.f32.mrb[3].mxu0 }
  0xe5   :  { %v1218_v22 = vpack.c.bf16 %v700_v16, %v700_v16  ;;  %v524_v24 = vadd.f32 %v1378_v20, %v1724_v6  ;;  %v518_v26 = vpop.f32.mrb[3].mxu1  ;;  %v1185_v27 = vpack.c.bf16 %v667_v17, %v667_v17  ;;  %v359_v29 = vadd.f32 %v1724_v6, %v358_v25 }
  0xe6   :  { %v1217_v28 = vpack.c.bf16 %v699_v18, %v699_v18  ;;  %v519_v30 = vadd.f32 %v1724_v6, %v518_v26  ;;  %989 = vst.msk [vmem:[%s2049_s3 + $0x4] sm:$0xf] %vm987_vm1, %v1186_v21  ;;  %v670_v31 = vmax.f32 %v364_v23, 0.0 }
  0xe7   :  { %1021 = vst.msk [vmem:[%s2049_s3 + $0x84] sm:$0xf] %vm987_vm1, %v1218_v22  ;;  %v702_v32 = vmax.f32 %v524_v24, 0.0  ;;  %988 = vst.msk [vmem:[%s2049_s3] sm:$0xf] %vm987_vm1, %v1185_v27  ;;  %v669_v33 = vmax.f32 %v359_v29, 0.0 }
  0xe8   :  { %1020 = vst.msk [vmem:[%s2049_s3 + $0x80] sm:$0xf] %vm987_vm1, %v1217_v28  ;;  %v701_v34 = vmax.f32 %v519_v30, 0.0  ;;  %v1333_v35 = vpop.f32.mrb[4].mxu0  ;;  %v1381_v36 = vpop.f32.mrb[4].mxu1  ;;  %v1188_v37 = vpack.c.bf16 %v670_v31, %v670_v31 }
  0xe9   :  { %v1220_v38 = vpack.c.bf16 %v702_v32, %v702_v32  ;;  %v374_v39 = vadd.f32 %v1333_v35, %v1724_v6  ;;  %v534_v40 = vadd.f32 %v1381_v36, %v1724_v6  ;;  %v368_v41 = vpop.f32.mrb[5].mxu0  ;;  %v528_v42 = vpop.f32.mrb[5].mxu1  ;;  %v1187_v43 = vpack.c.bf16 %v669_v33, %v669_v33 }
  0xea   :  { %v1219_v44 = vpack.c.bf16 %v701_v34, %v701_v34  ;;  %v369_v45 = vadd.f32 %v1724_v6, %v368_v41  ;;  %v529_v46 = vadd.f32 %v1724_v6, %v528_v42  ;;  %991 = vst.msk [vmem:[%s2049_s3 + $0xc] sm:$0xf] %vm987_vm1, %v1188_v37 }
  0xeb   :  { %1023 = vst.msk [vmem:[%s2049_s3 + $0x8c] sm:$0xf] %vm987_vm1, %v1220_v38  ;;  %v672_v47 = vmax.f32 %v374_v39, 0.0  ;;  %v704_v48 = vmax.f32 %v534_v40, 0.0  ;;  %990 = vst.msk [vmem:[%s2049_s3 + $0x8] sm:$0xf] %vm987_vm1, %v1187_v43 }
  0xec   :  { %1022 = vst.msk [vmem:[%s2049_s3 + $0x88] sm:$0xf] %vm987_vm1, %v1219_v44  ;;  %v671_v49 = vmax.f32 %v369_v45, 0.0  ;;  %v703_v50 = vmax.f32 %v529_v46, 0.0  ;;  %v1336_v51 = vpop.f32.mrb[6].mxu0  ;;  %v1384_v52 = vpop.f32.mrb[6].mxu1 }
  0xed   :  { %v1190_v53 = vpack.c.bf16 %v672_v47, %v672_v47  ;;  %v1222_v54 = vpack.c.bf16 %v704_v48, %v704_v48  ;;  %v384_v55 = vadd.f32 %v1336_v51, %v1724_v6  ;;  %v544_v56 = vadd.f32 %v1384_v52, %v1724_v6  ;;  %v378_v57 = vpop.f32.mrb[7].mxu0  ;;  %v538_v58 = vpop.f32.mrb[7].mxu1 }
  0xee   :  { %v1189_v59 = vpack.c.bf16 %v671_v49, %v671_v49  ;;  %v1221_v60 = vpack.c.bf16 %v703_v50, %v703_v50  ;;  %v379_v61 = vadd.f32 %v1724_v6, %v378_v57  ;;  %v539_v62 = vadd.f32 %v1724_v6, %v538_v58 }
  0xef   :  { %993 = vst.msk [vmem:[%s2049_s3 + $0x14] sm:$0xf] %vm987_vm1, %v1190_v53  ;;  %1025 = vst.msk [vmem:[%s2049_s3 + $0x94] sm:$0xf] %vm987_vm1, %v1222_v54  ;;  %v674_v63 = vmax.f32 %v384_v55, 0.0  ;;  %v706_v0 = vmax.f32 %v544_v56, 0.0 }
  0xf0   :  { %992 = vst.msk [vmem:[%s2049_s3 + $0x10] sm:$0xf] %vm987_vm1, %v1189_v59  ;;  %1024 = vst.msk [vmem:[%s2049_s3 + $0x90] sm:$0xf] %vm987_vm1, %v1221_v60  ;;  %v673_v1 = vmax.f32 %v379_v61, 0.0  ;;  %v705_v2 = vmax.f32 %v539_v62, 0.0 }
  0xf1   :  { %v1339_v3 = vpop.f32.mrb[8].mxu0  ;;  %v1387_v4 = vpop.f32.mrb[8].mxu1  ;;  %v1192_v5 = vpack.c.bf16 %v674_v63, %v674_v63  ;;  %v1224_v7 = vpack.c.bf16 %v706_v0, %v706_v0 }
  0xf2   :  { %v394_v8 = vadd.f32 %v1339_v3, %v1724_v6  ;;  %v554_v9 = vadd.f32 %v1387_v4, %v1724_v6  ;;  %v388_v10 = vpop.f32.mrb[9].mxu0  ;;  %v548_v11 = vpop.f32.mrb[9].mxu1  ;;  %v1191_v12 = vpack.c.bf16 %v673_v1, %v673_v1  ;;  %v1223_v13 = vpack.c.bf16 %v705_v2, %v705_v2 }
  0xf3   :  { %v389_v14 = vadd.f32 %v1724_v6, %v388_v10  ;;  %v549_v15 = vadd.f32 %v1724_v6, %v548_v11  ;;  %995 = vst.msk [vmem:[%s2049_s3 + $0x1c] sm:$0xf] %vm987_vm1, %v1192_v5  ;;  %1027 = vst.msk [vmem:[%s2049_s3 + $0x9c] sm:$0xf] %vm987_vm1, %v1224_v7  ;;  %v1342_v20 = vpop.f32.mrb[10].mxu0 }
  0xf4   :  { %v676_v16 = vmax.f32 %v394_v8, 0.0  ;;  %v708_v17 = vmax.f32 %v554_v9, 0.0  ;;  %994 = vst.msk [vmem:[%s2049_s3 + $0x18] sm:$0xf] %vm987_vm1, %v1191_v12  ;;  %1026 = vst.msk [vmem:[%s2049_s3 + $0x98] sm:$0xf] %vm987_vm1, %v1223_v13  ;;  %v404_v24 = vadd.f32 %v1342_v20, %v1724_v6 }
  0xf5   :  { %v675_v18 = vmax.f32 %v389_v14, 0.0  ;;  %v707_v19 = vmax.f32 %v549_v15, 0.0  ;;  %v1390_v21 = vpop.f32.mrb[10].mxu1  ;;  %v398_v26 = vpop.f32.mrb[11].mxu0 }
  0xf6   :  { %v1194_v22 = vpack.c.bf16 %v676_v16, %v676_v16  ;;  %v1226_v23 = vpack.c.bf16 %v708_v17, %v708_v17  ;;  %v564_v25 = vadd.f32 %v1390_v21, %v1724_v6  ;;  %v558_v27 = vpop.f32.mrb[11].mxu1  ;;  %v399_v30 = vadd.f32 %v1724_v6, %v398_v26 }
  0xf7   :  { %v1193_v28 = vpack.c.bf16 %v675_v18, %v675_v18  ;;  %v1225_v29 = vpack.c.bf16 %v707_v19, %v707_v19  ;;  %v559_v31 = vadd.f32 %v1724_v6, %v558_v27  ;;  %v678_v32 = vmax.f32 %v404_v24, 0.0  ;;  %v1345_v36 = vpop.f32.mrb[12].mxu0 }
  0xf8   :  { %997 = vst.msk [vmem:[%s2049_s3 + $0x24] sm:$0xf] %vm987_vm1, %v1194_v22  ;;  %1029 = vst.msk [vmem:[%s2049_s3 + $0xa4] sm:$0xf] %vm987_vm1, %v1226_v23  ;;  %v710_v33 = vmax.f32 %v564_v25, 0.0  ;;  %v677_v34 = vmax.f32 %v399_v30, 0.0  ;;  %v414_v40 = vadd.f32 %v1345_v36, %v1724_v6 }
  0xf9   :  { %996 = vst.msk [vmem:[%s2049_s3 + $0x20] sm:$0xf] %vm987_vm1, %v1193_v28  ;;  %1028 = vst.msk [vmem:[%s2049_s3 + $0xa0] sm:$0xf] %vm987_vm1, %v1225_v29  ;;  %v709_v35 = vmax.f32 %v559_v31, 0.0  ;;  %v1393_v37 = vpop.f32.mrb[12].mxu1  ;;  %v1196_v38 = vpack.c.bf16 %v678_v32, %v678_v32 }
  0xfa   :  { %v1228_v39 = vpack.c.bf16 %v710_v33, %v710_v33  ;;  %v574_v41 = vadd.f32 %v1393_v37, %v1724_v6  ;;  %v408_v42 = vpop.f32.mrb[13].mxu0  ;;  %v568_v43 = vpop.f32.mrb[13].mxu1  ;;  %v1195_v44 = vpack.c.bf16 %v677_v34, %v677_v34  ;;  %v680_v48 = vmax.f32 %v414_v40, 0.0 }
  0xfb   :  { %v1227_v45 = vpack.c.bf16 %v709_v35, %v709_v35  ;;  %v409_v46 = vadd.f32 %v1724_v6, %v408_v42  ;;  %v569_v47 = vadd.f32 %v1724_v6, %v568_v43  ;;  %999 = vst.msk [vmem:[%s2049_s3 + $0x2c] sm:$0xf] %vm987_vm1, %v1196_v38  ;;  %v1348_v52 = vpop.f32.mrb[14].mxu0 }
  0xfc   :  { %1031 = vst.msk [vmem:[%s2049_s3 + $0xac] sm:$0xf] %vm987_vm1, %v1228_v39  ;;  %v712_v49 = vmax.f32 %v574_v41, 0.0  ;;  %998 = vst.msk [vmem:[%s2049_s3 + $0x28] sm:$0xf] %vm987_vm1, %v1195_v44  ;;  %v1396_v53 = vpop.f32.mrb[14].mxu1  ;;  %v1198_v54 = vpack.c.bf16 %v680_v48, %v680_v48  ;;  %v424_v56 = vadd.f32 %v1348_v52, %v1724_v6 }
  0xfd   :  { %1030 = vst.msk [vmem:[%s2049_s3 + $0xa8] sm:$0xf] %vm987_vm1, %v1227_v45  ;;  %v679_v50 = vmax.f32 %v409_v46, 0.0  ;;  %v711_v51 = vmax.f32 %v569_v47, 0.0  ;;  %v584_v57 = vadd.f32 %v1396_v53, %v1724_v6  ;;  %v418_v58 = vpop.f32.mrb[15].mxu0  ;;  %v578_v59 = vpop.f32.mrb[15].mxu1 }
  0xfe   :  { %v1230_v55 = vpack.c.bf16 %v712_v49, %v712_v49  ;;  %v419_v62 = vadd.f32 %v1724_v6, %v418_v58  ;;  %v579_v63 = vadd.f32 %v1724_v6, %v578_v59  ;;  %1001 = vst.msk [vmem:[%s2049_s3 + $0x34] sm:$0xf] %vm987_vm1, %v1198_v54  ;;  %v682_v0 = vmax.f32 %v424_v56, 0.0 }
  0xff   :  { %v1197_v60 = vpack.c.bf16 %v679_v50, %v679_v50  ;;  %v1229_v61 = vpack.c.bf16 %v711_v51, %v711_v51  ;;  %v714_v1 = vmax.f32 %v584_v57, 0.0  ;;  %v1351_v4 = vpop.f32.mrb[16].mxu0 }
 0x100   :  { %1033 = vst.msk [vmem:[%s2049_s3 + $0xb4] sm:$0xf] %vm987_vm1, %v1230_v55  ;;  %v681_v2 = vmax.f32 %v419_v62, 0.0  ;;  %v713_v3 = vmax.f32 %v579_v63, 0.0  ;;  %v1399_v5 = vpop.f32.mrb[16].mxu1  ;;  %v1200_v7 = vpack.c.bf16 %v682_v0, %v682_v0  ;;  %v434_v9 = vadd.f32 %v1351_v4, %v1724_v6  ;;  %v428_v11 = vpop.f32.mrb[17].mxu0 }
 0x101   :  { %1000 = vst.msk [vmem:[%s2049_s3 + $0x30] sm:$0xf] %vm987_vm1, %v1197_v60  ;;  %1032 = vst.msk [vmem:[%s2049_s3 + $0xb0] sm:$0xf] %vm987_vm1, %v1229_v61  ;;  %v1232_v8 = vpack.c.bf16 %v714_v1, %v714_v1  ;;  %v594_v10 = vadd.f32 %v1399_v5, %v1724_v6  ;;  %v588_v12 = vpop.f32.mrb[17].mxu1  ;;  %v429_v15 = vadd.f32 %v1724_v6, %v428_v11 }
 0x102   :  { %v1199_v13 = vpack.c.bf16 %v681_v2, %v681_v2  ;;  %v1231_v14 = vpack.c.bf16 %v713_v3, %v713_v3  ;;  %v589_v16 = vadd.f32 %v1724_v6, %v588_v12  ;;  %1003 = vst.msk [vmem:[%s2049_s3 + $0x3c] sm:$0xf] %vm987_vm1, %v1200_v7  ;;  %v684_v17 = vmax.f32 %v434_v9, 0.0 }
 0x103   :  { %1035 = vst.msk [vmem:[%s2049_s3 + $0xbc] sm:$0xf] %vm987_vm1, %v1232_v8  ;;  %v716_v18 = vmax.f32 %v594_v10, 0.0  ;;  %v683_v19 = vmax.f32 %v429_v15, 0.0  ;;  %v1354_v21 = vpop.f32.mrb[18].mxu0 }
 0x104   :  { %1002 = vst.msk [vmem:[%s2049_s3 + $0x38] sm:$0xf] %vm987_vm1, %v1199_v13  ;;  %1034 = vst.msk [vmem:[%s2049_s3 + $0xb8] sm:$0xf] %vm987_vm1, %v1231_v14  ;;  %v715_v20 = vmax.f32 %v589_v16, 0.0  ;;  %v1402_v22 = vpop.f32.mrb[18].mxu1  ;;  %v1202_v23 = vpack.c.bf16 %v684_v17, %v684_v17  ;;  %v444_v25 = vadd.f32 %v1354_v21, %v1724_v6 }
 0x105   :  { %v1234_v24 = vpack.c.bf16 %v716_v18, %v716_v18  ;;  %v604_v26 = vadd.f32 %v1402_v22, %v1724_v6  ;;  %v438_v27 = vpop.f32.mrb[19].mxu0  ;;  %v598_v28 = vpop.f32.mrb[19].mxu1  ;;  %v1201_v29 = vpack.c.bf16 %v683_v19, %v683_v19 }
 0x106   :  { %v1233_v30 = vpack.c.bf16 %v715_v20, %v715_v20  ;;  %v439_v31 = vadd.f32 %v1724_v6, %v438_v27  ;;  %v599_v32 = vadd.f32 %v1724_v6, %v598_v28  ;;  %1005 = vst.msk [vmem:[%s2049_s3 + $0x44] sm:$0xf] %vm987_vm1, %v1202_v23  ;;  %v686_v33 = vmax.f32 %v444_v25, 0.0 }
 0x107   :  { %1037 = vst.msk [vmem:[%s2049_s3 + $0xc4] sm:$0xf] %vm987_vm1, %v1234_v24  ;;  %v718_v34 = vmax.f32 %v604_v26, 0.0  ;;  %1004 = vst.msk [vmem:[%s2049_s3 + $0x40] sm:$0xf] %vm987_vm1, %v1201_v29  ;;  %v1357_v37 = vpop.f32.mrb[20].mxu0 }
 0x108   :  { %1036 = vst.msk [vmem:[%s2049_s3 + $0xc0] sm:$0xf] %vm987_vm1, %v1233_v30  ;;  %v685_v35 = vmax.f32 %v439_v31, 0.0  ;;  %v717_v36 = vmax.f32 %v599_v32, 0.0  ;;  %v1405_v38 = vpop.f32.mrb[20].mxu1  ;;  %v1204_v39 = vpack.c.bf16 %v686_v33, %v686_v33  ;;  %v454_v41 = vadd.f32 %v1357_v37, %v1724_v6  ;;  %v448_v43 = vpop.f32.mrb[21].mxu0 }
 0x109   :  { %v1236_v40 = vpack.c.bf16 %v718_v34, %v718_v34  ;;  %v614_v42 = vadd.f32 %v1405_v38, %v1724_v6  ;;  %v608_v44 = vpop.f32.mrb[21].mxu1  ;;  %v449_v47 = vadd.f32 %v1724_v6, %v448_v43 }
 0x10a   :  { %v1203_v45 = vpack.c.bf16 %v685_v35, %v685_v35  ;;  %v1235_v46 = vpack.c.bf16 %v717_v36, %v717_v36  ;;  %v609_v48 = vadd.f32 %v1724_v6, %v608_v44  ;;  %1007 = vst.msk [vmem:[%s2049_s3 + $0x4c] sm:$0xf] %vm987_vm1, %v1204_v39  ;;  %v688_v49 = vmax.f32 %v454_v41, 0.0 }
 0x10b   :  { %1039 = vst.msk [vmem:[%s2049_s3 + $0xcc] sm:$0xf] %vm987_vm1, %v1236_v40  ;;  %v720_v50 = vmax.f32 %v614_v42, 0.0  ;;  %v687_v51 = vmax.f32 %v449_v47, 0.0  ;;  %v1360_v53 = vpop.f32.mrb[22].mxu0 }
 0x10c   :  { %1006 = vst.msk [vmem:[%s2049_s3 + $0x48] sm:$0xf] %vm987_vm1, %v1203_v45  ;;  %1038 = vst.msk [vmem:[%s2049_s3 + $0xc8] sm:$0xf] %vm987_vm1, %v1235_v46  ;;  %v719_v52 = vmax.f32 %v609_v48, 0.0  ;;  %v1408_v54 = vpop.f32.mrb[22].mxu1  ;;  %v1206_v55 = vpack.c.bf16 %v688_v49, %v688_v49  ;;  %v464_v57 = vadd.f32 %v1360_v53, %v1724_v6 }
 0x10d   :  { %v1238_v56 = vpack.c.bf16 %v720_v50, %v720_v50  ;;  %v624_v58 = vadd.f32 %v1408_v54, %v1724_v6  ;;  %v458_v59 = vpop.f32.mrb[23].mxu0  ;;  %v618_v60 = vpop.f32.mrb[23].mxu1  ;;  %v1205_v61 = vpack.c.bf16 %v687_v51, %v687_v51 }
 0x10e   :  { %v1237_v62 = vpack.c.bf16 %v719_v52, %v719_v52  ;;  %v459_v63 = vadd.f32 %v1724_v6, %v458_v59  ;;  %v619_v0 = vadd.f32 %v1724_v6, %v618_v60  ;;  %1009 = vst.msk [vmem:[%s2049_s3 + $0x54] sm:$0xf] %vm987_vm1, %v1206_v55  ;;  %v690_v1 = vmax.f32 %v464_v57, 0.0 }
 0x10f   :  { %1041 = vst.msk [vmem:[%s2049_s3 + $0xd4] sm:$0xf] %vm987_vm1, %v1238_v56  ;;  %v722_v2 = vmax.f32 %v624_v58, 0.0  ;;  %1008 = vst.msk [vmem:[%s2049_s3 + $0x50] sm:$0xf] %vm987_vm1, %v1205_v61  ;;  %v1363_v5 = vpop.f32.mrb[24].mxu0 }
 0x110   :  { %1040 = vst.msk [vmem:[%s2049_s3 + $0xd0] sm:$0xf] %vm987_vm1, %v1237_v62  ;;  %v689_v3 = vmax.f32 %v459_v63, 0.0  ;;  %v721_v4 = vmax.f32 %v619_v0, 0.0  ;;  %v1411_v7 = vpop.f32.mrb[24].mxu1  ;;  %v1208_v8 = vpack.c.bf16 %v690_v1, %v690_v1  ;;  %v474_v10 = vadd.f32 %v1363_v5, %v1724_v6  ;;  %v468_v12 = vpop.f32.mrb[25].mxu0 }
 0x111   :  { %v1240_v9 = vpack.c.bf16 %v722_v2, %v722_v2  ;;  %v634_v11 = vadd.f32 %v1411_v7, %v1724_v6  ;;  %v628_v13 = vpop.f32.mrb[25].mxu1  ;;  %v469_v16 = vadd.f32 %v1724_v6, %v468_v12 }
 0x112   :  { %v1207_v14 = vpack.c.bf16 %v689_v3, %v689_v3  ;;  %v1239_v15 = vpack.c.bf16 %v721_v4, %v721_v4  ;;  %v629_v17 = vadd.f32 %v1724_v6, %v628_v13  ;;  %1011 = vst.msk [vmem:[%s2049_s3 + $0x5c] sm:$0xf] %vm987_vm1, %v1208_v8  ;;  %v692_v18 = vmax.f32 %v474_v10, 0.0 }
 0x113   :  { %1043 = vst.msk [vmem:[%s2049_s3 + $0xdc] sm:$0xf] %vm987_vm1, %v1240_v9  ;;  %v724_v19 = vmax.f32 %v634_v11, 0.0  ;;  %v691_v20 = vmax.f32 %v469_v16, 0.0  ;;  %v1366_v22 = vpop.f32.mrb[26].mxu0 }
 0x114   :  { %1010 = vst.msk [vmem:[%s2049_s3 + $0x58] sm:$0xf] %vm987_vm1, %v1207_v14  ;;  %1042 = vst.msk [vmem:[%s2049_s3 + $0xd8] sm:$0xf] %vm987_vm1, %v1239_v15  ;;  %v723_v21 = vmax.f32 %v629_v17, 0.0  ;;  %v1414_v23 = vpop.f32.mrb[26].mxu1  ;;  %v1210_v24 = vpack.c.bf16 %v692_v18, %v692_v18  ;;  %v484_v26 = vadd.f32 %v1366_v22, %v1724_v6 }
 0x115   :  { %v1242_v25 = vpack.c.bf16 %v724_v19, %v724_v19  ;;  %v644_v27 = vadd.f32 %v1414_v23, %v1724_v6  ;;  %v478_v28 = vpop.f32.mrb[27].mxu0  ;;  %v638_v29 = vpop.f32.mrb[27].mxu1  ;;  %v1209_v30 = vpack.c.bf16 %v691_v20, %v691_v20 }
 0x116   :  { %v1241_v31 = vpack.c.bf16 %v723_v21, %v723_v21  ;;  %v479_v32 = vadd.f32 %v1724_v6, %v478_v28  ;;  %v639_v33 = vadd.f32 %v1724_v6, %v638_v29  ;;  %1013 = vst.msk [vmem:[%s2049_s3 + $0x64] sm:$0xf] %vm987_vm1, %v1210_v24  ;;  %v694_v34 = vmax.f32 %v484_v26, 0.0 }
 0x117   :  { %1045 = vst.msk [vmem:[%s2049_s3 + $0xe4] sm:$0xf] %vm987_vm1, %v1242_v25  ;;  %v726_v35 = vmax.f32 %v644_v27, 0.0  ;;  %1012 = vst.msk [vmem:[%s2049_s3 + $0x60] sm:$0xf] %vm987_vm1, %v1209_v30  ;;  %v1369_v38 = vpop.f32.mrb[28].mxu0 }
 0x118   :  { %1044 = vst.msk [vmem:[%s2049_s3 + $0xe0] sm:$0xf] %vm987_vm1, %v1241_v31  ;;  %v693_v36 = vmax.f32 %v479_v32, 0.0  ;;  %v725_v37 = vmax.f32 %v639_v33, 0.0  ;;  %v1417_v39 = vpop.f32.mrb[28].mxu1  ;;  %v1212_v40 = vpack.c.bf16 %v694_v34, %v694_v34  ;;  %v494_v42 = vadd.f32 %v1369_v38, %v1724_v6  ;;  %v488_v44 = vpop.f32.mrb[29].mxu0 }
 0x119   :  { %v1244_v41 = vpack.c.bf16 %v726_v35, %v726_v35  ;;  %v654_v43 = vadd.f32 %v1417_v39, %v1724_v6  ;;  %v648_v45 = vpop.f32.mrb[29].mxu1  ;;  %v489_v48 = vadd.f32 %v1724_v6, %v488_v44 }
 0x11a   :  { %v1211_v46 = vpack.c.bf16 %v693_v36, %v693_v36  ;;  %v1243_v47 = vpack.c.bf16 %v725_v37, %v725_v37  ;;  %v649_v49 = vadd.f32 %v1724_v6, %v648_v45  ;;  %1015 = vst.msk [vmem:[%s2049_s3 + $0x6c] sm:$0xf] %vm987_vm1, %v1212_v40  ;;  %v696_v50 = vmax.f32 %v494_v42, 0.0 }
 0x11b   :  { %1047 = vst.msk [vmem:[%s2049_s3 + $0xec] sm:$0xf] %vm987_vm1, %v1244_v41  ;;  %v728_v51 = vmax.f32 %v654_v43, 0.0  ;;  %v695_v52 = vmax.f32 %v489_v48, 0.0  ;;  %v1372_v54 = vpop.f32.mrb[30].mxu0 }
 0x11c   :  { %1014 = vst.msk [vmem:[%s2049_s3 + $0x68] sm:$0xf] %vm987_vm1, %v1211_v46  ;;  %1046 = vst.msk [vmem:[%s2049_s3 + $0xe8] sm:$0xf] %vm987_vm1, %v1243_v47  ;;  %v727_v53 = vmax.f32 %v649_v49, 0.0  ;;  %v1420_v55 = vpop.f32.mrb[30].mxu1  ;;  %v1214_v56 = vpack.c.bf16 %v696_v50, %v696_v50  ;;  %v504_v58 = vadd.f32 %v1372_v54, %v1724_v6 }
 0x11d   :  { %v1246_v57 = vpack.c.bf16 %v728_v51, %v728_v51  ;;  %v664_v59 = vadd.f32 %v1420_v55, %v1724_v6  ;;  %v498_v60 = vpop.f32.mrb[31].mxu0  ;;  %v658_v61 = vpop.f32.mrb[31].mxu1  ;;  %v1213_v62 = vpack.c.bf16 %v695_v52, %v695_v52 }
 0x11e   :  { %v1245_v63 = vpack.c.bf16 %v727_v53, %v727_v53  ;;  %v499_v0 = vadd.f32 %v1724_v6, %v498_v60  ;;  %v659_v1 = vadd.f32 %v1724_v6, %v658_v61  ;;  %1017 = vst.msk [vmem:[%s2049_s3 + $0x74] sm:$0xf] %vm987_vm1, %v1214_v56  ;;  %v698_v2 = vmax.f32 %v504_v58, 0.0 }
 0x11f   :  { %1049 = vst.msk [vmem:[%s2049_s3 + $0xf4] sm:$0xf] %vm987_vm1, %v1246_v57  ;;  %v730_v3 = vmax.f32 %v664_v59, 0.0  ;;  %1016 = vst.msk [vmem:[%s2049_s3 + $0x70] sm:$0xf] %vm987_vm1, %v1213_v62 }
 0x120   :  { %1048 = vst.msk [vmem:[%s2049_s3 + $0xf0] sm:$0xf] %vm987_vm1, %v1245_v63  ;;  %v697_v6 = vmax.f32 %v499_v0, 0.0  ;;  %v729_v4 = vmax.f32 %v659_v1, 0.0  ;;  %v1216_v5 = vpack.c.bf16 %v698_v2, %v698_v2 }
 0x121   :  { %v1248_v7 = vpack.c.bf16 %v730_v3, %v730_v3 }
 0x122   :  { %v1215_v8 = vpack.c.bf16 %v697_v6, %v697_v6  ;;  %v1247_v9 = vpack.c.bf16 %v729_v4, %v729_v4  ;;  %1019 = vst.msk [vmem:[%s2049_s3 + $0x7c] sm:$0xf] %vm987_vm1, %v1216_v5 }
 0x123   :  { %1051 = vst.msk [vmem:[%s2049_s3 + $0xfc] sm:$0xf] %vm987_vm1, %v1248_v7 }
 0x124   :  { %1018 = vst.msk [vmem:[%s2049_s3 + $0x78] sm:$0xf] %vm987_vm1, %v1215_v8  ;;  %1050 = vst.msk [vmem:[%s2049_s3 + $0xf8] sm:$0xf] %vm987_vm1, %v1247_v9 }

// kernel: net_forward.3
= control target key start
LH: loop header
LB: loop body
LE: loop exit
PB: predicated region body
PF: predicated region fallthrough
CT: control target
= control target key end

     0   :  { %v1075_v28 = vlaneseq  ;;  %v9788_v36 = vmov 1966171168   ;;  %s12236_s0 = inlined_call_operand.vmem [shape: bf16[2,8192], index: 0, kind: input, shape index: {}]   ;;  %s12237_s1 = inlined_call_operand.vmem [shape: bf16[8192,128], index: 1, kind: input, shape index: {}]   ;;  %s12238_s2 = inlined_call_operand.vmem [shape: f32[1,128], index: 2, kind: input, shape index: {}]   ;;  %s12239_s3 = inlined_call_operand.vmem [shape: bf16[128,3072], index: 3, kind: input, shape index: {}]   ;;  %s12240_s4 = inlined_call_operand.vmem [shape: f32[1,3072], index: 4, kind: input, shape index: {}]   ;;  %s12241_s5 = inlined_call_operand.hbm [shape: f32[2,128], index: 5, kind: output, shape index: {0}]   ;;  %s12242_s6 = inlined_call_operand.vmem [shape: f32[2,3072], index: 6, kind: output, shape index: {1}]  }
   0x1   :  { %v9244_v0 = vld [vmem:[%s12237_s1 + $0x40] sm:$0xff]   ;;  %v9248_v4 = vld [vmem:[%s12237_s1 + $0x48] sm:$0xff]   ;;  %v9252_v8 = vld [vmem:[%s12237_s1 + $0x50] sm:$0xff]   ;;  %v1073_v37 = vunpack.c.l.s4 %v9788_v36 }
   0x2   :  { %v9245_v1 = vld [vmem:[%s12237_s1 + $0xc0] sm:$0xff]   ;;  %8536 = vmatprep.subr.bf16.mxu0 %v9244_v0  ;;  %v9249_v5 = vld [vmem:[%s12237_s1 + $0xc8] sm:$0xff]   ;;  %v9253_v9 = vld [vmem:[%s12237_s1 + $0xd0] sm:$0xff]   ;;  %v9923_v33 = vshrl.u32 %v1075_v28, 7 }
   0x3   :  { %v9246_v2 = vld [vmem:[%s12237_s1] sm:$0xff]   ;;  %8558 = vmatprep.subr.bf16.mxu1 %v9245_v1  ;;  %v9250_v6 = vld [vmem:[%s12237_s1 + $0x8] sm:$0xff]   ;;  %v9254_v10 = vld [vmem:[%s12237_s1 + $0x10] sm:$0xff]   ;;  %v1074_v40 = vunpack.c.0.s8 %v1073_v37 }
   0x4   :  { %v9247_v3 = vld [vmem:[%s12237_s1 + $0x80] sm:$0xff]   ;;  %8537 = vmatpush3.bf16.msra.mxu0 %v9246_v2  ;;  %v9251_v7 = vld [vmem:[%s12237_s1 + $0x88] sm:$0xff]   ;;  %v9255_v11 = vld [vmem:[%s12237_s1 + $0x90] sm:$0xff]  }
   0x5   :  { %8559 = vmatpush3.bf16.msra.mxu1 %v9247_v3  ;;  %8538 = vmatprep.subr.bf16.mxu0 %v9248_v4  ;;  %v9256_v12 = vld [vmem:[%s12237_s1 + $0x58] sm:$0xff]   ;;  %v9260_v16 = vld [vmem:[%s12237_s1 + $0x60] sm:$0xff]   ;;  %v9264_v20 = vld [vmem:[%s12237_s1 + $0x68] sm:$0xff]   ;;  %v9935_v41 = vsub.s32 %v1074_v40, %v9923_v33 }
   0x6   :  { %8560 = vmatprep.subr.bf16.mxu1 %v9249_v5  ;;  %v9257_v13 = vld [vmem:[%s12237_s1 + $0xd8] sm:$0xff]   ;;  %v9261_v17 = vld [vmem:[%s12237_s1 + $0xe0] sm:$0xff]   ;;  %v9265_v21 = vld [vmem:[%s12237_s1 + $0xe8] sm:$0xff]  }
   0x7   :  { %v9258_v14 = vld [vmem:[%s12237_s1 + $0x18] sm:$0xff]   ;;  %v9262_v18 = vld [vmem:[%s12237_s1 + $0x20] sm:$0xff]   ;;  %v9266_v22 = vld [vmem:[%s12237_s1 + $0x28] sm:$0xff]  }
   0x8   :  { %8539 = vmatpush3.bf16.msra.mxu0 %v9250_v6  ;;  %v9259_v15 = vld [vmem:[%s12237_s1 + $0x98] sm:$0xff]   ;;  %v9263_v19 = vld [vmem:[%s12237_s1 + $0xa0] sm:$0xff]   ;;  %v9267_v23 = vld [vmem:[%s12237_s1 + $0xa8] sm:$0xff]  }
   0x9   :  { %8561 = vmatpush3.bf16.msra.mxu1 %v9251_v7  ;;  %8540 = vmatprep.subr.bf16.mxu0 %v9252_v8  ;;  %v9268_v24 = vld [vmem:[%s12237_s1 + $0x70] sm:$0xff]   ;;  %v9272_v29 = vld [vmem:[%s12237_s1 + $0x78] sm:$0xff]   ;;  %v24_v34 = vld [vmem:[%s12236_s0] sm:$0xff] }
   0xa   :  { %8562 = vmatprep.subr.bf16.mxu1 %v9253_v9  ;;  %v9269_v25 = vld [vmem:[%s12237_s1 + $0xf0] sm:$0xff]   ;;  %v9273_v30 = vld [vmem:[%s12237_s1 + $0xf8] sm:$0xff]   ;;  %v9277_v35 = vld [vmem:[%s12237_s1 + $0x140] sm:$0xff]   ;;  %v1071_v39 = vcombine.high %v24_v34, %v24_v34  ;;  %v1078_v42 = vrot.slane %v24_v34, %v9935_v41 }
   0xb   :  { %v9270_v26 = vld [vmem:[%s12237_s1 + $0x30] sm:$0xff]   ;;  %v9274_v31 = vld [vmem:[%s12237_s1 + $0x38] sm:$0xff]   ;;  %v9278_v38 = vld [vmem:[%s12237_s1 + $0x1c0] sm:$0xff]  }
   0xc   :  { %8541 = vmatpush3.bf16.msra.mxu0 %v9254_v10  ;;  %v9271_v27 = vld [vmem:[%s12237_s1 + $0xb0] sm:$0xff]   ;;  %v9275_v32 = vld [vmem:[%s12237_s1 + $0xb8] sm:$0xff]   ;;  %v9939_v43 = vrot.slane %v1071_v39, %v9935_v41  ;;  %v1086_v44 = vcombine.high %v1078_v42, %v1078_v42  ;;  %v1094_v45 = vrot.slane %v1078_v42, %v9935_v41  ;;  %v9279_v47 = vld [vmem:[%s12237_s1 + $0x100] sm:$0xff]  }
   0xd   :  { %8563 = vmatpush3.bf16.msra.mxu1 %v9255_v11  ;;  %8542 = vmatprep.subr.bf16.mxu0 %v9256_v12  ;;  %v9280_v49 = vld [vmem:[%s12237_s1 + $0x180] sm:$0xff]   ;;  %v9281_v52 = vld [vmem:[%s12237_s1 + $0x148] sm:$0xff]   ;;  %v9285_v58 = vld [vmem:[%s12237_s1 + $0x150] sm:$0xff]  }
   0xe   :  { %8564 = vmatprep.subr.bf16.mxu1 %v9257_v13  ;;  %v1087_v46 = vcombine.high %v9939_v43, %v9939_v43  ;;  %v1108_v48 = vrot.slane %v1086_v44, %v9935_v41  ;;  %v1116_v51 = vcombine.high %v1094_v45, %v1094_v45  ;;  %v9282_v54 = vld [vmem:[%s12237_s1 + $0x1c8] sm:$0xff]   ;;  %v9286_v59 = vld [vmem:[%s12237_s1 + $0x1d0] sm:$0xff]   ;;  %v9289_v62 = vld [vmem:[%s12237_s1 + $0x158] sm:$0xff]  }
   0xf   :  { %v9283_v55 = vld [vmem:[%s12237_s1 + $0x108] sm:$0xff]   ;;  %v9287_v60 = vld [vmem:[%s12237_s1 + $0x110] sm:$0xff]   ;;  %v9290_v63 = vld [vmem:[%s12237_s1 + $0x1d8] sm:$0xff]  }
  0x10   :  { %8543 = vmatpush3.bf16.msra.mxu0 %v9258_v14  ;;  %v1115_v50 = vrot.slane %v1087_v46, %v9935_v41  ;;  %4631 = vmatprep.mubr.bf16.mxu0 %v1108_v48  ;;  %v1118_v53 = vcombine.high %v1108_v48, %v1108_v48  ;;  %v9284_v57 = vld [vmem:[%s12237_s1 + $0x188] sm:$0xff]   ;;  %v9288_v61 = vld [vmem:[%s12237_s1 + $0x190] sm:$0xff]   ;;  %v9291_v0 = vld [vmem:[%s12237_s1 + $0x118] sm:$0xff]  }
  0x11   :  { %8565 = vmatpush3.bf16.msra.mxu1 %v9259_v15  ;;  %8544 = vmatprep.subr.bf16.mxu0 %v9260_v16  ;;  %v9292_v1 = vld [vmem:[%s12237_s1 + $0x198] sm:$0xff]   ;;  %v9293_v2 = vld [vmem:[%s12237_s1 + $0x160] sm:$0xff]   ;;  %v9297_v6 = vld [vmem:[%s12237_s1 + $0x168] sm:$0xff]  }
  0x12   :  { %8566 = vmatprep.subr.bf16.mxu1 %v9261_v17  ;;  %v1119_v56 = vcombine.high %v1115_v50, %v1115_v50  ;;  %4671 = vmatprep.mubr.bf16.mxu1 %v1118_v53  ;;  %v9294_v3 = vld [vmem:[%s12237_s1 + $0x1e0] sm:$0xff]   ;;  %v9298_v7 = vld [vmem:[%s12237_s1 + $0x1e8] sm:$0xff]   ;;  %v9301_v10 = vld [vmem:[%s12237_s1 + $0x170] sm:$0xff]  }
  0x13   :  { %v9295_v4 = vld [vmem:[%s12237_s1 + $0x120] sm:$0xff]   ;;  %v9299_v8 = vld [vmem:[%s12237_s1 + $0x128] sm:$0xff]   ;;  %v9302_v11 = vld [vmem:[%s12237_s1 + $0x1f0] sm:$0xff]  }
  0x14   :  { %8545 = vmatpush3.bf16.msra.mxu0 %v9262_v18  ;;  %v9296_v5 = vld [vmem:[%s12237_s1 + $0x1a0] sm:$0xff]   ;;  %v9300_v9 = vld [vmem:[%s12237_s1 + $0x1a8] sm:$0xff]   ;;  %v9303_v12 = vld [vmem:[%s12237_s1 + $0x130] sm:$0xff]   ;;  %v1101_v18 = vrot.slane %v9939_v43, %v9935_v41 }
  0x15   :  { %8567 = vmatpush3.bf16.msra.mxu1 %v9263_v19  ;;  %8546 = vmatprep.subr.bf16.mxu0 %v9264_v20  ;;  %v9304_v13 = vld [vmem:[%s12237_s1 + $0x1b0] sm:$0xff]   ;;  %v9305_v14 = vld [vmem:[%s12237_s1 + $0x178] sm:$0xff]   ;;  %v9309_v19 = vld [vmem:[%s12237_s1 + $0x240] sm:$0xff]  }
  0x16   :  { %8568 = vmatprep.subr.bf16.mxu1 %v9265_v21  ;;  %v9306_v15 = vld [vmem:[%s12237_s1 + $0x1f8] sm:$0xff]   ;;  %v9310_v20 = vld [vmem:[%s12237_s1 + $0x2c0] sm:$0xff]   ;;  %v9317_v28 = vld [vmem:[%s12237_s1 + $0x250] sm:$0xff]  }
  0x17   :  { %v9307_v16 = vld [vmem:[%s12237_s1 + $0x138] sm:$0xff]   ;;  %v9311_v21 = vld [vmem:[%s12237_s1 + $0x200] sm:$0xff]   ;;  %v9329_v42 = vld [vmem:[%s12237_s1 + $0x268] sm:$0xff]  }
  0x18   :  { %8547 = vmatpush3.bf16.msra.mxu0 %v9266_v22  ;;  %v9308_v17 = vld [vmem:[%s12237_s1 + $0x1b8] sm:$0xff]   ;;  %v9312_v22 = vld [vmem:[%s12237_s1 + $0x280] sm:$0xff]   ;;  %v9330_v43 = vld [vmem:[%s12237_s1 + $0x2e8] sm:$0xff]  }
  0x19   :  { %8569 = vmatpush3.bf16.msra.mxu1 %v9267_v23  ;;  %8548 = vmatprep.subr.bf16.mxu0 %v9268_v24  ;;  %v1117_v23 = vcombine.high %v1101_v18, %v1101_v18  ;;  %v9313_v24 = vld [vmem:[%s12237_s1 + $0x248] sm:$0xff]   ;;  %v9322_v34 = vld [vmem:[%s12237_s1 + $0x2d8] sm:$0xff]   ;;  %v9325_v37 = vld [vmem:[%s12237_s1 + $0x260] sm:$0xff]  }
  0x1a   :  { %8570 = vmatprep.subr.bf16.mxu1 %v9269_v25  ;;  %v9314_v25 = vld [vmem:[%s12237_s1 + $0x2c8] sm:$0xff]   ;;  %v9324_v36 = vld [vmem:[%s12237_s1 + $0x298] sm:$0xff]   ;;  %v9327_v39 = vld [vmem:[%s12237_s1 + $0x220] sm:$0xff]  }
  0x1b   :  { %v9328_v40 = vld [vmem:[%s12237_s1 + $0x2a0] sm:$0xff]   ;;  %v9331_v44 = vld [vmem:[%s12237_s1 + $0x228] sm:$0xff]   ;;  %v9333_v46 = vld [vmem:[%s12237_s1 + $0x270] sm:$0xff]  }
  0x1c   :  { %8549 = vmatpush3.bf16.msra.mxu0 %v9270_v26  ;;  %v9315_v26 = vld [vmem:[%s12237_s1 + $0x208] sm:$0xff]   ;;  %v9334_v48 = vld [vmem:[%s12237_s1 + $0x2f0] sm:$0xff]  }
  0x1d   :  { %8571 = vmatpush3.bf16.msra.mxu1 %v9271_v27  ;;  %8550 = vmatprep.subr.bf16.mxu0 %v9272_v29  ;;  %v9316_v27 = vld [vmem:[%s12237_s1 + $0x288] sm:$0xff]   ;;  %v9318_v29 = vld [vmem:[%s12237_s1 + $0x2d0] sm:$0xff]  }
  0x1e   :  { %8572 = vmatprep.subr.bf16.mxu1 %v9273_v30  ;;  %v9319_v30 = vld [vmem:[%s12237_s1 + $0x210] sm:$0xff]  }
  0x20   :  { %8551 = vmatpush3.bf16.msra.mxu0 %v9274_v31  ;;  %v9320_v31 = vld [vmem:[%s12237_s1 + $0x290] sm:$0xff]  }
  0x21   :  { %8573 = vmatpush3.bf16.msra.mxu1 %v9275_v32  ;;  %8580 = vmatprep.subr.bf16.mxu0 %v9277_v35  ;;  %v9321_v32 = vld [vmem:[%s12237_s1 + $0x258] sm:$0xff]  }
  0x22   :  { %8602 = vmatprep.subr.bf16.mxu1 %v9278_v38  ;;  %v9323_v35 = vld [vmem:[%s12237_s1 + $0x218] sm:$0xff]   ;;  %v9326_v38 = vld [vmem:[%s12237_s1 + $0x2e0] sm:$0xff]  }
  0x23   :  { %4632 = vmatmul.mubr.bf16.vlgmr.msra.gmra.mrb[0].mxu0 %v1094_v45  ;;  %v9332_v45 = vld [vmem:[%s12237_s1 + $0x2a8] sm:$0xff]  }
  0x24   :  { %8581 = vmatpush3.bf16.msra.mxu0 %v9279_v47  ;;  %4672 = vmatmul.mubr.bf16.vlgmr.msra.gmra.mrb[0].mxu1 %v1116_v51  ;;  %v25_v47 = vld [vmem:[%s12236_s0 + $0x8] sm:$0xff]  ;;  %v9335_v51 = vld [vmem:[%s12237_s1 + $0x230] sm:$0xff]  }
  0x25   :  { %8582 = vmatprep.subr.bf16.mxu0 %v9281_v52  ;;  %8603 = vmatpush3.bf16.msra.mxu1 %v9280_v49  ;;  %v1127_v49 = vrot.slane %v25_v47, %v9935_v41  ;;  %v9336_v52 = vld [vmem:[%s12237_s1 + $0x2b0] sm:$0xff]  }
  0x26   :  { %4711 = vmatprep.mubr.bf16.mxu0 %v1115_v50  ;;  %8604 = vmatprep.subr.bf16.mxu1 %v9282_v54  ;;  %v1120_v50 = vcombine.high %v25_v47, %v25_v47  ;;  %v9383_v47 = vld [vmem:[%s12237_s1 + $0x4d0] sm:$0xff]  }
  0x27   :  { %4751 = vmatprep.mubr.bf16.mxu1 %v1119_v56  ;;  %v1135_v53 = vcombine.high %v1127_v49, %v1127_v49  ;;  %v9338_v56 = vld [vmem:[%s12237_s1 + $0x2f8] sm:$0xff]  }
  0x28   :  { %8583 = vmatpush3.bf16.msra.mxu0 %v9283_v55  ;;  %v10127_v54 = vrot.slane %v1120_v50, %v9935_v41  ;;  %v9337_v55 = vld [vmem:[%s12237_s1 + $0x278] sm:$0xff]  }
  0x29   :  { %8584 = vmatprep.subr.bf16.mxu0 %v9285_v58  ;;  %8605 = vmatpush3.bf16.msra.mxu1 %v9284_v57  ;;  %v1157_v57 = vrot.slane %v1135_v53, %v9935_v41  ;;  %v9386_v50 = vld [vmem:[%s12237_s1 + $0x458] sm:$0xff]  }
  0x2a   :  { %8606 = vmatprep.subr.bf16.mxu1 %v9286_v59  ;;  %v1136_v58 = vcombine.high %v10127_v54, %v10127_v54  ;;  %v9339_v59 = vld [vmem:[%s12237_s1 + $0x238] sm:$0xff]  }
  0x2b   :  { %v9389_v53 = vld [vmem:[%s12237_s1 + $0x498] sm:$0xff]  }
  0x2c   :  { %8585 = vmatpush3.bf16.msra.mxu0 %v9287_v60  ;;  %v9340_v60 = vld [vmem:[%s12237_s1 + $0x2b8] sm:$0xff]  }
  0x2d   :  { %8586 = vmatprep.subr.bf16.mxu0 %v9289_v62  ;;  %8607 = vmatpush3.bf16.msra.mxu1 %v9288_v61  ;;  %v1167_v61 = vcombine.high %v1157_v57, %v1157_v57  ;;  %v1143_v62 = vrot.slane %v1127_v49, %v9935_v41  ;;  %v9385_v49 = vld [vmem:[%s12237_s1 + $0x490] sm:$0xff]  }
  0x2e   :  { %8608 = vmatprep.subr.bf16.mxu1 %v9290_v63  ;;  %v9341_v63 = vld [vmem:[%s12237_s1 + $0x340] sm:$0xff]  }
  0x30   :  { %8587 = vmatpush3.bf16.msra.mxu0 %v9291_v0  ;;  %v9342_v0 = vld [vmem:[%s12237_s1 + $0x3c0] sm:$0xff]  }
  0x31   :  { %8588 = vmatprep.subr.bf16.mxu0 %v9293_v2  ;;  %8609 = vmatpush3.bf16.msra.mxu1 %v9292_v1  ;;  %v1164_v1 = vrot.slane %v1136_v58, %v9935_v41  ;;  %v9343_v2 = vld [vmem:[%s12237_s1 + $0x300] sm:$0xff]   ;;  %v9394_v58 = vld [vmem:[%s12237_s1 + $0x468] sm:$0xff]  }
  0x32   :  { %8610 = vmatprep.subr.bf16.mxu1 %v9294_v3  ;;  %v9344_v3 = vld [vmem:[%s12237_s1 + $0x380] sm:$0xff]  }
  0x34   :  { %8589 = vmatpush3.bf16.msra.mxu0 %v9295_v4  ;;  %v1165_v4 = vcombine.high %v1143_v62, %v1143_v62 }
  0x35   :  { %8590 = vmatprep.subr.bf16.mxu0 %v9297_v6  ;;  %8611 = vmatpush3.bf16.msra.mxu1 %v9296_v5  ;;  %v9345_v5 = vld [vmem:[%s12237_s1 + $0x348] sm:$0xff]  }
  0x36   :  { %8612 = vmatprep.subr.bf16.mxu1 %v9298_v7  ;;  %v9346_v6 = vld [vmem:[%s12237_s1 + $0x3c8] sm:$0xff]   ;;  %v1168_v7 = vcombine.high %v1164_v1, %v1164_v1 }
  0x38   :  { %8591 = vmatpush3.bf16.msra.mxu0 %v9299_v8  ;;  %v9347_v8 = vld [vmem:[%s12237_s1 + $0x308] sm:$0xff]  }
  0x39   :  { %8592 = vmatprep.subr.bf16.mxu0 %v9301_v10  ;;  %8613 = vmatpush3.bf16.msra.mxu1 %v9300_v9  ;;  %v9348_v9 = vld [vmem:[%s12237_s1 + $0x388] sm:$0xff]   ;;  %v9349_v10 = vld [vmem:[%s12237_s1 + $0x350] sm:$0xff]  }
  0x3a   :  { %8614 = vmatprep.subr.bf16.mxu1 %v9302_v11  ;;  %v9350_v11 = vld [vmem:[%s12237_s1 + $0x3d0] sm:$0xff]  }
  0x3c   :  { %8593 = vmatpush3.bf16.msra.mxu0 %v9303_v12  ;;  %v9351_v12 = vld [vmem:[%s12237_s1 + $0x310] sm:$0xff]  }
  0x3d   :  { %8594 = vmatprep.subr.bf16.mxu0 %v9305_v14  ;;  %8615 = vmatpush3.bf16.msra.mxu1 %v9304_v13  ;;  %v9352_v13 = vld [vmem:[%s12237_s1 + $0x390] sm:$0xff]   ;;  %v9353_v14 = vld [vmem:[%s12237_s1 + $0x358] sm:$0xff]  }
  0x3e   :  { %8616 = vmatprep.subr.bf16.mxu1 %v9306_v15  ;;  %v9354_v15 = vld [vmem:[%s12237_s1 + $0x3d8] sm:$0xff]  }
  0x40   :  { %8595 = vmatpush3.bf16.msra.mxu0 %v9307_v16  ;;  %v9355_v16 = vld [vmem:[%s12237_s1 + $0x318] sm:$0xff]  }
  0x41   :  { %8624 = vmatprep.subr.bf16.mxu0 %v9309_v19  ;;  %8617 = vmatpush3.bf16.msra.mxu1 %v9308_v17  ;;  %v9356_v17 = vld [vmem:[%s12237_s1 + $0x398] sm:$0xff]   ;;  %v9358_v19 = vld [vmem:[%s12237_s1 + $0x3e0] sm:$0xff]  }
  0x42   :  { %8646 = vmatprep.subr.bf16.mxu1 %v9310_v20  ;;  %v9359_v20 = vld [vmem:[%s12237_s1 + $0x320] sm:$0xff]  }
  0x43   :  { %4712 = vmatmul.mubr.bf16.vlgmr.msra.gmra.mrb[4].mxu0 %v1101_v18  ;;  %v9357_v18 = vld [vmem:[%s12237_s1 + $0x360] sm:$0xff]  }
  0x44   :  { %8625 = vmatpush3.bf16.msra.mxu0 %v9311_v21  ;;  %4752 = vmatmul.mubr.bf16.vlgmr.msra.gmra.mrb[4].mxu1 %v1117_v23  ;;  %v9360_v21 = vld [vmem:[%s12237_s1 + $0x3a0] sm:$0xff]   ;;  %v9362_v23 = vld [vmem:[%s12237_s1 + $0x3e8] sm:$0xff]  }
  0x45   :  { %8626 = vmatprep.subr.bf16.mxu0 %v9313_v24  ;;  %8647 = vmatpush3.bf16.msra.mxu1 %v9312_v22  ;;  %v9361_v22 = vld [vmem:[%s12237_s1 + $0x368] sm:$0xff]  }
  0x46   :  { %8648 = vmatprep.subr.bf16.mxu1 %v9314_v25  ;;  %4791 = vmatprep.mubr.bf16.mxu0 %v1157_v57  ;;  %v9363_v24 = vld [vmem:[%s12237_s1 + $0x328] sm:$0xff]   ;;  %v9393_v57 = vld [vmem:[%s12237_s1 + $0x4a0] sm:$0xff]  }
  0x47   :  { %4831 = vmatprep.mubr.bf16.mxu1 %v1167_v61  ;;  %v9364_v25 = vld [vmem:[%s12237_s1 + $0x3a8] sm:$0xff]  }
  0x48   :  { %8627 = vmatpush3.bf16.msra.mxu0 %v9315_v26  ;;  %v9365_v26 = vld [vmem:[%s12237_s1 + $0x370] sm:$0xff]   ;;  %v9397_v61 = vld [vmem:[%s12237_s1 + $0x4a8] sm:$0xff]  }
  0x49   :  { %8628 = vmatprep.subr.bf16.mxu0 %v9317_v28  ;;  %8649 = vmatpush3.bf16.msra.mxu1 %v9316_v27  ;;  %v9366_v27 = vld [vmem:[%s12237_s1 + $0x3f0] sm:$0xff]  }
  0x4a   :  { %8650 = vmatprep.subr.bf16.mxu1 %v9318_v29  ;;  %v9367_v28 = vld [vmem:[%s12237_s1 + $0x330] sm:$0xff]  }
  0x4b   :  { %v9368_v29 = vld [vmem:[%s12237_s1 + $0x3b0] sm:$0xff]  }
  0x4c   :  { %8629 = vmatpush3.bf16.msra.mxu0 %v9319_v30  ;;  %v9369_v30 = vld [vmem:[%s12237_s1 + $0x378] sm:$0xff]  }
  0x4d   :  { %8630 = vmatprep.subr.bf16.mxu0 %v9321_v32  ;;  %8651 = vmatpush3.bf16.msra.mxu1 %v9320_v31  ;;  %v9370_v31 = vld [vmem:[%s12237_s1 + $0x3f8] sm:$0xff]  }
  0x4e   :  { %8652 = vmatprep.subr.bf16.mxu1 %v9322_v34  ;;  %v9371_v32 = vld [vmem:[%s12237_s1 + $0x338] sm:$0xff]  }
  0x4f   :  { %v9372_v34 = vld [vmem:[%s12237_s1 + $0x3b8] sm:$0xff]  }
  0x50   :  { %8631 = vmatpush3.bf16.msra.mxu0 %v9323_v35  ;;  %v1150_v35 = vrot.slane %v10127_v54, %v9935_v41  ;;  %v9390_v54 = vld [vmem:[%s12237_s1 + $0x460] sm:$0xff]  }
  0x51   :  { %8632 = vmatprep.subr.bf16.mxu0 %v9325_v37  ;;  %8653 = vmatpush3.bf16.msra.mxu1 %v9324_v36  ;;  %v9374_v36 = vld [vmem:[%s12237_s1 + $0x440] sm:$0xff]  }
  0x52   :  { %8654 = vmatprep.subr.bf16.mxu1 %v9326_v38  ;;  %v9375_v37 = vld [vmem:[%s12237_s1 + $0x4c0] sm:$0xff]  }
  0x53   :  { %v9376_v38 = vld [vmem:[%s12237_s1 + $0x400] sm:$0xff]  }
  0x54   :  { %8633 = vmatpush3.bf16.msra.mxu0 %v9327_v39  ;;  %v9377_v39 = vld [vmem:[%s12237_s1 + $0x480] sm:$0xff]  }
  0x55   :  { %8634 = vmatprep.subr.bf16.mxu0 %v9329_v42  ;;  %8655 = vmatpush3.bf16.msra.mxu1 %v9328_v40  ;;  %v1166_v40 = vcombine.high %v1150_v35, %v1150_v35  ;;  %v9378_v42 = vld [vmem:[%s12237_s1 + $0x448] sm:$0xff]  }
  0x56   :  { %8656 = vmatprep.subr.bf16.mxu1 %v9330_v43  ;;  %v9379_v43 = vld [vmem:[%s12237_s1 + $0x4c8] sm:$0xff]  }
  0x58   :  { %8635 = vmatpush3.bf16.msra.mxu0 %v9331_v44  ;;  %v9380_v44 = vld [vmem:[%s12237_s1 + $0x408] sm:$0xff]  }
  0x59   :  { %8636 = vmatprep.subr.bf16.mxu0 %v9333_v46  ;;  %8657 = vmatpush3.bf16.msra.mxu1 %v9332_v45  ;;  %v9381_v45 = vld [vmem:[%s12237_s1 + $0x488] sm:$0xff]   ;;  %v9382_v46 = vld [vmem:[%s12237_s1 + $0x450] sm:$0xff]  }
  0x5a   :  { %8658 = vmatprep.subr.bf16.mxu1 %v9334_v48  ;;  %v9384_v48 = vld [vmem:[%s12237_s1 + $0x410] sm:$0xff]  }
  0x5c   :  { %8637 = vmatpush3.bf16.msra.mxu0 %v9335_v51  ;;  %v9387_v51 = vld [vmem:[%s12237_s1 + $0x4d8] sm:$0xff]  }
  0x5d   :  { %8638 = vmatprep.subr.bf16.mxu0 %v9337_v55  ;;  %8659 = vmatpush3.bf16.msra.mxu1 %v9336_v52  ;;  %v9388_v52 = vld [vmem:[%s12237_s1 + $0x418] sm:$0xff]   ;;  %v9391_v55 = vld [vmem:[%s12237_s1 + $0x4e0] sm:$0xff]  }
  0x5e   :  { %8660 = vmatprep.subr.bf16.mxu1 %v9338_v56  ;;  %v9392_v56 = vld [vmem:[%s12237_s1 + $0x420] sm:$0xff]  }
  0x60   :  { %8639 = vmatpush3.bf16.msra.mxu0 %v9339_v59  ;;  %v9395_v59 = vld [vmem:[%s12237_s1 + $0x4e8] sm:$0xff]  }
  0x61   :  { %8668 = vmatprep.subr.bf16.mxu0 %v9341_v63  ;;  %8661 = vmatpush3.bf16.msra.mxu1 %v9340_v60  ;;  %v9396_v60 = vld [vmem:[%s12237_s1 + $0x428] sm:$0xff]   ;;  %v26_v63 = vld [vmem:[%s12236_s0 + $0x10] sm:$0xff] }
  0x62   :  { %8690 = vmatprep.subr.bf16.mxu1 %v9342_v0  ;;  %v9399_v0 = vld [vmem:[%s12237_s1 + $0x4f0] sm:$0xff]  }
  0x63   :  { %4792 = vmatmul.mubr.bf16.vlgmr.msra.gmra.mrb[8].mxu0 %v1143_v62  ;;  %v9398_v62 = vld [vmem:[%s12237_s1 + $0x470] sm:$0xff]  }
  0x64   :  { %8669 = vmatpush3.bf16.msra.mxu0 %v9343_v2  ;;  %4871 = vmatprep.mubr.bf16.mxu0 %v1164_v1  ;;  %v1176_v1 = vrot.slane %v26_v63, %v9935_v41  ;;  %v1169_v2 = vcombine.high %v26_v63, %v26_v63  ;;  %v9448_v63 = vld [vmem:[%s12237_s1 + $0x6d0] sm:$0xff]  }
  0x65   :  { %4832 = vmatmul.mubr.bf16.vlgmr.msra.gmra.mrb[8].mxu1 %v1165_v4  ;;  %8670 = vmatprep.subr.bf16.mxu0 %v9345_v5  ;;  %v9401_v4 = vld [vmem:[%s12237_s1 + $0x4b0] sm:$0xff]  }
  0x66   :  { %8691 = vmatpush3.bf16.msra.mxu1 %v9344_v3  ;;  %4911 = vmatprep.mubr.bf16.mxu1 %v1168_v7  ;;  %v9400_v3 = vld [vmem:[%s12237_s1 + $0x430] sm:$0xff]   ;;  %v1184_v5 = vcombine.high %v1176_v1, %v1176_v1  ;;  %v9402_v7 = vld [vmem:[%s12237_s1 + $0x478] sm:$0xff]  }
  0x67   :  { %8692 = vmatprep.subr.bf16.mxu1 %v9346_v6  ;;  %v10333_v6 = vrot.slane %v1169_v2, %v9935_v41  ;;  %v9451_v2 = vld [vmem:[%s12237_s1 + $0x658] sm:$0xff]  }
  0x68   :  { %8671 = vmatpush3.bf16.msra.mxu0 %v9347_v8  ;;  %v9403_v8 = vld [vmem:[%s12237_s1 + $0x4f8] sm:$0xff]  }
  0x69   :  { %8672 = vmatprep.subr.bf16.mxu0 %v9349_v10  ;;  %v1185_v10 = vcombine.high %v10333_v6, %v10333_v6 }
  0x6a   :  { %8693 = vmatpush3.bf16.msra.mxu1 %v9348_v9  ;;  %v1206_v9 = vrot.slane %v1184_v5, %v9935_v41  ;;  %v9454_v5 = vld [vmem:[%s12237_s1 + $0x698] sm:$0xff]  }
  0x6b   :  { %8694 = vmatprep.subr.bf16.mxu1 %v9350_v11  ;;  %v9404_v11 = vld [vmem:[%s12237_s1 + $0x438] sm:$0xff]  }
  0x6c   :  { %8673 = vmatpush3.bf16.msra.mxu0 %v9351_v12  ;;  %v9405_v12 = vld [vmem:[%s12237_s1 + $0x4b8] sm:$0xff]  }
  0x6d   :  { %8674 = vmatprep.subr.bf16.mxu0 %v9353_v14  ;;  %v1192_v14 = vrot.slane %v1176_v1, %v9935_v41  ;;  %v9450_v1 = vld [vmem:[%s12237_s1 + $0x690] sm:$0xff]  }
  0x6e   :  { %8695 = vmatpush3.bf16.msra.mxu1 %v9352_v13  ;;  %v1216_v13 = vcombine.high %v1206_v9, %v1206_v9 }
  0x6f   :  { %8696 = vmatprep.subr.bf16.mxu1 %v9354_v15  ;;  %v9406_v15 = vld [vmem:[%s12237_s1 + $0x540] sm:$0xff]  }
  0x70   :  { %8675 = vmatpush3.bf16.msra.mxu0 %v9355_v16  ;;  %v9407_v16 = vld [vmem:[%s12237_s1 + $0x5c0] sm:$0xff]  }
  0x71   :  { %8676 = vmatprep.subr.bf16.mxu0 %v9357_v18  ;;  %v9408_v18 = vld [vmem:[%s12237_s1 + $0x500] sm:$0xff]  }
  0x72   :  { %8697 = vmatpush3.bf16.msra.mxu1 %v9356_v17  ;;  %v1213_v17 = vrot.slane %v1185_v10, %v9935_v41  ;;  %v9459_v10 = vld [vmem:[%s12237_s1 + $0x668] sm:$0xff]  }
  0x73   :  { %8698 = vmatprep.subr.bf16.mxu1 %v9358_v19  ;;  %v9409_v19 = vld [vmem:[%s12237_s1 + $0x580] sm:$0xff]  }
  0x74   :  { %8677 = vmatpush3.bf16.msra.mxu0 %v9359_v20  ;;  %v1214_v20 = vcombine.high %v1192_v14, %v1192_v14 }
  0x75   :  { %8678 = vmatprep.subr.bf16.mxu0 %v9361_v22  ;;  %v9411_v22 = vld [vmem:[%s12237_s1 + $0x5c8] sm:$0xff]  }
  0x76   :  { %8699 = vmatpush3.bf16.msra.mxu1 %v9360_v21  ;;  %v9410_v21 = vld [vmem:[%s12237_s1 + $0x548] sm:$0xff]  }
  0x77   :  { %8700 = vmatprep.subr.bf16.mxu1 %v9362_v23  ;;  %v1217_v23 = vcombine.high %v1213_v17, %v1213_v17 }
  0x78   :  { %8679 = vmatpush3.bf16.msra.mxu0 %v9363_v24  ;;  %v9412_v24 = vld [vmem:[%s12237_s1 + $0x508] sm:$0xff]  }
  0x79   :  { %8680 = vmatprep.subr.bf16.mxu0 %v9365_v26  ;;  %v9414_v26 = vld [vmem:[%s12237_s1 + $0x550] sm:$0xff]  }
  0x7a   :  { %8701 = vmatpush3.bf16.msra.mxu1 %v9364_v25  ;;  %v9413_v25 = vld [vmem:[%s12237_s1 + $0x588] sm:$0xff]  }
  0x7b   :  { %8702 = vmatprep.subr.bf16.mxu1 %v9366_v27  ;;  %v9415_v27 = vld [vmem:[%s12237_s1 + $0x5d0] sm:$0xff]  }
  0x7c   :  { %8681 = vmatpush3.bf16.msra.mxu0 %v9367_v28  ;;  %v9416_v28 = vld [vmem:[%s12237_s1 + $0x510] sm:$0xff]  }
  0x7d   :  { %8682 = vmatprep.subr.bf16.mxu0 %v9369_v30  ;;  %v9418_v30 = vld [vmem:[%s12237_s1 + $0x558] sm:$0xff]  }
  0x7e   :  { %8703 = vmatpush3.bf16.msra.mxu1 %v9368_v29  ;;  %v9417_v29 = vld [vmem:[%s12237_s1 + $0x590] sm:$0xff]  }
  0x7f   :  { %8704 = vmatprep.subr.bf16.mxu1 %v9370_v31  ;;  %v9419_v31 = vld [vmem:[%s12237_s1 + $0x5d8] sm:$0xff]  }
  0x80   :  { %8683 = vmatpush3.bf16.msra.mxu0 %v9371_v32  ;;  %v9420_v32 = vld [vmem:[%s12237_s1 + $0x518] sm:$0xff]  }
  0x81   :  { %8712 = vmatprep.subr.bf16.mxu0 %v9374_v36  ;;  %v9423_v36 = vld [vmem:[%s12237_s1 + $0x5e0] sm:$0xff]  }
  0x82   :  { %8705 = vmatpush3.bf16.msra.mxu1 %v9372_v34  ;;  %v9421_v34 = vld [vmem:[%s12237_s1 + $0x598] sm:$0xff]  }
  0x83   :  { %4872 = vmatmul.mubr.bf16.vlgmr.msra.gmra.mrb[12].mxu0 %v1150_v35  ;;  %8734 = vmatprep.subr.bf16.mxu1 %v9375_v37  ;;  %v9422_v35 = vld [vmem:[%s12237_s1 + $0x560] sm:$0xff]  }
  0x84   :  { %8713 = vmatpush3.bf16.msra.mxu0 %v9376_v38  ;;  %4951 = vmatprep.mubr.bf16.mxu0 %v1206_v9  ;;  %v9424_v37 = vld [vmem:[%s12237_s1 + $0x520] sm:$0xff]  }
  0x85   :  { %4912 = vmatmul.mubr.bf16.vlgmr.msra.gmra.mrb[12].mxu1 %v1166_v40  ;;  %8714 = vmatprep.subr.bf16.mxu0 %v9378_v42  ;;  %v9425_v38 = vld [vmem:[%s12237_s1 + $0x5a0] sm:$0xff]   ;;  %v9427_v40 = vld [vmem:[%s12237_s1 + $0x5e8] sm:$0xff]  }
  0x86   :  { %8735 = vmatpush3.bf16.msra.mxu1 %v9377_v39  ;;  %4991 = vmatprep.mubr.bf16.mxu1 %v1216_v13  ;;  %v9426_v39 = vld [vmem:[%s12237_s1 + $0x568] sm:$0xff]   ;;  %v9458_v9 = vld [vmem:[%s12237_s1 + $0x6a0] sm:$0xff]  }
  0x87   :  { %8736 = vmatprep.subr.bf16.mxu1 %v9379_v43  ;;  %v9428_v42 = vld [vmem:[%s12237_s1 + $0x528] sm:$0xff]  }
  0x88   :  { %8715 = vmatpush3.bf16.msra.mxu0 %v9380_v44  ;;  %v9429_v43 = vld [vmem:[%s12237_s1 + $0x5a8] sm:$0xff]   ;;  %v9430_v44 = vld [vmem:[%s12237_s1 + $0x570] sm:$0xff]  }
  0x89   :  { %8716 = vmatprep.subr.bf16.mxu0 %v9382_v46  ;;  %v9432_v46 = vld [vmem:[%s12237_s1 + $0x530] sm:$0xff]   ;;  %v9462_v13 = vld [vmem:[%s12237_s1 + $0x6a8] sm:$0xff]  }
  0x8a   :  { %8737 = vmatpush3.bf16.msra.mxu1 %v9381_v45  ;;  %v9431_v45 = vld [vmem:[%s12237_s1 + $0x5f0] sm:$0xff]  }
  0x8b   :  { %8738 = vmatprep.subr.bf16.mxu1 %v9383_v47  ;;  %v9433_v47 = vld [vmem:[%s12237_s1 + $0x5b0] sm:$0xff]  }
  0x8c   :  { %8717 = vmatpush3.bf16.msra.mxu0 %v9384_v48  ;;  %v9434_v48 = vld [vmem:[%s12237_s1 + $0x578] sm:$0xff]  }
  0x8d   :  { %8718 = vmatprep.subr.bf16.mxu0 %v9386_v50  ;;  %v9436_v50 = vld [vmem:[%s12237_s1 + $0x538] sm:$0xff]  }
  0x8e   :  { %8739 = vmatpush3.bf16.msra.mxu1 %v9385_v49  ;;  %v9435_v49 = vld [vmem:[%s12237_s1 + $0x5f8] sm:$0xff]  }
  0x8f   :  { %8740 = vmatprep.subr.bf16.mxu1 %v9387_v51  ;;  %v9437_v51 = vld [vmem:[%s12237_s1 + $0x5b8] sm:$0xff]  }
  0x90   :  { %8719 = vmatpush3.bf16.msra.mxu0 %v9388_v52  ;;  %v1199_v52 = vrot.slane %v10333_v6, %v9935_v41  ;;  %v9455_v6 = vld [vmem:[%s12237_s1 + $0x660] sm:$0xff]  }
  0x91   :  { %8720 = vmatprep.subr.bf16.mxu0 %v9390_v54  ;;  %v9440_v54 = vld [vmem:[%s12237_s1 + $0x6c0] sm:$0xff]  }
  0x92   :  { %8741 = vmatpush3.bf16.msra.mxu1 %v9389_v53  ;;  %v9439_v53 = vld [vmem:[%s12237_s1 + $0x640] sm:$0xff]  }
  0x93   :  { %8742 = vmatprep.subr.bf16.mxu1 %v9391_v55  ;;  %v9441_v55 = vld [vmem:[%s12237_s1 + $0x600] sm:$0xff]  }
  0x94   :  { %8721 = vmatpush3.bf16.msra.mxu0 %v9392_v56  ;;  %v9442_v56 = vld [vmem:[%s12237_s1 + $0x680] sm:$0xff]  }
  0x95   :  { %8722 = vmatprep.subr.bf16.mxu0 %v9394_v58  ;;  %v9443_v58 = vld [vmem:[%s12237_s1 + $0x648] sm:$0xff]  }
  0x96   :  { %8743 = vmatpush3.bf16.msra.mxu1 %v9393_v57  ;;  %v1215_v57 = vcombine.high %v1199_v52, %v1199_v52 }
  0x97   :  { %8744 = vmatprep.subr.bf16.mxu1 %v9395_v59  ;;  %v9444_v59 = vld [vmem:[%s12237_s1 + $0x6c8] sm:$0xff]  }
  0x98   :  { %8723 = vmatpush3.bf16.msra.mxu0 %v9396_v60  ;;  %v9445_v60 = vld [vmem:[%s12237_s1 + $0x608] sm:$0xff]  }
  0x99   :  { %8724 = vmatprep.subr.bf16.mxu0 %v9398_v62  ;;  %v9447_v62 = vld [vmem:[%s12237_s1 + $0x650] sm:$0xff]  }
  0x9a   :  { %8745 = vmatpush3.bf16.msra.mxu1 %v9397_v61  ;;  %v9446_v61 = vld [vmem:[%s12237_s1 + $0x688] sm:$0xff]  }
  0x9b   :  { %8746 = vmatprep.subr.bf16.mxu1 %v9399_v0  ;;  %v9449_v0 = vld [vmem:[%s12237_s1 + $0x610] sm:$0xff]  }
  0x9c   :  { %8725 = vmatpush3.bf16.msra.mxu0 %v9400_v3  ;;  %v9452_v3 = vld [vmem:[%s12237_s1 + $0x6d8] sm:$0xff]  }
  0x9d   :  { %8726 = vmatprep.subr.bf16.mxu0 %v9402_v7  ;;  %v9456_v7 = vld [vmem:[%s12237_s1 + $0x6e0] sm:$0xff]  }
  0x9e   :  { %8747 = vmatpush3.bf16.msra.mxu1 %v9401_v4  ;;  %v9453_v4 = vld [vmem:[%s12237_s1 + $0x618] sm:$0xff]  }
  0x9f   :  { %8748 = vmatprep.subr.bf16.mxu1 %v9403_v8  ;;  %v9457_v8 = vld [vmem:[%s12237_s1 + $0x620] sm:$0xff]  }
  0xa0   :  { %8727 = vmatpush3.bf16.msra.mxu0 %v9404_v11  ;;  %v9460_v11 = vld [vmem:[%s12237_s1 + $0x6e8] sm:$0xff]  }
  0xa1   :  { %8756 = vmatprep.subr.bf16.mxu0 %v9406_v15  ;;  %v27_v15 = vld [vmem:[%s12236_s0 + $0x18] sm:$0xff] }
  0xa2   :  { %8749 = vmatpush3.bf16.msra.mxu1 %v9405_v12  ;;  %v9461_v12 = vld [vmem:[%s12237_s1 + $0x628] sm:$0xff]  }
  0xa3   :  { %4952 = vmatmul.mubr.bf16.vlgmr.msra.gmra.mrb[16].mxu0 %v1192_v14  ;;  %8778 = vmatprep.subr.bf16.mxu1 %v9407_v16  ;;  %v9463_v14 = vld [vmem:[%s12237_s1 + $0x670] sm:$0xff]  }
  0xa4   :  { %8757 = vmatpush3.bf16.msra.mxu0 %v9408_v18  ;;  %5031 = vmatprep.mubr.bf16.mxu0 %v1213_v17  ;;  %v9464_v16 = vld [vmem:[%s12237_s1 + $0x6f0] sm:$0xff]   ;;  %v1225_v17 = vrot.slane %v27_v15, %v9935_v41  ;;  %v1218_v18 = vcombine.high %v27_v15, %v27_v15 }
  0xa5   :  { %4992 = vmatmul.mubr.bf16.vlgmr.msra.gmra.mrb[16].mxu1 %v1214_v20  ;;  %8758 = vmatprep.subr.bf16.mxu0 %v9410_v21  ;;  %v9467_v20 = vld [vmem:[%s12237_s1 + $0x678] sm:$0xff]  }
  0xa6   :  { %8779 = vmatpush3.bf16.msra.mxu1 %v9409_v19  ;;  %5071 = vmatprep.mubr.bf16.mxu1 %v1217_v23  ;;  %v9465_v19 = vld [vmem:[%s12237_s1 + $0x630] sm:$0xff]   ;;  %v1233_v21 = vcombine.high %v1225_v17, %v1225_v17 }
  0xa7   :  { %8780 = vmatprep.subr.bf16.mxu1 %v9411_v22  ;;  %v10539_v22 = vrot.slane %v1218_v18, %v9935_v41  ;;  %v9466_v23 = vld [vmem:[%s12237_s1 + $0x6b0] sm:$0xff]   ;;  %v9504_v18 = vld [vmem:[%s12237_s1 + $0x840] sm:$0xff]  }
  0xa8   :  { %8759 = vmatpush3.bf16.msra.mxu0 %v9412_v24  ;;  %v9468_v24 = vld [vmem:[%s12237_s1 + $0x6f8] sm:$0xff]  }
  0xa9   :  { %8760 = vmatprep.subr.bf16.mxu0 %v9414_v26  ;;  %v1234_v26 = vcombine.high %v10539_v22, %v10539_v22 }
  0xaa   :  { %8781 = vmatpush3.bf16.msra.mxu1 %v9413_v25  ;;  %v1255_v25 = vrot.slane %v1233_v21, %v9935_v41  ;;  %v9507_v21 = vld [vmem:[%s12237_s1 + $0x880] sm:$0xff]  }
  0xab   :  { %8782 = vmatprep.subr.bf16.mxu1 %v9415_v27  ;;  %v9469_v27 = vld [vmem:[%s12237_s1 + $0x638] sm:$0xff]  }
  0xac   :  { %8761 = vmatpush3.bf16.msra.mxu0 %v9416_v28  ;;  %v1265_v28 = vcombine.high %v1255_v25, %v1255_v25 }
  0xad   :  { %8762 = vmatprep.subr.bf16.mxu0 %v9418_v30  ;;  %v9471_v30 = vld [vmem:[%s12237_s1 + $0x740] sm:$0xff]  }
  0xae   :  { %8783 = vmatpush3.bf16.msra.mxu1 %v9417_v29  ;;  %v1241_v29 = vrot.slane %v1225_v17, %v9935_v41  ;;  %v1248_v17 = vrot.slane %v10539_v22, %v9935_v41 }
  0xaf   :  { %8784 = vmatprep.subr.bf16.mxu1 %v9419_v31  ;;  %v9470_v31 = vld [vmem:[%s12237_s1 + $0x6b8] sm:$0xff]  }
  0xb0   :  { %8763 = vmatpush3.bf16.msra.mxu0 %v9420_v32  ;;  %v1262_v32 = vrot.slane %v1234_v26, %v9935_v41  ;;  %v1264_v22 = vcombine.high %v1248_v17, %v1248_v17  ;;  %v9511_v26 = vld [vmem:[%s12237_s1 + $0x888] sm:$0xff]  }
  0xb1   :  { %8764 = vmatprep.subr.bf16.mxu0 %v9422_v35  ;;  %v9473_v35 = vld [vmem:[%s12237_s1 + $0x700] sm:$0xff]  }
  0xb2   :  { %8785 = vmatpush3.bf16.msra.mxu1 %v9421_v34  ;;  %v9472_v34 = vld [vmem:[%s12237_s1 + $0x7c0] sm:$0xff]  }
  0xb3   :  { %8786 = vmatprep.subr.bf16.mxu1 %v9423_v36  ;;  %v1263_v36 = vcombine.high %v1241_v29, %v1241_v29 }
  0xb4   :  { %8765 = vmatpush3.bf16.msra.mxu0 %v9424_v37  ;;  %v9475_v37 = vld [vmem:[%s12237_s1 + $0x748] sm:$0xff]  }
  0xb5   :  { %8766 = vmatprep.subr.bf16.mxu0 %v9426_v39  ;;  %v1266_v39 = vcombine.high %v1262_v32, %v1262_v32 }
  0xb6   :  { %8787 = vmatpush3.bf16.msra.mxu1 %v9425_v38  ;;  %v9474_v38 = vld [vmem:[%s12237_s1 + $0x780] sm:$0xff]  }
  0xb7   :  { %8788 = vmatprep.subr.bf16.mxu1 %v9427_v40  ;;  %v9476_v40 = vld [vmem:[%s12237_s1 + $0x7c8] sm:$0xff]  }
  0xb8   :  { %8767 = vmatpush3.bf16.msra.mxu0 %v9428_v42  ;;  %v9477_v42 = vld [vmem:[%s12237_s1 + $0x708] sm:$0xff]  }
  0xb9   :  { %8768 = vmatprep.subr.bf16.mxu0 %v9430_v44  ;;  %v9478_v44 = vld [vmem:[%s12237_s1 + $0x788] sm:$0xff]  }
  0xba   :  { %8789 = vmatpush3.bf16.msra.mxu1 %v9429_v43  ;;  %v9479_v43 = vld [vmem:[%s12237_s1 + $0x750] sm:$0xff]  }
  0xbb   :  { %8790 = vmatprep.subr.bf16.mxu1 %v9431_v45  ;;  %v9480_v45 = vld [vmem:[%s12237_s1 + $0x7d0] sm:$0xff]  }
  0xbc   :  { %8769 = vmatpush3.bf16.msra.mxu0 %v9432_v46  ;;  %v9481_v46 = vld [vmem:[%s12237_s1 + $0x710] sm:$0xff]  }
  0xbd   :  { %8770 = vmatprep.subr.bf16.mxu0 %v9434_v48  ;;  %v9482_v48 = vld [vmem:[%s12237_s1 + $0x790] sm:$0xff]  }
  0xbe   :  { %8791 = vmatpush3.bf16.msra.mxu1 %v9433_v47  ;;  %v9483_v47 = vld [vmem:[%s12237_s1 + $0x758] sm:$0xff]  }
  0xbf   :  { %8792 = vmatprep.subr.bf16.mxu1 %v9435_v49  ;;  %v9484_v49 = vld [vmem:[%s12237_s1 + $0x7d8] sm:$0xff]  }
  0xc0   :  { %8771 = vmatpush3.bf16.msra.mxu0 %v9436_v50  ;;  %v9485_v50 = vld [vmem:[%s12237_s1 + $0x718] sm:$0xff]  }
  0xc1   :  { %8800 = vmatprep.subr.bf16.mxu0 %v9439_v53  ;;  %v9488_v53 = vld [vmem:[%s12237_s1 + $0x7e0] sm:$0xff]  }
  0xc2   :  { %8793 = vmatpush3.bf16.msra.mxu1 %v9437_v51  ;;  %v9486_v51 = vld [vmem:[%s12237_s1 + $0x798] sm:$0xff]  }
  0xc3   :  { %5032 = vmatmul.mubr.bf16.vlgmr.msra.gmra.mrb[20].mxu0 %v1199_v52  ;;  %8822 = vmatprep.subr.bf16.mxu1 %v9440_v54  ;;  %v9487_v52 = vld [vmem:[%s12237_s1 + $0x760] sm:$0xff]  }
  0xc4   :  { %8801 = vmatpush3.bf16.msra.mxu0 %v9441_v55  ;;  %5111 = vmatprep.mubr.bf16.mxu0 %v1255_v25  ;;  %v9489_v54 = vld [vmem:[%s12237_s1 + $0x720] sm:$0xff]   ;;  %v9510_v25 = vld [vmem:[%s12237_s1 + $0x808] sm:$0xff]  }
  0xc5   :  { %5072 = vmatmul.mubr.bf16.vlgmr.msra.gmra.mrb[20].mxu1 %v1215_v57  ;;  %8802 = vmatprep.subr.bf16.mxu0 %v9443_v58  ;;  %v9490_v55 = vld [vmem:[%s12237_s1 + $0x7a0] sm:$0xff]   ;;  %v9492_v57 = vld [vmem:[%s12237_s1 + $0x7e8] sm:$0xff]  }
  0xc6   :  { %8823 = vmatpush3.bf16.msra.mxu1 %v9442_v56  ;;  %5151 = vmatprep.mubr.bf16.mxu1 %v1265_v28  ;;  %v9491_v56 = vld [vmem:[%s12237_s1 + $0x768] sm:$0xff]   ;;  %v9513_v28 = vld [vmem:[%s12237_s1 + $0x8d0] sm:$0xff]  }
  0xc7   :  { %8824 = vmatprep.subr.bf16.mxu1 %v9444_v59  ;;  %v9493_v58 = vld [vmem:[%s12237_s1 + $0x728] sm:$0xff]  }
  0xc8   :  { %8803 = vmatpush3.bf16.msra.mxu0 %v9445_v60  ;;  %v9494_v59 = vld [vmem:[%s12237_s1 + $0x7a8] sm:$0xff]   ;;  %v7831_v60 = vld [vmem:[%s12238_s2] ss:$0 sm:$0xff] }
  0xc9   :  { %8804 = vmatprep.subr.bf16.mxu0 %v9447_v62 }
  0xca   :  { %8825 = vmatpush3.bf16.msra.mxu1 %v9446_v61  ;;  %v9495_v61 = vld [vmem:[%s12237_s1 + $0x770] sm:$0xff]  }
  0xcb   :  { %8826 = vmatprep.subr.bf16.mxu1 %v9448_v63  ;;  %v9496_v63 = vld [vmem:[%s12237_s1 + $0x7f0] sm:$0xff]  }
  0xcc   :  { %8805 = vmatpush3.bf16.msra.mxu0 %v9449_v0 }
  0xcd   :  { %8806 = vmatprep.subr.bf16.mxu0 %v9451_v2 }
  0xce   :  { %8827 = vmatpush3.bf16.msra.mxu1 %v9450_v1  ;;  %v9497_v1 = vld [vmem:[%s12237_s1 + $0x730] sm:$0xff]  }
  0xcf   :  { %8828 = vmatprep.subr.bf16.mxu1 %v9452_v3 }
  0xd0   :  { %8807 = vmatpush3.bf16.msra.mxu0 %v9453_v4 }
  0xd1   :  { %8808 = vmatprep.subr.bf16.mxu0 %v9455_v6  ;;  %v9499_v6 = vld [vmem:[%s12237_s1 + $0x778] sm:$0xff]  }
  0xd2   :  { %8829 = vmatpush3.bf16.msra.mxu1 %v9454_v5  ;;  %v9498_v5 = vld [vmem:[%s12237_s1 + $0x7b0] sm:$0xff]  }
  0xd3   :  { %8830 = vmatprep.subr.bf16.mxu1 %v9456_v7 }
  0xd4   :  { %8809 = vmatpush3.bf16.msra.mxu0 %v9457_v8 }
  0xd5   :  { %8810 = vmatprep.subr.bf16.mxu0 %v9459_v10 }
  0xd6   :  { %8831 = vmatpush3.bf16.msra.mxu1 %v9458_v9 }
  0xd7   :  { %8832 = vmatprep.subr.bf16.mxu1 %v9460_v11 }
  0xd8   :  { %8811 = vmatpush3.bf16.msra.mxu0 %v9461_v12  ;;  %v9500_v12 = vld [vmem:[%s12237_s1 + $0x7f8] sm:$0xff]  }
  0xd9   :  { %8812 = vmatprep.subr.bf16.mxu0 %v9463_v14  ;;  %v9501_v14 = vld [vmem:[%s12237_s1 + $0x738] sm:$0xff]  }
  0xda   :  { %8833 = vmatpush3.bf16.msra.mxu1 %v9462_v13 }
  0xdb   :  { %8834 = vmatprep.subr.bf16.mxu1 %v9464_v16  ;;  %v9502_v16 = vld [vmem:[%s12237_s1 + $0x7b8] sm:$0xff]  }
  0xdc   :  { %8813 = vmatpush3.bf16.msra.mxu0 %v9465_v19  ;;  %v9505_v19 = vld [vmem:[%s12237_s1 + $0x8c0] sm:$0xff]  }
  0xdd   :  { %8814 = vmatprep.subr.bf16.mxu0 %v9467_v20  ;;  %v9506_v20 = vld [vmem:[%s12237_s1 + $0x800] sm:$0xff]  }
  0xde   :  { %8835 = vmatpush3.bf16.msra.mxu1 %v9466_v23  ;;  %v9508_v23 = vld [vmem:[%s12237_s1 + $0x848] sm:$0xff]  }
  0xdf   :  { %8836 = vmatprep.subr.bf16.mxu1 %v9468_v24  ;;  %v9509_v24 = vld [vmem:[%s12237_s1 + $0x8c8] sm:$0xff]  }
  0xe0   :  { %8815 = vmatpush3.bf16.msra.mxu0 %v9469_v27  ;;  %v9512_v27 = vld [vmem:[%s12237_s1 + $0x850] sm:$0xff]  }
  0xe1   :  { %8844 = vmatprep.subr.bf16.mxu0 %v9471_v30  ;;  %v9515_v30 = vld [vmem:[%s12237_s1 + $0x890] sm:$0xff]  }
  0xe2   :  { %8837 = vmatpush3.bf16.msra.mxu1 %v9470_v31  ;;  %v9516_v31 = vld [vmem:[%s12237_s1 + $0x858] sm:$0xff]  }
  0xe3   :  { %5112 = vmatmul.mubr.bf16.vlgmr.msra.gmra.mrb[24].mxu0 %v1241_v29  ;;  %8866 = vmatprep.subr.bf16.mxu1 %v9472_v34  ;;  %v9514_v29 = vld [vmem:[%s12237_s1 + $0x810] sm:$0xff]   ;;  %v9518_v34 = vld [vmem:[%s12237_s1 + $0x818] sm:$0xff]  }
  0xe4   :  { %8845 = vmatpush3.bf16.msra.mxu0 %v9473_v35  ;;  %5191 = vmatprep.mubr.bf16.mxu0 %v1262_v32  ;;  %v9517_v32 = vld [vmem:[%s12237_s1 + $0x8d8] sm:$0xff]  }
  0xe5   :  { %5152 = vmatmul.mubr.bf16.vlgmr.msra.gmra.mrb[24].mxu1 %v1263_v36  ;;  %8846 = vmatprep.subr.bf16.mxu0 %v9475_v37  ;;  %v9519_v35 = vld [vmem:[%s12237_s1 + $0x898] sm:$0xff]   ;;  %v9520_v36 = vld [vmem:[%s12237_s1 + $0x860] sm:$0xff]  }
  0xe6   :  { %8867 = vmatpush3.bf16.msra.mxu1 %v9474_v38  ;;  %5231 = vmatprep.mubr.bf16.mxu1 %v1266_v39  ;;  %v9521_v37 = vld [vmem:[%s12237_s1 + $0x8e0] sm:$0xff]  }
  0xe7   :  { %8868 = vmatprep.subr.bf16.mxu1 %v9476_v40  ;;  %v9522_v38 = vld [vmem:[%s12237_s1 + $0x820] sm:$0xff]   ;;  %v9524_v40 = vld [vmem:[%s12237_s1 + $0x868] sm:$0xff]  }
  0xe8   :  { %8847 = vmatpush3.bf16.msra.mxu0 %v9477_v42  ;;  %v9523_v39 = vld [vmem:[%s12237_s1 + $0x8a0] sm:$0xff]   ;;  %v9525_v42 = vld [vmem:[%s12237_s1 + $0x8e8] sm:$0xff]  }
  0xe9   :  { %8848 = vmatprep.subr.bf16.mxu0 %v9479_v43  ;;  %v9526_v43 = vld [vmem:[%s12237_s1 + $0x828] sm:$0xff]  }
  0xea   :  { %8869 = vmatpush3.bf16.msra.mxu1 %v9478_v44  ;;  %v9527_v44 = vld [vmem:[%s12237_s1 + $0x8a8] sm:$0xff]  }
  0xeb   :  { %8870 = vmatprep.subr.bf16.mxu1 %v9480_v45  ;;  %v9528_v45 = vld [vmem:[%s12237_s1 + $0x870] sm:$0xff]  }
  0xec   :  { %8849 = vmatpush3.bf16.msra.mxu0 %v9481_v46  ;;  %v9529_v46 = vld [vmem:[%s12237_s1 + $0x8f0] sm:$0xff]  }
  0xed   :  { %8850 = vmatprep.subr.bf16.mxu0 %v9483_v47 }
  0xee   :  { %8871 = vmatpush3.bf16.msra.mxu1 %v9482_v48  ;;  %v9530_v48 = vld [vmem:[%s12237_s1 + $0x830] sm:$0xff]  }
  0xef   :  { %8872 = vmatprep.subr.bf16.mxu1 %v9484_v49 }
  0xf0   :  { %8851 = vmatpush3.bf16.msra.mxu0 %v9485_v50  ;;  %v28_v50 = vld [vmem:[%s12236_s0 + $0x20] sm:$0xff] }
  0xf1   :  { %8852 = vmatprep.subr.bf16.mxu0 %v9487_v52 }
  0xf2   :  { %8873 = vmatpush3.bf16.msra.mxu1 %v9486_v51 }
  0xf3   :  { %8874 = vmatprep.subr.bf16.mxu1 %v9488_v53 }
  0xf4   :  { %8853 = vmatpush3.bf16.msra.mxu0 %v9489_v54  ;;  %v9531_v54 = vld [vmem:[%s12237_s1 + $0x8b0] sm:$0xff]  }
  0xf5   :  { %8854 = vmatprep.subr.bf16.mxu0 %v9491_v56  ;;  %v1274_v56 = vrot.slane %v28_v50, %v9935_v41 }
  0xf6   :  { %8875 = vmatpush3.bf16.msra.mxu1 %v9490_v55  ;;  %v8552_v62 = vpop.f32.mrb[0].mxu0  ;;  %v9532_v55 = vld [vmem:[%s12237_s1 + $0x878] sm:$0xff]  }
  0xf7   :  { %v8553_v0 = vpop.f32.mrb[1].mxu0  ;;  %8876 = vmatprep.subr.bf16.mxu1 %v9492_v57  ;;  %v8574_v2 = vpop.f32.mrb[0].mxu1  ;;  %v1267_v57 = vcombine.high %v28_v50, %v28_v50 }
  0xf8   :  { %v8554_v3 = vadd.f32 %v8553_v0, %v8552_v62  ;;  %v8555_v4 = vpop.f32.mrb[2].mxu0  ;;  %8855 = vmatpush3.bf16.msra.mxu0 %v9493_v58  ;;  %v8575_v7 = vpop.f32.mrb[1].mxu1  ;;  %v1282_v0 = vcombine.high %v1274_v56, %v1274_v56 }
  0xf9   :  { %v8556_v8 = vpop.f32.mrb[3].mxu0  ;;  %8856 = vmatprep.subr.bf16.mxu0 %v9495_v61  ;;  %v8576_v10 = vadd.f32 %v8575_v7, %v8574_v2  ;;  %v8577_v11 = vpop.f32.mrb[2].mxu1  ;;  %v9534_v2 = vld [vmem:[%s12237_s1 + $0x838] sm:$0xff]   ;;  %v1290_v7 = vrot.slane %v1274_v56, %v9935_v41 }
  0xfa   :  { %v4634_v9 = vadd.f32 %v8554_v3, %v7831_v60  ;;  %8877 = vmatpush3.bf16.msra.mxu1 %v9494_v59  ;;  %v8578_v13 = vpop.f32.mrb[3].mxu1  ;;  %v10760_v3 = vrot.slane %v1267_v57, %v9935_v41  ;;  %v9536_v8 = vld [vmem:[%s12237_s1 + $0x940] sm:$0xff]   ;;  %v9566_v56 = vld [vmem:[%s12237_s1 + $0x938] sm:$0xff]  }
  0xfb   :  { %8878 = vmatprep.subr.bf16.mxu1 %v9496_v63  ;;  %v9533_v63 = vld [vmem:[%s12237_s1 + $0x8f8] sm:$0xff]   ;;  %v9537_v11 = vld [vmem:[%s12237_s1 + $0x9c0] sm:$0xff]  }
  0xfc   :  { %v10654_v15 = vadd.f32 %v8576_v10, %v4634_v9  ;;  %8857 = vmatpush3.bf16.msra.mxu0 %v9497_v1  ;;  %v1283_v9 = vcombine.high %v10760_v3, %v10760_v3 }
  0xfd   :  { %8858 = vmatprep.subr.bf16.mxu0 %v9499_v6  ;;  %v1304_v6 = vrot.slane %v1282_v0, %v9935_v41 }
  0xfe   :  { %8879 = vmatpush3.bf16.msra.mxu1 %v9498_v5  ;;  %v9535_v5 = vld [vmem:[%s12237_s1 + $0x8b8] sm:$0xff]   ;;  %v1311_v13 = vrot.slane %v1283_v9, %v9935_v41 }
  0xff   :  { %8880 = vmatprep.subr.bf16.mxu1 %v9500_v12  ;;  %v1314_v10 = vcombine.high %v1304_v6, %v1304_v6  ;;  %v9538_v12 = vld [vmem:[%s12237_s1 + $0x900] sm:$0xff]   ;;  %v9581_v9 = vld [vmem:[%s12237_s1 + $0xa58] sm:$0xff]  }
 0x100   :  { %8859 = vmatpush3.bf16.msra.mxu0 %v9501_v14  ;;  %v9539_v14 = vld [vmem:[%s12237_s1 + $0x980] sm:$0xff]  }
 0x101   :  { %8888 = vmatprep.subr.bf16.mxu0 %v9504_v18  ;;  %v1315_v18 = vcombine.high %v1311_v13, %v1311_v13 }
 0x102   :  { %8881 = vmatpush3.bf16.msra.mxu1 %v9502_v16  ;;  %v9540_v16 = vld [vmem:[%s12237_s1 + $0x948] sm:$0xff]  }
 0x103   :  { %5192 = vmatmul.mubr.bf16.vlgmr.msra.gmra.mrb[28].mxu0 %v1248_v17  ;;  %8910 = vmatprep.subr.bf16.mxu1 %v9505_v19  ;;  %v9541_v17 = vld [vmem:[%s12237_s1 + $0x9c8] sm:$0xff]  }
 0x104   :  { %8889 = vmatpush3.bf16.msra.mxu0 %v9506_v20  ;;  %5271 = vmatprep.mubr.bf16.mxu0 %v1304_v6  ;;  %v9542_v19 = vld [vmem:[%s12237_s1 + $0x908] sm:$0xff]   ;;  %v9578_v6 = vld [vmem:[%s12237_s1 + $0xad0] sm:$0xff]  }
 0x105   :  { %5232 = vmatmul.mubr.bf16.vlgmr.msra.gmra.mrb[28].mxu1 %v1264_v22  ;;  %8890 = vmatprep.subr.bf16.mxu0 %v9508_v23  ;;  %v9543_v20 = vld [vmem:[%s12237_s1 + $0x988] sm:$0xff]   ;;  %v9545_v22 = vld [vmem:[%s12237_s1 + $0x9d0] sm:$0xff]  }
 0x106   :  { %8911 = vmatpush3.bf16.msra.mxu1 %v9507_v21  ;;  %5311 = vmatprep.mubr.bf16.mxu1 %v1314_v10  ;;  %v9544_v21 = vld [vmem:[%s12237_s1 + $0x950] sm:$0xff]   ;;  %v9582_v10 = vld [vmem:[%s12237_s1 + $0xad8] sm:$0xff]  }
 0x107   :  { %8912 = vmatprep.subr.bf16.mxu1 %v9509_v24  ;;  %v9546_v23 = vld [vmem:[%s12237_s1 + $0x910] sm:$0xff]  }
 0x108   :  { %8891 = vmatpush3.bf16.msra.mxu0 %v9510_v25  ;;  %v9547_v24 = vld [vmem:[%s12237_s1 + $0x990] sm:$0xff]   ;;  %v9548_v25 = vld [vmem:[%s12237_s1 + $0x958] sm:$0xff]  }
 0x109   :  { %8892 = vmatprep.subr.bf16.mxu0 %v9512_v27  ;;  %v9550_v27 = vld [vmem:[%s12237_s1 + $0x918] sm:$0xff]  }
 0x10a   :  { %8913 = vmatpush3.bf16.msra.mxu1 %v9511_v26  ;;  %v9549_v26 = vld [vmem:[%s12237_s1 + $0x9d8] sm:$0xff]  }
 0x10b   :  { %8914 = vmatprep.subr.bf16.mxu1 %v9513_v28  ;;  %v9551_v28 = vld [vmem:[%s12237_s1 + $0x998] sm:$0xff]  }
 0x10c   :  { %8893 = vmatpush3.bf16.msra.mxu0 %v9514_v29  ;;  %v9552_v29 = vld [vmem:[%s12237_s1 + $0x960] sm:$0xff]  }
 0x10d   :  { %8894 = vmatprep.subr.bf16.mxu0 %v9516_v31  ;;  %v9554_v31 = vld [vmem:[%s12237_s1 + $0x920] sm:$0xff]  }
 0x10e   :  { %8915 = vmatpush3.bf16.msra.mxu1 %v9515_v30  ;;  %v9553_v30 = vld [vmem:[%s12237_s1 + $0x9e0] sm:$0xff]  }
 0x10f   :  { %8916 = vmatprep.subr.bf16.mxu1 %v9517_v32  ;;  %v9555_v32 = vld [vmem:[%s12237_s1 + $0x9a0] sm:$0xff]  }
 0x110   :  { %8895 = vmatpush3.bf16.msra.mxu0 %v9518_v34  ;;  %v9556_v34 = vld [vmem:[%s12237_s1 + $0x968] sm:$0xff]  }
 0x111   :  { %8896 = vmatprep.subr.bf16.mxu0 %v9520_v36  ;;  %v9558_v36 = vld [vmem:[%s12237_s1 + $0x928] sm:$0xff]  }
 0x112   :  { %8917 = vmatpush3.bf16.msra.mxu1 %v9519_v35  ;;  %v9557_v35 = vld [vmem:[%s12237_s1 + $0x9e8] sm:$0xff]  }
 0x113   :  { %8918 = vmatprep.subr.bf16.mxu1 %v9521_v37  ;;  %v9559_v37 = vld [vmem:[%s12237_s1 + $0x9a8] sm:$0xff]  }
 0x114   :  { %8897 = vmatpush3.bf16.msra.mxu0 %v9522_v38  ;;  %v9560_v38 = vld [vmem:[%s12237_s1 + $0x970] sm:$0xff]  }
 0x115   :  { %8898 = vmatprep.subr.bf16.mxu0 %v9524_v40  ;;  %v9561_v40 = vld [vmem:[%s12237_s1 + $0x9f0] sm:$0xff]  }
 0x116   :  { %8919 = vmatpush3.bf16.msra.mxu1 %v9523_v39  ;;  %v8596_v47 = vpop.f32.mrb[4].mxu0 }
 0x117   :  { %v8597_v49 = vpop.f32.mrb[5].mxu0  ;;  %8920 = vmatprep.subr.bf16.mxu1 %v9525_v42  ;;  %v8618_v51 = vpop.f32.mrb[4].mxu1 }
 0x118   :  { %v8598_v52 = vadd.f32 %v8597_v49, %v8596_v47  ;;  %v8599_v53 = vpop.f32.mrb[6].mxu0  ;;  %8899 = vmatpush3.bf16.msra.mxu0 %v9526_v43  ;;  %v8619_v58 = vpop.f32.mrb[5].mxu1  ;;  %v9562_v43 = vld [vmem:[%s12237_s1 + $0x930] sm:$0xff]  }
 0x119   :  { %v8600_v59 = vpop.f32.mrb[7].mxu0  ;;  %8900 = vmatprep.subr.bf16.mxu0 %v9528_v45  ;;  %v8620_v61 = vadd.f32 %v8619_v58, %v8618_v51  ;;  %v8621_v62 = vpop.f32.mrb[6].mxu1  ;;  %v9563_v47 = vld [vmem:[%s12237_s1 + $0x9b0] sm:$0xff]   ;;  %v9567_v58 = vld [vmem:[%s12237_s1 + $0x9b8] sm:$0xff]  }
 0x11a   :  { %v4714_v60 = vadd.f32 %v8598_v52, %v10654_v15  ;;  %8921 = vmatpush3.bf16.msra.mxu1 %v9527_v44  ;;  %v8622_v1 = vpop.f32.mrb[7].mxu1  ;;  %v1312_v15 = vcombine.high %v1290_v7, %v1290_v7  ;;  %v1297_v59 = vrot.slane %v10760_v3, %v9935_v41  ;;  %v9571_v62 = vld [vmem:[%s12237_s1 + $0xa00] sm:$0xff]   ;;  %v9575_v3 = vld [vmem:[%s12237_s1 + $0xa08] sm:$0xff]  }
 0x11b   :  { %8922 = vmatprep.subr.bf16.mxu1 %v9529_v46  ;;  %v9573_v1 = vld [vmem:[%s12237_s1 + $0xa48] sm:$0xff]  }
 0x11c   :  { %v10762_v4 = vadd.f32 %v8620_v61, %v4714_v60  ;;  %8901 = vmatpush3.bf16.msra.mxu0 %v9530_v48  ;;  %v9564_v48 = vld [vmem:[%s12237_s1 + $0x978] sm:$0xff]   ;;  %v9569_v60 = vld [vmem:[%s12237_s1 + $0xa40] sm:$0xff]   ;;  %v1313_v0 = vcombine.high %v1297_v59, %v1297_v59 }
 0x11d   :  { %8902 = vmatprep.subr.bf16.mxu0 %v9532_v55  ;;  %v9570_v61 = vld [vmem:[%s12237_s1 + $0xac0] sm:$0xff]  }
 0x11e   :  { %8923 = vmatpush3.bf16.msra.mxu1 %v9531_v54  ;;  %v9565_v54 = vld [vmem:[%s12237_s1 + $0x9f8] sm:$0xff]  }
 0x11f   :  { %8924 = vmatprep.subr.bf16.mxu1 %v9533_v63  ;;  %v9572_v63 = vld [vmem:[%s12237_s1 + $0xa80] sm:$0xff]  }
 0x120   :  { %8903 = vmatpush3.bf16.msra.mxu0 %v9534_v2  ;;  %v9574_v2 = vld [vmem:[%s12237_s1 + $0xac8] sm:$0xff]  }
 0x121   :  { %8932 = vmatprep.subr.bf16.mxu0 %v9536_v8  ;;  %v9580_v8 = vld [vmem:[%s12237_s1 + $0xa90] sm:$0xff]  }
 0x122   :  { %8925 = vmatpush3.bf16.msra.mxu1 %v9535_v5  ;;  %v9577_v5 = vld [vmem:[%s12237_s1 + $0xa50] sm:$0xff]  }
 0x123   :  { %5272 = vmatmul.mubr.bf16.vlgmr.msra.gmra.mrb[32].mxu0 %v1290_v7  ;;  %8954 = vmatprep.subr.bf16.mxu1 %v9537_v11  ;;  %v9579_v7 = vld [vmem:[%s12237_s1 + $0xa10] sm:$0xff]   ;;  %v9583_v11 = vld [vmem:[%s12237_s1 + $0xa18] sm:$0xff]  }
 0x124   :  { %8933 = vmatpush3.bf16.msra.mxu0 %v9538_v12  ;;  %5351 = vmatprep.mubr.bf16.mxu0 %v1311_v13  ;;  %v9584_v12 = vld [vmem:[%s12237_s1 + $0xa98] sm:$0xff]   ;;  %v9585_v13 = vld [vmem:[%s12237_s1 + $0xa60] sm:$0xff]  }
 0x125   :  { %5312 = vmatmul.mubr.bf16.vlgmr.msra.gmra.mrb[32].mxu1 %v1312_v15  ;;  %8934 = vmatprep.subr.bf16.mxu0 %v9540_v16  ;;  %v9587_v15 = vld [vmem:[%s12237_s1 + $0xa20] sm:$0xff]  }
 0x126   :  { %8955 = vmatpush3.bf16.msra.mxu1 %v9539_v14  ;;  %5391 = vmatprep.mubr.bf16.mxu1 %v1315_v18  ;;  %v9586_v14 = vld [vmem:[%s12237_s1 + $0xae0] sm:$0xff]   ;;  %v9590_v18 = vld [vmem:[%s12237_s1 + $0xae8] sm:$0xff]  }
 0x127   :  { %8956 = vmatprep.subr.bf16.mxu1 %v9541_v17  ;;  %v9588_v16 = vld [vmem:[%s12237_s1 + $0xaa0] sm:$0xff]   ;;  %v9589_v17 = vld [vmem:[%s12237_s1 + $0xa68] sm:$0xff]  }
 0x128   :  { %8935 = vmatpush3.bf16.msra.mxu0 %v9542_v19  ;;  %v9591_v19 = vld [vmem:[%s12237_s1 + $0xa28] sm:$0xff]  }
 0x129   :  { %8936 = vmatprep.subr.bf16.mxu0 %v9544_v21  ;;  %v9593_v21 = vld [vmem:[%s12237_s1 + $0xa70] sm:$0xff]  }
 0x12a   :  { %8957 = vmatpush3.bf16.msra.mxu1 %v9543_v20  ;;  %v9592_v20 = vld [vmem:[%s12237_s1 + $0xaa8] sm:$0xff]  }
 0x12b   :  { %8958 = vmatprep.subr.bf16.mxu1 %v9545_v22 }
 0x12c   :  { %8937 = vmatpush3.bf16.msra.mxu0 %v9546_v23  ;;  %v9594_v23 = vld [vmem:[%s12237_s1 + $0xaf0] sm:$0xff]  }
 0x12d   :  { %8938 = vmatprep.subr.bf16.mxu0 %v9548_v25  ;;  %v9595_v25 = vld [vmem:[%s12237_s1 + $0xa30] sm:$0xff]  }
 0x12e   :  { %8959 = vmatpush3.bf16.msra.mxu1 %v9547_v24 }
 0x12f   :  { %8960 = vmatprep.subr.bf16.mxu1 %v9549_v26 }
 0x130   :  { %8939 = vmatpush3.bf16.msra.mxu0 %v9550_v27 }
 0x131   :  { %8940 = vmatprep.subr.bf16.mxu0 %v9552_v29  ;;  %v9596_v29 = vld [vmem:[%s12237_s1 + $0xab0] sm:$0xff]  }
 0x132   :  { %8961 = vmatpush3.bf16.msra.mxu1 %v9551_v28 }
 0x133   :  { %8962 = vmatprep.subr.bf16.mxu1 %v9553_v30  ;;  %v9597_v30 = vld [vmem:[%s12237_s1 + $0xa78] sm:$0xff]  }
 0x134   :  { %8941 = vmatpush3.bf16.msra.mxu0 %v9554_v31  ;;  %v29_v31 = vld [vmem:[%s12236_s0 + $0x28] sm:$0xff] }
 0x135   :  { %8942 = vmatprep.subr.bf16.mxu0 %v9556_v34 }
 0x136   :  { %8963 = vmatpush3.bf16.msra.mxu1 %v9555_v32  ;;  %v8640_v39 = vpop.f32.mrb[8].mxu0 }
 0x137   :  { %v8641_v42 = vpop.f32.mrb[9].mxu0  ;;  %8964 = vmatprep.subr.bf16.mxu1 %v9557_v35  ;;  %v1323_v35 = vrot.slane %v29_v31, %v9935_v41 }
 0x138   :  { %v8662_v44 = vpop.f32.mrb[8].mxu1  ;;  %v8642_v45 = vadd.f32 %v8641_v42, %v8640_v39  ;;  %v8643_v46 = vpop.f32.mrb[10].mxu0  ;;  %8943 = vmatpush3.bf16.msra.mxu0 %v9558_v36  ;;  %v1316_v36 = vcombine.high %v29_v31, %v29_v31 }
 0x139   :  { %v8663_v49 = vpop.f32.mrb[9].mxu1  ;;  %v8644_v50 = vpop.f32.mrb[11].mxu0  ;;  %8944 = vmatprep.subr.bf16.mxu0 %v9560_v38 }
 0x13a   :  { %v4794_v51 = vadd.f32 %v8642_v45, %v10762_v4  ;;  %v8664_v52 = vadd.f32 %v8663_v49, %v8662_v44  ;;  %v8665_v53 = vpop.f32.mrb[10].mxu1  ;;  %8965 = vmatpush3.bf16.msra.mxu1 %v9559_v37  ;;  %v9576_v4 = vld [vmem:[%s12237_s1 + $0xa88] sm:$0xff]   ;;  %v1331_v44 = vcombine.high %v1323_v35, %v1323_v35  ;;  %v10972_v45 = vrot.slane %v1316_v36, %v9935_v41  ;;  %v9601_v50 = vld [vmem:[%s12237_s1 + $0xb40] sm:$0xff]  }
 0x13b   :  { %v8666_v55 = vpop.f32.mrb[11].mxu1  ;;  %8966 = vmatprep.subr.bf16.mxu1 %v9561_v40  ;;  %v9598_v40 = vld [vmem:[%s12237_s1 + $0xaf8] sm:$0xff]   ;;  %v1339_v49 = vrot.slane %v1323_v35, %v9935_v41 }
 0x13c   :  { %v10866_v57 = vadd.f32 %v8664_v52, %v4794_v51  ;;  %8945 = vmatpush3.bf16.msra.mxu0 %v9562_v43  ;;  %v9599_v43 = vld [vmem:[%s12237_s1 + $0xa38] sm:$0xff]   ;;  %v1332_v51 = vcombine.high %v10972_v45, %v10972_v45  ;;  %v9602_v52 = vld [vmem:[%s12237_s1 + $0xbc0] sm:$0xff]   ;;  %v1346_v36 = vrot.slane %v10972_v45, %v9935_v41  ;;  %v9640_v45 = vld [vmem:[%s12237_s1 + $0xc08] sm:$0xff]  }
 0x13d   :  { %8946 = vmatprep.subr.bf16.mxu0 %v9564_v48  ;;  %v1353_v48 = vrot.slane %v1331_v44, %v9935_v41  ;;  %v9632_v35 = vld [vmem:[%s12237_s1 + $0xbb8] sm:$0xff]   ;;  %v9639_v44 = vld [vmem:[%s12237_s1 + $0xcc8] sm:$0xff]  }
 0x13e   :  { %8967 = vmatpush3.bf16.msra.mxu1 %v9563_v47  ;;  %v9600_v47 = vld [vmem:[%s12237_s1 + $0xab8] sm:$0xff]   ;;  %v1360_v55 = vrot.slane %v1332_v51, %v9935_v41 }
 0x13f   :  { %8968 = vmatprep.subr.bf16.mxu1 %v9565_v54  ;;  %v1363_v53 = vcombine.high %v1353_v48, %v1353_v48  ;;  %v9603_v54 = vld [vmem:[%s12237_s1 + $0xb00] sm:$0xff]   ;;  %v9646_v51 = vld [vmem:[%s12237_s1 + $0xc58] sm:$0xff]  }
 0x140   :  { %8947 = vmatpush3.bf16.msra.mxu0 %v9566_v56  ;;  %v9604_v56 = vld [vmem:[%s12237_s1 + $0xb80] sm:$0xff]  }
 0x141   :  { %8976 = vmatprep.subr.bf16.mxu0 %v9569_v60  ;;  %v1364_v60 = vcombine.high %v1360_v55, %v1360_v55 }
 0x142   :  { %8969 = vmatpush3.bf16.msra.mxu1 %v9567_v58  ;;  %v9605_v58 = vld [vmem:[%s12237_s1 + $0xb48] sm:$0xff]  }
 0x143   :  { %5352 = vmatmul.mubr.bf16.vlgmr.msra.gmra.mrb[36].mxu0 %v1297_v59  ;;  %8998 = vmatprep.subr.bf16.mxu1 %v9570_v61  ;;  %v9606_v59 = vld [vmem:[%s12237_s1 + $0xbc8] sm:$0xff]  }
 0x144   :  { %8977 = vmatpush3.bf16.msra.mxu0 %v9571_v62  ;;  %5431 = vmatprep.mubr.bf16.mxu0 %v1353_v48  ;;  %v9607_v61 = vld [vmem:[%s12237_s1 + $0xb08] sm:$0xff]   ;;  %v9643_v48 = vld [vmem:[%s12237_s1 + $0xcd0] sm:$0xff]  }
 0x145   :  { %5392 = vmatmul.mubr.bf16.vlgmr.msra.gmra.mrb[36].mxu1 %v1313_v0  ;;  %8978 = vmatprep.subr.bf16.mxu0 %v9573_v1  ;;  %v9608_v62 = vld [vmem:[%s12237_s1 + $0xb88] sm:$0xff]   ;;  %v9610_v0 = vld [vmem:[%s12237_s1 + $0xbd0] sm:$0xff]  }
 0x146   :  { %8999 = vmatpush3.bf16.msra.mxu1 %v9572_v63  ;;  %5471 = vmatprep.mubr.bf16.mxu1 %v1363_v53  ;;  %v9609_v63 = vld [vmem:[%s12237_s1 + $0xb50] sm:$0xff]   ;;  %v9648_v53 = vld [vmem:[%s12237_s1 + $0xc18] sm:$0xff]  }
 0x147   :  { %9000 = vmatprep.subr.bf16.mxu1 %v9574_v2  ;;  %v9611_v1 = vld [vmem:[%s12237_s1 + $0xb10] sm:$0xff]  }
 0x148   :  { %8979 = vmatpush3.bf16.msra.mxu0 %v9575_v3  ;;  %v9612_v2 = vld [vmem:[%s12237_s1 + $0xb90] sm:$0xff]   ;;  %v9613_v3 = vld [vmem:[%s12237_s1 + $0xb58] sm:$0xff]  }
 0x149   :  { %8980 = vmatprep.subr.bf16.mxu0 %v9577_v5  ;;  %v9615_v5 = vld [vmem:[%s12237_s1 + $0xb18] sm:$0xff]  }
 0x14a   :  { %9001 = vmatpush3.bf16.msra.mxu1 %v9576_v4  ;;  %v9614_v4 = vld [vmem:[%s12237_s1 + $0xbd8] sm:$0xff]  }
 0x14b   :  { %9002 = vmatprep.subr.bf16.mxu1 %v9578_v6  ;;  %v9616_v6 = vld [vmem:[%s12237_s1 + $0xb98] sm:$0xff]  }
 0x14c   :  { %8981 = vmatpush3.bf16.msra.mxu0 %v9579_v7  ;;  %v9617_v7 = vld [vmem:[%s12237_s1 + $0xb60] sm:$0xff]  }
 0x14d   :  { %8982 = vmatprep.subr.bf16.mxu0 %v9581_v9  ;;  %v9619_v9 = vld [vmem:[%s12237_s1 + $0xb20] sm:$0xff]  }
 0x14e   :  { %9003 = vmatpush3.bf16.msra.mxu1 %v9580_v8  ;;  %v9618_v8 = vld [vmem:[%s12237_s1 + $0xbe0] sm:$0xff]  }
 0x14f   :  { %9004 = vmatprep.subr.bf16.mxu1 %v9582_v10  ;;  %v9620_v10 = vld [vmem:[%s12237_s1 + $0xba0] sm:$0xff]  }
 0x150   :  { %8983 = vmatpush3.bf16.msra.mxu0 %v9583_v11  ;;  %v9621_v11 = vld [vmem:[%s12237_s1 + $0xb68] sm:$0xff]  }
 0x151   :  { %8984 = vmatprep.subr.bf16.mxu0 %v9585_v13  ;;  %v9623_v13 = vld [vmem:[%s12237_s1 + $0xb28] sm:$0xff]  }
 0x152   :  { %9005 = vmatpush3.bf16.msra.mxu1 %v9584_v12  ;;  %v9622_v12 = vld [vmem:[%s12237_s1 + $0xbe8] sm:$0xff]  }
 0x153   :  { %9006 = vmatprep.subr.bf16.mxu1 %v9586_v14  ;;  %v9624_v14 = vld [vmem:[%s12237_s1 + $0xba8] sm:$0xff]  }
 0x154   :  { %8985 = vmatpush3.bf16.msra.mxu0 %v9587_v15  ;;  %v9625_v15 = vld [vmem:[%s12237_s1 + $0xb70] sm:$0xff]  }
 0x155   :  { %8986 = vmatprep.subr.bf16.mxu0 %v9589_v17  ;;  %v9626_v17 = vld [vmem:[%s12237_s1 + $0xbf0] sm:$0xff]  }
 0x156   :  { %9007 = vmatpush3.bf16.msra.mxu1 %v9588_v16  ;;  %v8684_v22 = vpop.f32.mrb[12].mxu0 }
 0x157   :  { %v8685_v24 = vpop.f32.mrb[13].mxu0  ;;  %9008 = vmatprep.subr.bf16.mxu1 %v9590_v18 }
 0x158   :  { %v8706_v26 = vpop.f32.mrb[12].mxu1  ;;  %v8686_v27 = vadd.f32 %v8685_v24, %v8684_v22  ;;  %v8687_v28 = vpop.f32.mrb[14].mxu0  ;;  %8987 = vmatpush3.bf16.msra.mxu0 %v9591_v19  ;;  %v9627_v19 = vld [vmem:[%s12237_s1 + $0xb30] sm:$0xff]   ;;  %v9629_v24 = vld [vmem:[%s12237_s1 + $0xb78] sm:$0xff]  }
 0x159   :  { %v8707_v32 = vpop.f32.mrb[13].mxu1  ;;  %v8688_v34 = vpop.f32.mrb[15].mxu0  ;;  %8988 = vmatprep.subr.bf16.mxu0 %v9593_v21 }
 0x15a   :  { %v4874_v37 = vadd.f32 %v8686_v27, %v10866_v57  ;;  %v8708_v38 = vadd.f32 %v8707_v32, %v8706_v26  ;;  %v8709_v39 = vpop.f32.mrb[14].mxu1  ;;  %9009 = vmatpush3.bf16.msra.mxu1 %v9592_v20  ;;  %v1361_v57 = vcombine.high %v1339_v49, %v1339_v49  ;;  %v9631_v32 = vld [vmem:[%s12237_s1 + $0xb38] sm:$0xff]  }
 0x15b   :  { %v8710_v42 = vpop.f32.mrb[15].mxu1  ;;  %9010 = vmatprep.subr.bf16.mxu1 %v9594_v23  ;;  %v9628_v23 = vld [vmem:[%s12237_s1 + $0xbb0] sm:$0xff]   ;;  %v9636_v39 = vld [vmem:[%s12237_s1 + $0xc00] sm:$0xff]  }
 0x15c   :  { %v10974_v46 = vadd.f32 %v8708_v38, %v4874_v37  ;;  %8989 = vmatpush3.bf16.msra.mxu0 %v9595_v25  ;;  %v9634_v37 = vld [vmem:[%s12237_s1 + $0xc40] sm:$0xff]   ;;  %v1362_v42 = vcombine.high %v1346_v36, %v1346_v36 }
 0x15d   :  { %8990 = vmatprep.subr.bf16.mxu0 %v9597_v30  ;;  %v9630_v30 = vld [vmem:[%s12237_s1 + $0xbf8] sm:$0xff]   ;;  %v9635_v38 = vld [vmem:[%s12237_s1 + $0xcc0] sm:$0xff]  }
 0x15e   :  { %9011 = vmatpush3.bf16.msra.mxu1 %v9596_v29 }
 0x15f   :  { %9012 = vmatprep.subr.bf16.mxu1 %v9598_v40  ;;  %v9637_v40 = vld [vmem:[%s12237_s1 + $0xc80] sm:$0xff]  }
 0x160   :  { %8991 = vmatpush3.bf16.msra.mxu0 %v9599_v43  ;;  %v9638_v43 = vld [vmem:[%s12237_s1 + $0xc48] sm:$0xff]  }
 0x161   :  { %9020 = vmatprep.subr.bf16.mxu0 %v9601_v50  ;;  %v9645_v50 = vld [vmem:[%s12237_s1 + $0xc90] sm:$0xff]  }
 0x162   :  { %9013 = vmatpush3.bf16.msra.mxu1 %v9600_v47  ;;  %v9642_v47 = vld [vmem:[%s12237_s1 + $0xc50] sm:$0xff]  }
 0x163   :  { %5432 = vmatmul.mubr.bf16.vlgmr.msra.gmra.mrb[40].mxu0 %v1339_v49  ;;  %9042 = vmatprep.subr.bf16.mxu1 %v9602_v52  ;;  %v9644_v49 = vld [vmem:[%s12237_s1 + $0xc10] sm:$0xff]   ;;  %v9647_v52 = vld [vmem:[%s12237_s1 + $0xcd8] sm:$0xff]  }
 0x164   :  { %9021 = vmatpush3.bf16.msra.mxu0 %v9603_v54  ;;  %5511 = vmatprep.mubr.bf16.mxu0 %v1360_v55  ;;  %v9649_v54 = vld [vmem:[%s12237_s1 + $0xc98] sm:$0xff]   ;;  %v9650_v55 = vld [vmem:[%s12237_s1 + $0xc60] sm:$0xff]  }
 0x165   :  { %5472 = vmatmul.mubr.bf16.vlgmr.msra.gmra.mrb[40].mxu1 %v1361_v57  ;;  %9022 = vmatprep.subr.bf16.mxu0 %v9605_v58  ;;  %v9652_v57 = vld [vmem:[%s12237_s1 + $0xc20] sm:$0xff]  }
 0x166   :  { %9043 = vmatpush3.bf16.msra.mxu1 %v9604_v56  ;;  %5551 = vmatprep.mubr.bf16.mxu1 %v1364_v60  ;;  %v9651_v56 = vld [vmem:[%s12237_s1 + $0xce0] sm:$0xff]   ;;  %v9655_v60 = vld [vmem:[%s12237_s1 + $0xce8] sm:$0xff]  }
 0x167   :  { %9044 = vmatprep.subr.bf16.mxu1 %v9606_v59  ;;  %v9653_v58 = vld [vmem:[%s12237_s1 + $0xca0] sm:$0xff]   ;;  %v9654_v59 = vld [vmem:[%s12237_s1 + $0xc68] sm:$0xff]  }
 0x168   :  { %9023 = vmatpush3.bf16.msra.mxu0 %v9607_v61  ;;  %v9656_v61 = vld [vmem:[%s12237_s1 + $0xc28] sm:$0xff]  }
 0x169   :  { %9024 = vmatprep.subr.bf16.mxu0 %v9609_v63  ;;  %v9658_v63 = vld [vmem:[%s12237_s1 + $0xc70] sm:$0xff]  }
 0x16a   :  { %9045 = vmatpush3.bf16.msra.mxu1 %v9608_v62  ;;  %v9657_v62 = vld [vmem:[%s12237_s1 + $0xca8] sm:$0xff]  }
 0x16b   :  { %9046 = vmatprep.subr.bf16.mxu1 %v9610_v0 }
 0x16c   :  { %9025 = vmatpush3.bf16.msra.mxu0 %v9611_v1  ;;  %v9659_v1 = vld [vmem:[%s12237_s1 + $0xcf0] sm:$0xff]  }
 0x16d   :  { %9026 = vmatprep.subr.bf16.mxu0 %v9613_v3  ;;  %v9660_v3 = vld [vmem:[%s12237_s1 + $0xc30] sm:$0xff]  }
 0x16e   :  { %9047 = vmatpush3.bf16.msra.mxu1 %v9612_v2 }
 0x16f   :  { %9048 = vmatprep.subr.bf16.mxu1 %v9614_v4 }
 0x170   :  { %9027 = vmatpush3.bf16.msra.mxu0 %v9615_v5 }
 0x171   :  { %9028 = vmatprep.subr.bf16.mxu0 %v9617_v7  ;;  %v9661_v7 = vld [vmem:[%s12237_s1 + $0xcb0] sm:$0xff]  }
 0x172   :  { %9049 = vmatpush3.bf16.msra.mxu1 %v9616_v6 }
 0x173   :  { %9050 = vmatprep.subr.bf16.mxu1 %v9618_v8 }
 0x174   :  { %9029 = vmatpush3.bf16.msra.mxu0 %v9619_v9 }
 0x175   :  { %9030 = vmatprep.subr.bf16.mxu0 %v9621_v11  ;;  %v30_v11 = vld [vmem:[%s12236_s0 + $0x30] sm:$0xff] }
 0x176   :  { %9051 = vmatpush3.bf16.msra.mxu1 %v9620_v10  ;;  %v8728_v16 = vpop.f32.mrb[16].mxu0  ;;  %v9662_v10 = vld [vmem:[%s12237_s1 + $0xc78] sm:$0xff]  }
 0x177   :  { %v8729_v18 = vpop.f32.mrb[17].mxu0  ;;  %9052 = vmatprep.subr.bf16.mxu1 %v9622_v12 }
 0x178   :  { %v8750_v20 = vpop.f32.mrb[16].mxu1  ;;  %v8730_v21 = vadd.f32 %v8729_v18, %v8728_v16  ;;  %v8731_v22 = vpop.f32.mrb[18].mxu0  ;;  %9031 = vmatpush3.bf16.msra.mxu0 %v9623_v13  ;;  %v1372_v16 = vrot.slane %v30_v11, %v9935_v41 }
 0x179   :  { %v8751_v25 = vpop.f32.mrb[17].mxu1  ;;  %v8732_v26 = vpop.f32.mrb[19].mxu0  ;;  %9032 = vmatprep.subr.bf16.mxu0 %v9625_v15  ;;  %v9663_v15 = vld [vmem:[%s12237_s1 + $0xcf8] sm:$0xff]  }
 0x17a   :  { %v4954_v27 = vadd.f32 %v8730_v21, %v10974_v46  ;;  %v8752_v28 = vadd.f32 %v8751_v25, %v8750_v20  ;;  %v8753_v29 = vpop.f32.mrb[18].mxu1  ;;  %9053 = vmatpush3.bf16.msra.mxu1 %v9624_v14  ;;  %v9641_v46 = vld [vmem:[%s12237_s1 + $0xc88] sm:$0xff]   ;;  %v9665_v21 = vld [vmem:[%s12237_s1 + $0xcb8] sm:$0xff]   ;;  %v1380_v22 = vcombine.high %v1372_v16, %v1372_v16  ;;  %v9666_v25 = vld [vmem:[%s12237_s1 + $0xd40] sm:$0xff]  }
 0x17b   :  { %v8754_v31 = vpop.f32.mrb[19].mxu1  ;;  %9054 = vmatprep.subr.bf16.mxu1 %v9626_v17  ;;  %v1365_v17 = vcombine.high %v30_v11, %v30_v11  ;;  %v9668_v29 = vld [vmem:[%s12237_s1 + $0xd00] sm:$0xff]  }
 0x17c   :  { %v11078_v34 = vadd.f32 %v8752_v28, %v4954_v27  ;;  %9033 = vmatpush3.bf16.msra.mxu0 %v9627_v19  ;;  %v9664_v19 = vld [vmem:[%s12237_s1 + $0xc38] sm:$0xff]   ;;  %v1402_v26 = vrot.slane %v1380_v22, %v9935_v41  ;;  %v9667_v27 = vld [vmem:[%s12237_s1 + $0xdc0] sm:$0xff]   ;;  %v9706_v22 = vld [vmem:[%s12237_s1 + $0xe88] sm:$0xff]  }
 0x17d   :  { %9034 = vmatprep.subr.bf16.mxu0 %v9629_v24  ;;  %v1388_v24 = vrot.slane %v1372_v16, %v9935_v41  ;;  %v9669_v31 = vld [vmem:[%s12237_s1 + $0xd80] sm:$0xff]  }
 0x17e   :  { %9055 = vmatpush3.bf16.msra.mxu1 %v9628_v23  ;;  %v11189_v23 = vrot.slane %v1365_v17, %v9935_v41  ;;  %v9701_v16 = vld [vmem:[%s12237_s1 + $0xe00] sm:$0xff]  }
 0x17f   :  { %9056 = vmatprep.subr.bf16.mxu1 %v9630_v30  ;;  %v1412_v30 = vcombine.high %v1402_v26, %v1402_v26  ;;  %v9702_v17 = vld [vmem:[%s12237_s1 + $0xe80] sm:$0xff]  }
 0x180   :  { %9035 = vmatpush3.bf16.msra.mxu0 %v9631_v32  ;;  %v1381_v28 = vcombine.high %v11189_v23, %v11189_v23 }
 0x181   :  { %9064 = vmatprep.subr.bf16.mxu0 %v9634_v37 }
 0x182   :  { %9057 = vmatpush3.bf16.msra.mxu1 %v9632_v35  ;;  %v1409_v32 = vrot.slane %v1381_v28, %v9935_v41  ;;  %v9670_v35 = vld [vmem:[%s12237_s1 + $0xd48] sm:$0xff]   ;;  %v9712_v28 = vld [vmem:[%s12237_s1 + $0xed8] sm:$0xff]  }
 0x183   :  { %5512 = vmatmul.mubr.bf16.vlgmr.msra.gmra.mrb[44].mxu0 %v1346_v36  ;;  %9086 = vmatprep.subr.bf16.mxu1 %v9635_v38  ;;  %v9671_v36 = vld [vmem:[%s12237_s1 + $0xdc8] sm:$0xff]  }
 0x184   :  { %9065 = vmatpush3.bf16.msra.mxu0 %v9636_v39  ;;  %5591 = vmatprep.mubr.bf16.mxu0 %v1402_v26  ;;  %v1413_v37 = vcombine.high %v1409_v32, %v1409_v32  ;;  %v9672_v38 = vld [vmem:[%s12237_s1 + $0xd08] sm:$0xff]   ;;  %v9710_v26 = vld [vmem:[%s12237_s1 + $0xe90] sm:$0xff]  }
 0x185   :  { %5552 = vmatmul.mubr.bf16.vlgmr.msra.gmra.mrb[44].mxu1 %v1362_v42  ;;  %9066 = vmatprep.subr.bf16.mxu0 %v9638_v43  ;;  %v9673_v39 = vld [vmem:[%s12237_s1 + $0xd88] sm:$0xff]   ;;  %v9675_v42 = vld [vmem:[%s12237_s1 + $0xdd0] sm:$0xff]  }
 0x186   :  { %9087 = vmatpush3.bf16.msra.mxu1 %v9637_v40  ;;  %5631 = vmatprep.mubr.bf16.mxu1 %v1412_v30  ;;  %v9674_v40 = vld [vmem:[%s12237_s1 + $0xd50] sm:$0xff]   ;;  %v9714_v30 = vld [vmem:[%s12237_s1 + $0xe98] sm:$0xff]  }
 0x187   :  { %9088 = vmatprep.subr.bf16.mxu1 %v9639_v44  ;;  %v9676_v43 = vld [vmem:[%s12237_s1 + $0xd10] sm:$0xff]  }
 0x188   :  { %9067 = vmatpush3.bf16.msra.mxu0 %v9640_v45  ;;  %v9677_v44 = vld [vmem:[%s12237_s1 + $0xd90] sm:$0xff]   ;;  %v9678_v45 = vld [vmem:[%s12237_s1 + $0xd58] sm:$0xff]  }
 0x189   :  { %9068 = vmatprep.subr.bf16.mxu0 %v9642_v47  ;;  %v9680_v47 = vld [vmem:[%s12237_s1 + $0xd18] sm:$0xff]  }
 0x18a   :  { %9089 = vmatpush3.bf16.msra.mxu1 %v9641_v46  ;;  %v9679_v46 = vld [vmem:[%s12237_s1 + $0xdd8] sm:$0xff]  }
 0x18b   :  { %9090 = vmatprep.subr.bf16.mxu1 %v9643_v48  ;;  %v9681_v48 = vld [vmem:[%s12237_s1 + $0xd98] sm:$0xff]  }
 0x18c   :  { %9069 = vmatpush3.bf16.msra.mxu0 %v9644_v49  ;;  %v9682_v49 = vld [vmem:[%s12237_s1 + $0xd60] sm:$0xff]  }
 0x18d   :  { %9070 = vmatprep.subr.bf16.mxu0 %v9646_v51  ;;  %v9684_v51 = vld [vmem:[%s12237_s1 + $0xd20] sm:$0xff]  }
 0x18e   :  { %9091 = vmatpush3.bf16.msra.mxu1 %v9645_v50  ;;  %v9683_v50 = vld [vmem:[%s12237_s1 + $0xde0] sm:$0xff]  }
 0x18f   :  { %9092 = vmatprep.subr.bf16.mxu1 %v9647_v52  ;;  %v9685_v52 = vld [vmem:[%s12237_s1 + $0xda0] sm:$0xff]  }
 0x190   :  { %9071 = vmatpush3.bf16.msra.mxu0 %v9648_v53  ;;  %v9686_v53 = vld [vmem:[%s12237_s1 + $0xd68] sm:$0xff]  }
 0x191   :  { %9072 = vmatprep.subr.bf16.mxu0 %v9650_v55  ;;  %v9688_v55 = vld [vmem:[%s12237_s1 + $0xd28] sm:$0xff]  }
 0x192   :  { %9093 = vmatpush3.bf16.msra.mxu1 %v9649_v54  ;;  %v9687_v54 = vld [vmem:[%s12237_s1 + $0xde8] sm:$0xff]  }
 0x193   :  { %9094 = vmatprep.subr.bf16.mxu1 %v9651_v56  ;;  %v9689_v56 = vld [vmem:[%s12237_s1 + $0xda8] sm:$0xff]  }
 0x194   :  { %9073 = vmatpush3.bf16.msra.mxu0 %v9652_v57  ;;  %v9690_v57 = vld [vmem:[%s12237_s1 + $0xd70] sm:$0xff]  }
 0x195   :  { %9074 = vmatprep.subr.bf16.mxu0 %v9654_v59  ;;  %v9691_v59 = vld [vmem:[%s12237_s1 + $0xdf0] sm:$0xff]  }
 0x196   :  { %9095 = vmatpush3.bf16.msra.mxu1 %v9653_v58  ;;  %v8772_v0 = vpop.f32.mrb[20].mxu0 }
 0x197   :  { %v8773_v2 = vpop.f32.mrb[21].mxu0  ;;  %9096 = vmatprep.subr.bf16.mxu1 %v9655_v60 }
 0x198   :  { %v8794_v4 = vpop.f32.mrb[20].mxu1  ;;  %v8774_v5 = vadd.f32 %v8773_v2, %v8772_v0  ;;  %v8775_v6 = vpop.f32.mrb[22].mxu0  ;;  %9075 = vmatpush3.bf16.msra.mxu0 %v9656_v61  ;;  %v9692_v61 = vld [vmem:[%s12237_s1 + $0xd30] sm:$0xff]   ;;  %v9694_v2 = vld [vmem:[%s12237_s1 + $0xd78] sm:$0xff]  }
 0x199   :  { %v8795_v8 = vpop.f32.mrb[21].mxu1  ;;  %v8776_v9 = vpop.f32.mrb[23].mxu0  ;;  %9076 = vmatprep.subr.bf16.mxu0 %v9658_v63 }
 0x19a   :  { %v5034_v12 = vadd.f32 %v8774_v5, %v11078_v34  ;;  %v8796_v13 = vadd.f32 %v8795_v8, %v8794_v4  ;;  %v8797_v14 = vpop.f32.mrb[22].mxu1  ;;  %9097 = vmatpush3.bf16.msra.mxu1 %v9657_v62  ;;  %v1410_v34 = vcombine.high %v1388_v24, %v1388_v24  ;;  %v9695_v8 = vld [vmem:[%s12237_s1 + $0xdf8] sm:$0xff]  }
 0x19b   :  { %v8798_v18 = vpop.f32.mrb[23].mxu1  ;;  %9098 = vmatprep.subr.bf16.mxu1 %v9659_v1  ;;  %v9693_v1 = vld [vmem:[%s12237_s1 + $0xdb0] sm:$0xff]   ;;  %v9699_v14 = vld [vmem:[%s12237_s1 + $0xe40] sm:$0xff]  }
 0x19c   :  { %v11183_v20 = vadd.f32 %v8796_v13, %v5034_v12  ;;  %9077 = vmatpush3.bf16.msra.mxu0 %v9660_v3  ;;  %v9697_v12 = vld [vmem:[%s12237_s1 + $0xdb8] sm:$0xff]   ;;  %v1395_v13 = vrot.slane %v11189_v23, %v9935_v41  ;;  %v9707_v23 = vld [vmem:[%s12237_s1 + $0xe50] sm:$0xff]  }
 0x19d   :  { %9078 = vmatprep.subr.bf16.mxu0 %v9662_v10  ;;  %v9696_v10 = vld [vmem:[%s12237_s1 + $0xd38] sm:$0xff]  }
 0x19e   :  { %9099 = vmatpush3.bf16.msra.mxu1 %v9661_v7  ;;  %v1411_v18 = vcombine.high %v1395_v13, %v1395_v13 }
 0x19f   :  { %9100 = vmatprep.subr.bf16.mxu1 %v9663_v15  ;;  %v9700_v15 = vld [vmem:[%s12237_s1 + $0xec0] sm:$0xff]  }
 0x1a0   :  { %9079 = vmatpush3.bf16.msra.mxu0 %v9664_v19  ;;  %v9703_v19 = vld [vmem:[%s12237_s1 + $0xe48] sm:$0xff]  }
 0x1a1   :  { %9108 = vmatprep.subr.bf16.mxu0 %v9666_v25  ;;  %v9709_v25 = vld [vmem:[%s12237_s1 + $0xe10] sm:$0xff]  }
 0x1a2   :  { %9101 = vmatpush3.bf16.msra.mxu1 %v9665_v21  ;;  %v9705_v21 = vld [vmem:[%s12237_s1 + $0xe08] sm:$0xff]  }
 0x1a3   :  { %5592 = vmatmul.mubr.bf16.vlgmr.msra.gmra.mrb[48].mxu0 %v1388_v24  ;;  %9130 = vmatprep.subr.bf16.mxu1 %v9667_v27  ;;  %v9708_v24 = vld [vmem:[%s12237_s1 + $0xed0] sm:$0xff]   ;;  %v9711_v27 = vld [vmem:[%s12237_s1 + $0xe58] sm:$0xff]  }
 0x1a4   :  { %9109 = vmatpush3.bf16.msra.mxu0 %v9668_v29  ;;  %5671 = vmatprep.mubr.bf16.mxu0 %v1409_v32  ;;  %v9713_v29 = vld [vmem:[%s12237_s1 + $0xe18] sm:$0xff]   ;;  %v9716_v32 = vld [vmem:[%s12237_s1 + $0xee0] sm:$0xff]  }
 0x1a5   :  { %5632 = vmatmul.mubr.bf16.vlgmr.msra.gmra.mrb[48].mxu1 %v1410_v34  ;;  %9110 = vmatprep.subr.bf16.mxu0 %v9670_v35  ;;  %v9717_v34 = vld [vmem:[%s12237_s1 + $0xe20] sm:$0xff]  }
 0x1a6   :  { %9131 = vmatpush3.bf16.msra.mxu1 %v9669_v31  ;;  %5711 = vmatprep.mubr.bf16.mxu1 %v1413_v37  ;;  %v9715_v31 = vld [vmem:[%s12237_s1 + $0xe60] sm:$0xff]   ;;  %v9720_v37 = vld [vmem:[%s12237_s1 + $0xee8] sm:$0xff]  }
 0x1a7   :  { %9132 = vmatprep.subr.bf16.mxu1 %v9671_v36  ;;  %v9718_v35 = vld [vmem:[%s12237_s1 + $0xea0] sm:$0xff]   ;;  %v9719_v36 = vld [vmem:[%s12237_s1 + $0xe68] sm:$0xff]  }
 0x1a8   :  { %9111 = vmatpush3.bf16.msra.mxu0 %v9672_v38  ;;  %v9721_v38 = vld [vmem:[%s12237_s1 + $0xe28] sm:$0xff]  }
 0x1a9   :  { %9112 = vmatprep.subr.bf16.mxu0 %v9674_v40  ;;  %v9723_v40 = vld [vmem:[%s12237_s1 + $0xe70] sm:$0xff]  }
 0x1aa   :  { %9133 = vmatpush3.bf16.msra.mxu1 %v9673_v39  ;;  %v9722_v39 = vld [vmem:[%s12237_s1 + $0xea8] sm:$0xff]  }
 0x1ab   :  { %9134 = vmatprep.subr.bf16.mxu1 %v9675_v42 }
 0x1ac   :  { %9113 = vmatpush3.bf16.msra.mxu0 %v9676_v43  ;;  %v9724_v43 = vld [vmem:[%s12237_s1 + $0xef0] sm:$0xff]  }
 0x1ad   :  { %9114 = vmatprep.subr.bf16.mxu0 %v9678_v45  ;;  %v9725_v45 = vld [vmem:[%s12237_s1 + $0xe30] sm:$0xff]  }
 0x1ae   :  { %9135 = vmatpush3.bf16.msra.mxu1 %v9677_v44 }
 0x1af   :  { %9136 = vmatprep.subr.bf16.mxu1 %v9679_v46 }
 0x1b0   :  { %9115 = vmatpush3.bf16.msra.mxu0 %v9680_v47 }
 0x1b1   :  { %9116 = vmatprep.subr.bf16.mxu0 %v9682_v49 }
 0x1b2   :  { %9137 = vmatpush3.bf16.msra.mxu1 %v9681_v48 }
 0x1b3   :  { %9138 = vmatprep.subr.bf16.mxu1 %v9683_v50 }
 0x1b4   :  { %9117 = vmatpush3.bf16.msra.mxu0 %v9684_v51  ;;  %v9726_v51 = vld [vmem:[%s12237_s1 + $0xeb0] sm:$0xff]  }
 0x1b5   :  { %9118 = vmatprep.subr.bf16.mxu0 %v9686_v53 }
 0x1b6   :  { %9139 = vmatpush3.bf16.msra.mxu1 %v9685_v52  ;;  %v8816_v58 = vpop.f32.mrb[24].mxu0  ;;  %v9727_v52 = vld [vmem:[%s12237_s1 + $0xe78] sm:$0xff]  }
 0x1b7   :  { %v8817_v60 = vpop.f32.mrb[25].mxu0  ;;  %9140 = vmatprep.subr.bf16.mxu1 %v9687_v54 }
 0x1b8   :  { %v8838_v62 = vpop.f32.mrb[24].mxu1  ;;  %v8818_v63 = vadd.f32 %v8817_v60, %v8816_v58  ;;  %v8819_v0 = vpop.f32.mrb[26].mxu0  ;;  %9119 = vmatpush3.bf16.msra.mxu0 %v9688_v55  ;;  %v9728_v58 = vld [vmem:[%s12237_s1 + $0xef8] sm:$0xff]  }
 0x1b9   :  { %v8839_v3 = vpop.f32.mrb[25].mxu1  ;;  %v8820_v4 = vpop.f32.mrb[27].mxu0  ;;  %9120 = vmatprep.subr.bf16.mxu0 %v9690_v57 }
 0x1ba   :  { %v5114_v5 = vadd.f32 %v8818_v63, %v11183_v20  ;;  %v8840_v6 = vadd.f32 %v8839_v3, %v8838_v62  ;;  %v8841_v7 = vpop.f32.mrb[26].mxu1  ;;  %9141 = vmatpush3.bf16.msra.mxu1 %v9689_v56  ;;  %v9704_v20 = vld [vmem:[%s12237_s1 + $0xec8] sm:$0xff]   ;;  %v31_v56 = vld [vmem:[%s12236_s0 + $0x38] sm:$0xff] }
 0x1bb   :  { %v8842_v9 = vpop.f32.mrb[27].mxu1  ;;  %9142 = vmatprep.subr.bf16.mxu1 %v9691_v59  ;;  %v1421_v59 = vrot.slane %v31_v56, %v9935_v41  ;;  %v1414_v60 = vcombine.high %v31_v56, %v31_v56  ;;  %v9729_v62 = vld [vmem:[%s12237_s1 + $0xe38] sm:$0xff]   ;;  %v9733_v7 = vld [vmem:[%s12237_s1 + $0xf00] sm:$0xff]  }
 0x1bc   :  { %v11290_v11 = vadd.f32 %v8840_v6, %v5114_v5  ;;  %9121 = vmatpush3.bf16.msra.mxu0 %v9692_v61  ;;  %v9730_v3 = vld [vmem:[%s12237_s1 + $0xeb8] sm:$0xff]   ;;  %v9732_v5 = vld [vmem:[%s12237_s1 + $0xfc0] sm:$0xff]  }
 0x1bd   :  { %9122 = vmatprep.subr.bf16.mxu0 %v9694_v2  ;;  %v1429_v63 = vcombine.high %v1421_v59, %v1421_v59  ;;  %v1437_v0 = vrot.slane %v1421_v59, %v9935_v41  ;;  %v11402_v2 = vrot.slane %v1414_v60, %v9935_v41 }
 0x1be   :  { %9143 = vmatpush3.bf16.msra.mxu1 %v9693_v1  ;;  %v9731_v1 = vld [vmem:[%s12237_s1 + $0xf40] sm:$0xff]  }
 0x1bf   :  { %9144 = vmatprep.subr.bf16.mxu1 %v9695_v8  ;;  %v1451_v4 = vrot.slane %v1429_v63, %v9935_v41  ;;  %v1430_v6 = vcombine.high %v11402_v2, %v11402_v2  ;;  %v1459_v9 = vcombine.high %v1437_v0, %v1437_v0 }
 0x1c0   :  { %9123 = vmatpush3.bf16.msra.mxu0 %v9696_v10  ;;  %v9735_v10 = vld [vmem:[%s12237_s1 + $0xf48] sm:$0xff]  }
 0x1c1   :  { %9152 = vmatprep.subr.bf16.mxu0 %v9699_v14  ;;  %v1461_v8 = vcombine.high %v1451_v4, %v1451_v4 }
 0x1c2   :  { %9145 = vmatpush3.bf16.msra.mxu1 %v9697_v12  ;;  %v9734_v12 = vld [vmem:[%s12237_s1 + $0xf80] sm:$0xff]  }
 0x1c3   :  { %5672 = vmatmul.mubr.bf16.vlgmr.msra.gmra.mrb[52].mxu0 %v1395_v13  ;;  %9174 = vmatprep.subr.bf16.mxu1 %v9700_v15  ;;  %v9736_v13 = vld [vmem:[%s12237_s1 + $0xfc8] sm:$0xff]  }
 0x1c4   :  { %9153 = vmatpush3.bf16.msra.mxu0 %v9701_v16  ;;  %5751 = vmatprep.mubr.bf16.mxu0 %v1451_v4  ;;  %v9737_v15 = vld [vmem:[%s12237_s1 + $0xf08] sm:$0xff]   ;;  %v9739_v16 = vld [vmem:[%s12237_s1 + $0xf50] sm:$0xff]  }
 0x1c5   :  { %5712 = vmatmul.mubr.bf16.vlgmr.msra.gmra.mrb[52].mxu1 %v1411_v18  ;;  %9154 = vmatprep.subr.bf16.mxu0 %v9703_v19  ;;  %v9740_v18 = vld [vmem:[%s12237_s1 + $0xfd0] sm:$0xff]  }
 0x1c6   :  { %9175 = vmatpush3.bf16.msra.mxu1 %v9702_v17  ;;  %5791 = vmatprep.mubr.bf16.mxu1 %v1461_v8  ;;  %v9738_v17 = vld [vmem:[%s12237_s1 + $0xf88] sm:$0xff]   ;;  %v9741_v19 = vld [vmem:[%s12237_s1 + $0xf10] sm:$0xff]  }
 0x1c7   :  { %9176 = vmatprep.subr.bf16.mxu1 %v9704_v20  ;;  %v9743_v20 = vld [vmem:[%s12237_s1 + $0xf58] sm:$0xff]  }
 0x1c8   :  { %9155 = vmatpush3.bf16.msra.mxu0 %v9705_v21  ;;  %v9742_v21 = vld [vmem:[%s12237_s1 + $0xf90] sm:$0xff]  }
 0x1c9   :  { %9156 = vmatprep.subr.bf16.mxu0 %v9707_v23  ;;  %v9745_v23 = vld [vmem:[%s12237_s1 + $0xf18] sm:$0xff]  }
 0x1ca   :  { %9177 = vmatpush3.bf16.msra.mxu1 %v9706_v22  ;;  %v9744_v22 = vld [vmem:[%s12237_s1 + $0xfd8] sm:$0xff]  }
 0x1cb   :  { %9178 = vmatprep.subr.bf16.mxu1 %v9708_v24  ;;  %v9747_v24 = vld [vmem:[%s12237_s1 + $0xf60] sm:$0xff]  }
 0x1cc   :  { %9157 = vmatpush3.bf16.msra.mxu0 %v9709_v25  ;;  %v9746_v25 = vld [vmem:[%s12237_s1 + $0xf98] sm:$0xff]  }
 0x1cd   :  { %9158 = vmatprep.subr.bf16.mxu0 %v9711_v27  ;;  %v9749_v27 = vld [vmem:[%s12237_s1 + $0xf20] sm:$0xff]  }
 0x1ce   :  { %9179 = vmatpush3.bf16.msra.mxu1 %v9710_v26  ;;  %v9748_v26 = vld [vmem:[%s12237_s1 + $0xfe0] sm:$0xff]  }
 0x1cf   :  { %9180 = vmatprep.subr.bf16.mxu1 %v9712_v28  ;;  %v9751_v28 = vld [vmem:[%s12237_s1 + $0xf68] sm:$0xff]  }
 0x1d0   :  { %9159 = vmatpush3.bf16.msra.mxu0 %v9713_v29  ;;  %v9750_v29 = vld [vmem:[%s12237_s1 + $0xfa0] sm:$0xff]  }
 0x1d1   :  { %9160 = vmatprep.subr.bf16.mxu0 %v9715_v31  ;;  %v9753_v31 = vld [vmem:[%s12237_s1 + $0xf28] sm:$0xff]  }
 0x1d2   :  { %9181 = vmatpush3.bf16.msra.mxu1 %v9714_v30  ;;  %v9752_v30 = vld [vmem:[%s12237_s1 + $0xfe8] sm:$0xff]  }
 0x1d3   :  { %9182 = vmatprep.subr.bf16.mxu1 %v9716_v32  ;;  %v9755_v32 = vld [vmem:[%s12237_s1 + $0xf70] sm:$0xff]  }
 0x1d4   :  { %9161 = vmatpush3.bf16.msra.mxu0 %v9717_v34 }
 0x1d5   :  { %9162 = vmatprep.subr.bf16.mxu0 %v9719_v36 }
 0x1d6   :  { %9183 = vmatpush3.bf16.msra.mxu1 %v9718_v35  ;;  %v8860_v42 = vpop.f32.mrb[28].mxu0  ;;  %v9754_v35 = vld [vmem:[%s12237_s1 + $0xfa8] sm:$0xff]  }
 0x1d7   :  { %v8861_v44 = vpop.f32.mrb[29].mxu0  ;;  %9184 = vmatprep.subr.bf16.mxu1 %v9720_v37  ;;  %v9756_v37 = vld [vmem:[%s12237_s1 + $0xff0] sm:$0xff]  }
 0x1d8   :  { %v8882_v46 = vpop.f32.mrb[28].mxu1  ;;  %v8862_v47 = vadd.f32 %v8861_v44, %v8860_v42  ;;  %v8863_v48 = vpop.f32.mrb[30].mxu0  ;;  %9163 = vmatpush3.bf16.msra.mxu0 %v9721_v38  ;;  %v9757_v42 = vld [vmem:[%s12237_s1 + $0xf30] sm:$0xff]  }
 0x1d9   :  { %v8883_v49 = vpop.f32.mrb[29].mxu1  ;;  %v8864_v50 = vpop.f32.mrb[31].mxu0  ;;  %9164 = vmatprep.subr.bf16.mxu0 %v9723_v40 }
 0x1da   :  { %v5194_v53 = vadd.f32 %v8862_v47, %v11290_v11  ;;  %v8884_v54 = vadd.f32 %v8883_v49, %v8882_v46  ;;  %v8885_v55 = vpop.f32.mrb[30].mxu1  ;;  %9185 = vmatpush3.bf16.msra.mxu1 %v9722_v39  ;;  %v1458_v11 = vrot.slane %v1430_v6, %v9935_v41  ;;  %v9758_v49 = vld [vmem:[%s12237_s1 + $0xfb0] sm:$0xff]  }
 0x1db   :  { %v8886_v57 = vpop.f32.mrb[31].mxu1  ;;  %9186 = vmatprep.subr.bf16.mxu1 %v9724_v43  ;;  %v9759_v43 = vld [vmem:[%s12237_s1 + $0xf78] sm:$0xff]  }
 0x1dc   :  { %v11392_v61 = vadd.f32 %v8884_v54, %v5194_v53  ;;  %9165 = vmatpush3.bf16.msra.mxu0 %v9725_v45  ;;  %v1462_v14 = vcombine.high %v1458_v11, %v1458_v11 }
 0x1dd   :  { %9166 = vmatprep.subr.bf16.mxu0 %v9727_v52 }
 0x1de   :  { %9187 = vmatpush3.bf16.msra.mxu1 %v9726_v51  ;;  %v9760_v51 = vld [vmem:[%s12237_s1 + $0xff8] sm:$0xff]  }
 0x1df   :  { %9188 = vmatprep.subr.bf16.mxu1 %v9728_v58 }
 0x1e0   :  { %9167 = vmatpush3.bf16.msra.mxu0 %v9729_v62 }
 0x1e1   :  { %9196 = vmatprep.subr.bf16.mxu0 %v9731_v1 }
 0x1e2   :  { %9189 = vmatpush3.bf16.msra.mxu1 %v9730_v3 }
 0x1e3   :  { %5752 = vmatmul.mubr.bf16.vlgmr.msra.gmra.mrb[56].mxu0 %v1437_v0  ;;  %9218 = vmatprep.subr.bf16.mxu1 %v9732_v5 }
 0x1e4   :  { %9197 = vmatpush3.bf16.msra.mxu0 %v9733_v7  ;;  %5831 = vmatprep.mubr.bf16.mxu0 %v1458_v11 }
 0x1e5   :  { %5792 = vmatmul.mubr.bf16.vlgmr.msra.gmra.mrb[56].mxu1 %v1459_v9  ;;  %9198 = vmatprep.subr.bf16.mxu0 %v9735_v10 }
 0x1e6   :  { %9219 = vmatpush3.bf16.msra.mxu1 %v9734_v12  ;;  %5871 = vmatprep.mubr.bf16.mxu1 %v1462_v14 }
 0x1e7   :  { %9220 = vmatprep.subr.bf16.mxu1 %v9736_v13 }
 0x1e8   :  { %9199 = vmatpush3.bf16.msra.mxu0 %v9737_v15 }
 0x1e9   :  { %9200 = vmatprep.subr.bf16.mxu0 %v9739_v16 }
 0x1ea   :  { %9221 = vmatpush3.bf16.msra.mxu1 %v9738_v17 }
 0x1eb   :  { %9222 = vmatprep.subr.bf16.mxu1 %v9740_v18 }
 0x1ec   :  { %9201 = vmatpush3.bf16.msra.mxu0 %v9741_v19 }
 0x1ed   :  { %9202 = vmatprep.subr.bf16.mxu0 %v9743_v20 }
 0x1ee   :  { %9223 = vmatpush3.bf16.msra.mxu1 %v9742_v21 }
 0x1ef   :  { %9224 = vmatprep.subr.bf16.mxu1 %v9744_v22 }
 0x1f0   :  { %9203 = vmatpush3.bf16.msra.mxu0 %v9745_v23 }
 0x1f1   :  { %9204 = vmatprep.subr.bf16.mxu0 %v9747_v24 }
 0x1f2   :  { %9225 = vmatpush3.bf16.msra.mxu1 %v9746_v25 }
 0x1f3   :  { %9226 = vmatprep.subr.bf16.mxu1 %v9748_v26 }
 0x1f4   :  { %9205 = vmatpush3.bf16.msra.mxu0 %v9749_v27 }
 0x1f5   :  { %9206 = vmatprep.subr.bf16.mxu0 %v9751_v28 }
 0x1f6   :  { %9227 = vmatpush3.bf16.msra.mxu1 %v9750_v29  ;;  %v8904_v34 = vpop.f32.mrb[32].mxu0 }
 0x1f7   :  { %v8905_v36 = vpop.f32.mrb[33].mxu0  ;;  %9228 = vmatprep.subr.bf16.mxu1 %v9752_v30 }
 0x1f8   :  { %v8926_v38 = vpop.f32.mrb[32].mxu1  ;;  %v8906_v39 = vadd.f32 %v8905_v36, %v8904_v34  ;;  %v8907_v40 = vpop.f32.mrb[34].mxu0  ;;  %9207 = vmatpush3.bf16.msra.mxu0 %v9753_v31 }
 0x1f9   :  { %v8927_v44 = vpop.f32.mrb[33].mxu1  ;;  %v8908_v45 = vpop.f32.mrb[35].mxu0  ;;  %9208 = vmatprep.subr.bf16.mxu0 %v9755_v32 }
 0x1fa   :  { %v5274_v46 = vadd.f32 %v8906_v39, %v11392_v61  ;;  %v8928_v47 = vadd.f32 %v8927_v44, %v8926_v38  ;;  %v8929_v48 = vpop.f32.mrb[34].mxu1  ;;  %9229 = vmatpush3.bf16.msra.mxu1 %v9754_v35 }
 0x1fb   :  { %v8930_v50 = vpop.f32.mrb[35].mxu1  ;;  %9230 = vmatprep.subr.bf16.mxu1 %v9756_v37 }
 0x1fc   :  { %12 = vsyncpa [#allocation3], 0  ;;  %v5314_v52 = vadd.f32 %v8928_v47, %v5274_v46  ;;  %9209 = vmatpush3.bf16.msra.mxu0 %v9757_v42  ;;  %v9761_v53 = vld [vmem:[%s12237_s1 + $0xf38] sm:$0xff]   ;;  %v1444_v54 = vrot.slane %v11402_v2, %v9935_v41  ;;  %v5881_v16 = vld [vmem:[%s12239_s3] sm:$0xff]  ;;  %s9791_s14 = smov [#allocation2]  }
 0x1fd   :  { %9210 = vmatprep.subr.bf16.mxu0 %v9759_v43  ;;  %v9762_v55 = vld [vmem:[%s12237_s1 + $0xfb8] sm:$0xff]   ;;  %v5893_v17 = vld [vmem:[%s12239_s3 + $0x60] sm:$0xff]  ;;  %v5882_v18 = vld [vmem:[%s12239_s3 + $0x8] sm:$0xff]  ;;  %s7819_s15 = sshll.u32 %s9791_s14, 4  ;;  %s7820_s15 = int_to_ptr.vmem [resolvable:$true] %s7819_s15 }
 0x1fe   :  { %9231 = vmatpush3.bf16.msra.mxu1 %v9758_v49  ;;  %v1460_v56 = vcombine.high %v1444_v54, %v1444_v54  ;;  %v8344_v19 = vcombine.low %v5881_v16, %v5893_v17  ;;  %v8345_v20 = vcombine.high %v5881_v16, %v5893_v17  ;;  %v5894_v21 = vld [vmem:[%s12239_s3 + $0x68] sm:$0xff]  ;;  %v5905_v22 = vld [vmem:[%s12239_s3 + $0xc0] sm:$0xff]  ;;  %s9764_s0 = scalar_lea.vmem %s7820_s15, 32  ;;  %p9769_p1 = scmp.lt.s32.totalorder %s7820_s15, %s7820_s15 }
 0x1ff   :  { %9232 = vmatprep.subr.bf16.mxu1 %v9760_v51  ;;  %v5917_v23 = vld [vmem:[%s12239_s3 + $0x120] sm:$0xff]  ;;  %v8346_v24 = vcombine.low %v5882_v18, %v5894_v21  ;;  %v8347_v25 = vcombine.high %v5882_v18, %v5894_v21  ;;  %v5906_v27 = vld [vmem:[%s12239_s3 + $0xc8] sm:$0xff]  ;;  %p9765_p0 = scmp.ne.s32.totalorder %s7820_s15, %s9764_s0  ;;  %p9770_p2 = scmp.lt.s32.totalorder %s9764_s0, %s9764_s0 }
 0x200   :  { %9211 = vmatpush3.bf16.msra.mxu0 %v9761_v53  ;;  %v8369_v26 = vcombine.high %v5905_v22, %v5917_v23  ;;  %v5918_v28 = vld [vmem:[%s12239_s3 + $0x128] sm:$0xff]  ;;  %v5929_v29 = vld [vmem:[%s12239_s3 + $0x180] sm:$0xff]  ;;  %v8368_v35 = vcombine.low %v5905_v22, %v5917_v23 }
 0x201   :  { %7159 = vmatprep.subr.bf16.mxu0 %v8345_v20  ;;  %v8371_v30 = vcombine.high %v5906_v27, %v5918_v28  ;;  %v5941_v31 = vld [vmem:[%s12239_s3 + $0x1e0] sm:$0xff]  ;;  %v5930_v32 = vld [vmem:[%s12239_s3 + $0x188] sm:$0xff]  ;;  %v8370_v36 = vcombine.low %v5906_v27, %v5918_v28  ;;  %p9771_p3 = por %p9770_p2, %p9769_p1 }
 0x202   :  { %9233 = vmatpush3.bf16.msra.mxu1 %v9762_v55  ;;  %v5942_v34 = vld [vmem:[%s12239_s3 + $0x1e8] sm:$0xff]  ;;  %v8393_v37 = vcombine.high %v5929_v29, %v5941_v31  ;;  %v5953_v39 = vld [vmem:[%s12239_s3 + $0x240] sm:$0xff]  ;;  %v8392_v44 = vcombine.low %v5929_v29, %v5941_v31  ;;  %v11609_v29 = vld [vmem:[%s12239_s3 + $0x10] sm:$0xff] }
 0x203   :  { %5832 = vmatmul.mubr.bf16.vlgmr.msra.gmra.mrb[60].mxu0 %v1444_v54  ;;  %7200 = vmatprep.subr.bf16.mxu1 %v8347_v25  ;;  %v8395_v38 = vcombine.high %v5930_v32, %v5942_v34  ;;  %v5965_v40 = vld [vmem:[%s12239_s3 + $0x2a0] sm:$0xff]  ;;  %v5954_v42 = vld [vmem:[%s12239_s3 + $0x248] sm:$0xff]  ;;  %v8394_v45 = vcombine.low %v5930_v32, %v5942_v34  ;;  %v11619_v31 = vld [vmem:[%s12239_s3 + $0x18] sm:$0xff]  ;;  %v9789_v32 = vmov 0   ;;  %p9772_p4 = pnand %p9771_p3, %p9765_p0 }
 0x204   :  { %7160 = vmatpush1.bf16.msra.mxu0 %v8344_v19  ;;  %v5966_v43 = vld [vmem:[%s12239_s3 + $0x2a8] sm:$0xff]  ;;  %v8417_v46 = vcombine.high %v5953_v39, %v5965_v40  ;;  %v5977_v48 = vld [vmem:[%s12239_s3 + $0x300] sm:$0xff]  ;;  %7191 = vmatprep.mubr.bf16.mxu0 %v9789_v32 }
 0x205   :  { %5872 = vmatmul.mubr.bf16.vlgmr.msra.gmra.mrb[60].mxu1 %v1460_v56  ;;  %7161 = vmatprep.subr.bf16.mxu0 %v8369_v26  ;;  %v8419_v47 = vcombine.high %v5954_v42, %v5966_v43  ;;  %v5989_v49 = vld [vmem:[%s12239_s3 + $0x360] sm:$0xff]  ;;  %v5978_v50 = vld [vmem:[%s12239_s3 + $0x308] sm:$0xff]  ;;  %v8418_v53 = vcombine.low %v5954_v42, %v5966_v43 }
 0x206   :  { %7201 = vmatpush1.bf16.msra.mxu1 %v8346_v24  ;;  %v5990_v51 = vld [vmem:[%s12239_s3 + $0x368] sm:$0xff]  ;;  %v8441_v54 = vcombine.high %v5977_v48, %v5989_v49  ;;  %v6001_v56 = vld [vmem:[%s12239_s3 + $0x3c0] sm:$0xff]  ;;  %7232 = vmatprep.mubr.bf16.mxu1 %v9789_v32 }
 0x207   :  { %7202 = vmatprep.subr.bf16.mxu1 %v8371_v30  ;;  %v8443_v55 = vcombine.high %v5978_v50, %v5990_v51  ;;  %v6049_v20 = vld [vmem:[%s12239_s3 + $0x540] sm:$0xff]  ;;  %v6050_v22 = vld [vmem:[%s12239_s3 + $0x548] sm:$0xff]  ;;  %v11614_v30 = vld [vmem:[%s12239_s3 + $0x70] sm:$0xff] }
 0x208   :  { %7162 = vmatpush1.bf16.msra.mxu0 %v8368_v35  ;;  %v6061_v21 = vld [vmem:[%s12239_s3 + $0x5a0] sm:$0xff]  ;;  %v8348_v34 = vcombine.low %v11609_v29, %v11614_v30  ;;  %v8349_v35 = vcombine.high %v11609_v29, %v11614_v30  ;;  %v5956_v29 = vld [vmem:[%s12239_s3 + $0x258] sm:$0xff] }
 0x209   :  { %7163 = vmatprep.subr.bf16.mxu0 %v8393_v37  ;;  %v8513_v24 = vcombine.high %v6049_v20, %v6061_v21  ;;  %v8512_v26 = vcombine.low %v6049_v20, %v6061_v21  ;;  %v5968_v30 = vld [vmem:[%s12239_s3 + $0x2b8] sm:$0xff] }
 0x20a   :  { %7203 = vmatpush1.bf16.msra.mxu1 %v8370_v36  ;;  %v11629_v36 = vld [vmem:[%s12239_s3 + $0x78] sm:$0xff] }
 0x20b   :  { %7204 = vmatprep.subr.bf16.mxu1 %v8395_v38  ;;  %v8350_v37 = vcombine.low %v11619_v31, %v11629_v36  ;;  %v8351_v38 = vcombine.high %v11619_v31, %v11629_v36 }
 0x20c   :  { %7164 = vmatpush1.bf16.msra.mxu0 %v8392_v44 }
 0x20d   :  { %7165 = vmatprep.subr.bf16.mxu0 %v8417_v46 }
 0x20e   :  { %7205 = vmatpush1.bf16.msra.mxu1 %v8394_v45 }
 0x20f   :  { %7206 = vmatprep.subr.bf16.mxu1 %v8419_v47 }
 0x212   :  { %7207 = vmatpush1.bf16.msra.mxu1 %v8418_v53 }
 0x213   :  { %7208 = vmatprep.subr.bf16.mxu1 %v8443_v55 }
 0x216   :  { %v8948_v57 = vpop.f32.mrb[36].mxu0 }
 0x217   :  { %v8949_v58 = vpop.f32.mrb[37].mxu0 }
 0x218   :  { %v8970_v59 = vpop.f32.mrb[36].mxu1  ;;  %v8950_v60 = vadd.f32 %v8949_v58, %v8948_v57  ;;  %v8951_v61 = vpop.f32.mrb[38].mxu0  ;;  %v6013_v57 = vld [vmem:[%s12239_s3 + $0x420] sm:$0xff]  ;;  %v6002_v58 = vld [vmem:[%s12239_s3 + $0x3c8] sm:$0xff] }
 0x219   :  { %v8971_v62 = vpop.f32.mrb[37].mxu1  ;;  %v8952_v63 = vpop.f32.mrb[39].mxu0  ;;  %v8442_v61 = vcombine.low %v5978_v50, %v5990_v51 }
 0x21a   :  { %v5354_v0 = vadd.f32 %v8950_v60, %v5314_v52  ;;  %v8972_v41 = vadd.f32 %v8971_v62, %v8970_v59  ;;  %v8973_v1 = vpop.f32.mrb[38].mxu1  ;;  %v8416_v52 = vcombine.low %v5953_v39, %v5965_v40  ;;  %v6014_v59 = vld [vmem:[%s12239_s3 + $0x428] sm:$0xff]  ;;  %v8440_v60 = vcombine.low %v5977_v48, %v5989_v49 }
 0x21b   :  { %v8974_v2 = vpop.f32.mrb[39].mxu1  ;;  %v8465_v62 = vcombine.high %v6001_v56, %v6013_v57  ;;  %v8467_v63 = vcombine.high %v6002_v58, %v6014_v59  ;;  %7209 = vmatpush1.bf16.msra.mxu1 %v8442_v61 }
 0x21c   :  { %v5394_v3 = vadd.f32 %v8972_v41, %v5354_v0  ;;  %7166 = vmatpush1.bf16.msra.mxu0 %v8416_v52  ;;  %v8464_v0 = vcombine.low %v6001_v56, %v6013_v57  ;;  %v8466_v41 = vcombine.low %v6002_v58, %v6014_v59  ;;  %v6025_v2 = vld [vmem:[%s12239_s3 + $0x480] sm:$0xff] }
 0x21d   :  { %7167 = vmatprep.subr.bf16.mxu0 %v8441_v54  ;;  %7210 = vmatprep.subr.bf16.mxu1 %v8467_v63 }
 0x21f   :  { %7211 = vmatpush1.bf16.msra.mxu1 %v8466_v41 }
 0x220   :  { %7168 = vmatpush1.bf16.msra.mxu0 %v8440_v60 }
 0x221   :  { %7169 = vmatprep.subr.bf16.mxu0 %v8465_v62 }
 0x224   :  { %7170 = vmatpush1.bf16.msra.mxu0 %v8464_v0 }
 0x236   :  { %v8992_v4 = vpop.f32.mrb[40].mxu0 }
 0x237   :  { %v8993_v5 = vpop.f32.mrb[41].mxu0 }
 0x238   :  { %v9014_v6 = vpop.f32.mrb[40].mxu1  ;;  %v8994_v7 = vadd.f32 %v8993_v5, %v8992_v4  ;;  %v8995_v8 = vpop.f32.mrb[42].mxu0  ;;  %v6026_v4 = vld [vmem:[%s12239_s3 + $0x488] sm:$0xff] }
 0x239   :  { %v9015_v9 = vpop.f32.mrb[41].mxu1  ;;  %v8996_v10 = vpop.f32.mrb[43].mxu0 }
 0x23a   :  { %v5434_v11 = vadd.f32 %v8994_v7, %v5394_v3  ;;  %v9016_v12 = vadd.f32 %v9015_v9, %v9014_v6  ;;  %v9017_v13 = vpop.f32.mrb[42].mxu1  ;;  %v6037_v3 = vld [vmem:[%s12239_s3 + $0x4e0] sm:$0xff]  ;;  %v6038_v7 = vld [vmem:[%s12239_s3 + $0x4e8] sm:$0xff] }
 0x23b   :  { %v9018_v14 = vpop.f32.mrb[43].mxu1  ;;  %v8489_v6 = vcombine.high %v6025_v2, %v6037_v3  ;;  %v8491_v13 = vcombine.high %v6026_v4, %v6038_v7 }
 0x23c   :  { %v11507_v15 = vadd.f32 %v9016_v12, %v5434_v11  ;;  %v8488_v11 = vcombine.low %v6025_v2, %v6037_v3  ;;  %v8490_v12 = vcombine.low %v6026_v4, %v6038_v7 }
 0x23d   :  { %7171 = vmatprep.subr.bf16.mxu0 %v8489_v6  ;;  %7212 = vmatprep.subr.bf16.mxu1 %v8491_v13 }
 0x23e   :  { %7172 = vmatpush1.bf16.msra.mxu0 %v8488_v11  ;;  %7213 = vmatpush1.bf16.msra.mxu1 %v8490_v12 }
 0x23f   :  { %7173 = vmatprep.subr.bf16.mxu0 %v8513_v24  ;;  %v5919_v24 = vld [vmem:[%s12239_s3 + $0x130] sm:$0xff] }
 0x242   :  { %7174 = vmatpush1.bf16.msra.mxu0 %v8512_v26 }
 0x243   :  { %7241 = vmatprep.subr.bf16.mxu0 %v8349_v35 }
 0x256   :  { %v9036_v1 = vpop.f32.mrb[44].mxu0 }
 0x257   :  { %v9037_v5 = vpop.f32.mrb[45].mxu0 }
 0x258   :  { %v9058_v8 = vpop.f32.mrb[44].mxu1  ;;  %v9038_v9 = vadd.f32 %v9037_v5, %v9036_v1  ;;  %v9039_v10 = vpop.f32.mrb[46].mxu0 }
 0x259   :  { %v9059_v14 = vpop.f32.mrb[45].mxu1  ;;  %v9040_v16 = vpop.f32.mrb[47].mxu0 }
 0x25a   :  { %v5514_v17 = vadd.f32 %v9038_v9, %v11507_v15  ;;  %v9060_v18 = vadd.f32 %v9059_v14, %v9058_v8  ;;  %v9061_v19 = vpop.f32.mrb[46].mxu1  ;;  %v6062_v15 = vld [vmem:[%s12239_s3 + $0x5a8] sm:$0xff] }
 0x25b   :  { %v9062_v23 = vpop.f32.mrb[47].mxu1  ;;  %v8514_v27 = vcombine.low %v6050_v22, %v6062_v15  ;;  %v8515_v28 = vcombine.high %v6050_v22, %v6062_v15  ;;  %v5907_v22 = vld [vmem:[%s12239_s3 + $0xd0] sm:$0xff]  ;;  %v5908_v15 = vld [vmem:[%s12239_s3 + $0xd8] sm:$0xff] }
 0x25c   :  { %v5554_v25 = vadd.f32 %v9060_v18, %v5514_v17 }
 0x25d   :  { %7214 = vmatprep.subr.bf16.mxu1 %v8515_v28  ;;  %v8373_v28 = vcombine.high %v5907_v22, %v5919_v24 }
 0x25e   :  { %7215 = vmatpush1.bf16.msra.mxu1 %v8514_v27 }
 0x25f   :  { %7282 = vmatprep.subr.bf16.mxu1 %v8351_v38  ;;  %v5931_v38 = vld [vmem:[%s12239_s3 + $0x190] sm:$0xff] }
 0x276   :  { %v9080_v39 = vpop.f32.mrb[48].mxu0 }
 0x277   :  { %v9081_v40 = vpop.f32.mrb[49].mxu0 }
 0x278   :  { %v9102_v42 = vpop.f32.mrb[48].mxu1  ;;  %v9082_v43 = vadd.f32 %v9081_v40, %v9080_v39  ;;  %v9083_v44 = vpop.f32.mrb[50].mxu0  ;;  %v5943_v39 = vld [vmem:[%s12239_s3 + $0x1f0] sm:$0xff]  ;;  %v5932_v40 = vld [vmem:[%s12239_s3 + $0x198] sm:$0xff] }
 0x279   :  { %v9103_v45 = vpop.f32.mrb[49].mxu1  ;;  %v9084_v46 = vpop.f32.mrb[51].mxu0  ;;  %v8396_v31 = vcombine.low %v5931_v38, %v5943_v39 }
 0x27a   :  { %v5594_v47 = vadd.f32 %v9082_v43, %v5554_v25  ;;  %v9104_v48 = vadd.f32 %v9103_v45, %v9102_v42  ;;  %v9105_v49 = vpop.f32.mrb[50].mxu1  ;;  %v5920_v25 = vld [vmem:[%s12239_s3 + $0x138] sm:$0xff]  ;;  %v8372_v43 = vcombine.low %v5907_v22, %v5919_v24  ;;  %v8397_v45 = vcombine.high %v5931_v38, %v5943_v39 }
 0x27b   :  { %v9106_v50 = vpop.f32.mrb[51].mxu1  ;;  %v8375_v35 = vcombine.high %v5908_v15, %v5920_v25  ;;  %v5944_v42 = vld [vmem:[%s12239_s3 + $0x1f8] sm:$0xff]  ;;  %v8374_v44 = vcombine.low %v5908_v15, %v5920_v25  ;;  %v5979_v49 = vld [vmem:[%s12239_s3 + $0x310] sm:$0xff]  ;;  %v5909_v15 = vld [vmem:[%s12239_s3 + $0xe0] sm:$0xff] }
 0x27c   :  { %v5634_v51 = vadd.f32 %v9104_v48, %v5594_v47  ;;  %v8399_v46 = vcombine.high %v5932_v40, %v5944_v42  ;;  %v5955_v47 = vld [vmem:[%s12239_s3 + $0x250] sm:$0xff]  ;;  %v5921_v25 = vld [vmem:[%s12239_s3 + $0x140] sm:$0xff] }
 0x27d   :  { %v5967_v48 = vld [vmem:[%s12239_s3 + $0x2b0] sm:$0xff]  ;;  %v8377_v39 = vcombine.high %v5909_v15, %v5921_v25 }
 0x27e   :  { %v8421_v36 = vcombine.high %v5955_v47, %v5967_v48  ;;  %v5991_v50 = vld [vmem:[%s12239_s3 + $0x370] sm:$0xff] }
 0x296   :  { %v9124_v52 = vpop.f32.mrb[52].mxu0 }
 0x297   :  { %v9125_v53 = vpop.f32.mrb[53].mxu0 }
 0x298   :  { %v9146_v54 = vpop.f32.mrb[52].mxu1  ;;  %v9126_v55 = vadd.f32 %v9125_v53, %v9124_v52  ;;  %v9127_v56 = vpop.f32.mrb[54].mxu0  ;;  %v5992_v52 = vld [vmem:[%s12239_s3 + $0x378] sm:$0xff]  ;;  %v8420_v53 = vcombine.low %v5955_v47, %v5967_v48 }
 0x299   :  { %v9147_v57 = vpop.f32.mrb[53].mxu1  ;;  %v9128_v58 = vpop.f32.mrb[55].mxu0 }
 0x29a   :  { %v5674_v59 = vadd.f32 %v9126_v55, %v5634_v51  ;;  %v9148_v60 = vadd.f32 %v9147_v57, %v9146_v54  ;;  %v9149_v61 = vpop.f32.mrb[54].mxu1  ;;  %v5980_v51 = vld [vmem:[%s12239_s3 + $0x318] sm:$0xff]  ;;  %v8422_v54 = vcombine.low %v5956_v29, %v5968_v30  ;;  %v8445_v55 = vcombine.high %v5979_v49, %v5991_v50  ;;  %v6003_v57 = vld [vmem:[%s12239_s3 + $0x3d0] sm:$0xff] }
 0x29b   :  { %v9150_v62 = vpop.f32.mrb[55].mxu1  ;;  %v8447_v56 = vcombine.high %v5980_v51, %v5992_v52  ;;  %v6015_v58 = vld [vmem:[%s12239_s3 + $0x430] sm:$0xff]  ;;  %v8444_v61 = vcombine.low %v5979_v49, %v5991_v50 }
 0x29c   :  { %v5714_v63 = vadd.f32 %v9148_v60, %v5674_v59  ;;  %v6004_v59 = vld [vmem:[%s12239_s3 + $0x3d8] sm:$0xff]  ;;  %v8446_v62 = vcombine.low %v5980_v51, %v5992_v52  ;;  %v5981_v52 = vld [vmem:[%s12239_s3 + $0x320] sm:$0xff] }
 0x29d   :  { %v6016_v60 = vld [vmem:[%s12239_s3 + $0x438] sm:$0xff] }
 0x2b6   :  { %v9168_v0 = vpop.f32.mrb[56].mxu0 }
 0x2b7   :  { %v9169_v41 = vpop.f32.mrb[57].mxu0 }
 0x2b8   :  { %v9190_v1 = vpop.f32.mrb[56].mxu1  ;;  %v9170_v2 = vadd.f32 %v9169_v41, %v9168_v0  ;;  %v9171_v3 = vpop.f32.mrb[58].mxu0  ;;  %v8471_v0 = vcombine.high %v6004_v59, %v6016_v60  ;;  %v6027_v41 = vld [vmem:[%s12239_s3 + $0x490] sm:$0xff] }
 0x2b9   :  { %v9191_v4 = vpop.f32.mrb[57].mxu1  ;;  %v9172_v5 = vpop.f32.mrb[59].mxu0  ;;  %v6040_v3 = vld [vmem:[%s12239_s3 + $0x4f8] sm:$0xff] }
 0x2ba   :  { %v5754_v6 = vadd.f32 %v9170_v2, %v5714_v63  ;;  %v9192_v7 = vadd.f32 %v9191_v4, %v9190_v1  ;;  %v9193_v8 = vpop.f32.mrb[58].mxu1  ;;  %v8469_v63 = vcombine.high %v6003_v57, %v6015_v58  ;;  %v6039_v1 = vld [vmem:[%s12239_s3 + $0x4f0] sm:$0xff]  ;;  %v6028_v2 = vld [vmem:[%s12239_s3 + $0x498] sm:$0xff]  ;;  %v8468_v4 = vcombine.low %v6003_v57, %v6015_v58 }
 0x2bb   :  { %v9194_v9 = vpop.f32.mrb[59].mxu1  ;;  %v8470_v5 = vcombine.low %v6004_v59, %v6016_v60  ;;  %v6051_v8 = vld [vmem:[%s12239_s3 + $0x550] sm:$0xff]  ;;  %v6005_v60 = vld [vmem:[%s12239_s3 + $0x3e0] sm:$0xff] }
 0x2bc   :  { %v5794_v10 = vadd.f32 %v9192_v7, %v5754_v6  ;;  %v8493_v6 = vcombine.high %v6027_v41, %v6039_v1  ;;  %v8495_v7 = vcombine.high %v6028_v2, %v6040_v3  ;;  %v6063_v9 = vld [vmem:[%s12239_s3 + $0x5b0] sm:$0xff] }
 0x2d6   :  { %v9212_v11 = vpop.f32.mrb[60].mxu0 }
 0x2d7   :  { %v9213_v12 = vpop.f32.mrb[61].mxu0 }
 0x2d8   :  { %v9234_v13 = vpop.f32.mrb[60].mxu1  ;;  %v9214_v14 = vadd.f32 %v9213_v12, %v9212_v11  ;;  %v9215_v16 = vpop.f32.mrb[62].mxu0  ;;  %v6064_v11 = vld [vmem:[%s12239_s3 + $0x5b8] sm:$0xff]  ;;  %v8492_v12 = vcombine.low %v6027_v41, %v6039_v1 }
 0x2d9   :  { %v9235_v17 = vpop.f32.mrb[61].mxu1  ;;  %v9216_v18 = vpop.f32.mrb[63].mxu0 }
 0x2da   :  { %v5834_v19 = vadd.f32 %v9214_v14, %v5794_v10  ;;  %v9236_v20 = vadd.f32 %v9235_v17, %v9234_v13  ;;  %v9237_v21 = vpop.f32.mrb[62].mxu1  ;;  %v6052_v10 = vld [vmem:[%s12239_s3 + $0x558] sm:$0xff]  ;;  %v8494_v13 = vcombine.low %v6028_v2, %v6040_v3  ;;  %v8517_v14 = vcombine.high %v6051_v8, %v6063_v9  ;;  %v5885_v17 = vld [vmem:[%s12239_s3 + $0x20] sm:$0xff] }
 0x2db   :  { %v9238_v23 = vpop.f32.mrb[63].mxu1  ;;  %v8519_v16 = vcombine.high %v6052_v10, %v6064_v11  ;;  %v5897_v18 = vld [vmem:[%s12239_s3 + $0x80] sm:$0xff]  ;;  %v8516_v21 = vcombine.low %v6051_v8, %v6063_v9  ;;  %v8518_v22 = vcombine.low %v6052_v10, %v6064_v11 }
 0x2dc   :  { %v5874_v26 = vadd.f32 %v9236_v20, %v5834_v19  ;;  %v5886_v19 = vld [vmem:[%s12239_s3 + $0x28] sm:$0xff]  ;;  %v8353_v23 = vcombine.high %v5885_v17, %v5897_v18  ;;  %v6029_v3 = vld [vmem:[%s12239_s3 + $0x4a0] sm:$0xff] }
 0x2dd   :  { %v5898_v20 = vld [vmem:[%s12239_s3 + $0x88] sm:$0xff]  ;;  %v6053_v11 = vld [vmem:[%s12239_s3 + $0x560] sm:$0xff] }
 0x2de   :  { %v11648_v27 = vpack.c.bf16 %v5874_v26, %v5874_v26  ;;  %5879 = vst [vmem:[#allocation2] sm:$0x3] %v5874_v26  ;;  %v8355_v24 = vcombine.high %v5886_v19, %v5898_v20  ;;  %v5910_v26 = vld [vmem:[%s12239_s3 + $0xe8] sm:$0xff]  ;;  %v8354_v38 = vcombine.low %v5886_v19, %v5898_v20  ;;  %v5887_v20 = vld [vmem:[%s12239_s3 + $0x30] sm:$0xff] }
 0x2e0   :  { %7192 = vmatmul.mubr.bf16.vlgmr.msra.gmra.mrb[64].mxu0 %v11648_v27  ;;  %7233 = vmatmul.mubr.bf16.vlgmr.msra.gmra.mrb[64].mxu1 %v11648_v27 }
 0x2e1   :  { %7242 = vmatpush1.bf16.msra.mxu0 %v8348_v34  ;;  %7283 = vmatpush1.bf16.msra.mxu1 %v8350_v37  ;;  %v8398_v34 = vcombine.low %v5932_v40, %v5944_v42  ;;  %v8423_v37 = vcombine.high %v5956_v29, %v5968_v30  ;;  %v5933_v42 = vld [vmem:[%s12239_s3 + $0x1a0] sm:$0xff] }
 0x2e2   :  { %7243 = vmatprep.subr.bf16.mxu0 %v8373_v28  ;;  %7284 = vmatprep.subr.bf16.mxu1 %v8375_v35  ;;  %v5922_v28 = vld [vmem:[%s12239_s3 + $0x148] sm:$0xff]  ;;  %v8352_v35 = vcombine.low %v5885_v17, %v5897_v18  ;;  %v5957_v30 = vld [vmem:[%s12239_s3 + $0x260] sm:$0xff] }
 0x2e3   :  { %7273 = vmatprep.mubr.bf16.mxu0 %v9789_v32  ;;  %7314 = vmatprep.mubr.bf16.mxu1 %v9789_v32  ;;  %v8379_v40 = vcombine.high %v5910_v26, %v5922_v28  ;;  %v8378_v47 = vcombine.low %v5910_v26, %v5922_v28  ;;  %v5911_v28 = vld [vmem:[%s12239_s3 + $0xf0] sm:$0xff] }
 0x2e5   :  { %7244 = vmatpush1.bf16.msra.mxu0 %v8372_v43  ;;  %7285 = vmatpush1.bf16.msra.mxu1 %v8374_v44  ;;  %v5945_v43 = vld [vmem:[%s12239_s3 + $0x200] sm:$0xff]  ;;  %v5934_v44 = vld [vmem:[%s12239_s3 + $0x1a8] sm:$0xff] }
 0x2e6   :  { %7245 = vmatprep.subr.bf16.mxu0 %v8397_v45  ;;  %7286 = vmatprep.subr.bf16.mxu1 %v8399_v46  ;;  %v5946_v45 = vld [vmem:[%s12239_s3 + $0x208] sm:$0xff]  ;;  %v8376_v46 = vcombine.low %v5909_v15, %v5921_v25  ;;  %v8401_v48 = vcombine.high %v5933_v42, %v5945_v43 }
 0x2e7   :  { %v8403_v29 = vcombine.high %v5934_v44, %v5946_v45  ;;  %v8402_v49 = vcombine.low %v5934_v44, %v5946_v45  ;;  %v5935_v45 = vld [vmem:[%s12239_s3 + $0x1b0] sm:$0xff] }
 0x2e9   :  { %7246 = vmatpush1.bf16.msra.mxu0 %v8396_v31  ;;  %7287 = vmatpush1.bf16.msra.mxu1 %v8398_v34  ;;  %v5969_v31 = vld [vmem:[%s12239_s3 + $0x2c0] sm:$0xff]  ;;  %v5958_v34 = vld [vmem:[%s12239_s3 + $0x268] sm:$0xff] }
 0x2ea   :  { %7247 = vmatprep.subr.bf16.mxu0 %v8421_v36  ;;  %7288 = vmatprep.subr.bf16.mxu1 %v8423_v37  ;;  %v5970_v36 = vld [vmem:[%s12239_s3 + $0x2c8] sm:$0xff]  ;;  %v8400_v37 = vcombine.low %v5933_v42, %v5945_v43  ;;  %v8425_v50 = vcombine.high %v5957_v30, %v5969_v31 }
 0x2eb   :  { %v8427_v51 = vcombine.high %v5958_v34, %v5970_v36  ;;  %v8426_v57 = vcombine.low %v5958_v34, %v5970_v36  ;;  %v5959_v36 = vld [vmem:[%s12239_s3 + $0x270] sm:$0xff] }
 0x2ed   :  { %7248 = vmatpush1.bf16.msra.mxu0 %v8420_v53  ;;  %7289 = vmatpush1.bf16.msra.mxu1 %v8422_v54  ;;  %v5993_v53 = vld [vmem:[%s12239_s3 + $0x380] sm:$0xff]  ;;  %v5982_v54 = vld [vmem:[%s12239_s3 + $0x328] sm:$0xff] }
 0x2ee   :  { %7249 = vmatprep.subr.bf16.mxu0 %v8445_v55  ;;  %7290 = vmatprep.subr.bf16.mxu1 %v8447_v56  ;;  %v5994_v55 = vld [vmem:[%s12239_s3 + $0x388] sm:$0xff]  ;;  %v8424_v56 = vcombine.low %v5957_v30, %v5969_v31  ;;  %v8449_v58 = vcombine.high %v5981_v52, %v5993_v53 }
 0x2ef   :  { %v8451_v59 = vcombine.high %v5982_v54, %v5994_v55  ;;  %v8450_v41 = vcombine.low %v5982_v54, %v5994_v55  ;;  %v5983_v55 = vld [vmem:[%s12239_s3 + $0x330] sm:$0xff] }
 0x2f1   :  { %7250 = vmatpush1.bf16.msra.mxu0 %v8444_v61  ;;  %7291 = vmatpush1.bf16.msra.mxu1 %v8446_v62  ;;  %v6017_v61 = vld [vmem:[%s12239_s3 + $0x440] sm:$0xff]  ;;  %v6006_v62 = vld [vmem:[%s12239_s3 + $0x3e8] sm:$0xff] }
 0x2f2   :  { %7251 = vmatprep.subr.bf16.mxu0 %v8469_v63  ;;  %7292 = vmatprep.subr.bf16.mxu1 %v8471_v0  ;;  %v6018_v63 = vld [vmem:[%s12239_s3 + $0x448] sm:$0xff]  ;;  %v8448_v0 = vcombine.low %v5981_v52, %v5993_v53  ;;  %v8473_v1 = vcombine.high %v6005_v60, %v6017_v61 }
 0x2f3   :  { %v8475_v2 = vcombine.high %v6006_v62, %v6018_v63  ;;  %v8474_v8 = vcombine.low %v6006_v62, %v6018_v63  ;;  %v6007_v63 = vld [vmem:[%s12239_s3 + $0x3f0] sm:$0xff] }
 0x2f5   :  { %7252 = vmatpush1.bf16.msra.mxu0 %v8468_v4  ;;  %7293 = vmatpush1.bf16.msra.mxu1 %v8470_v5  ;;  %v6041_v4 = vld [vmem:[%s12239_s3 + $0x500] sm:$0xff]  ;;  %v6030_v5 = vld [vmem:[%s12239_s3 + $0x4a8] sm:$0xff] }
 0x2f6   :  { %7253 = vmatprep.subr.bf16.mxu0 %v8493_v6  ;;  %7294 = vmatprep.subr.bf16.mxu1 %v8495_v7  ;;  %v6042_v6 = vld [vmem:[%s12239_s3 + $0x508] sm:$0xff]  ;;  %v8472_v7 = vcombine.low %v6005_v60, %v6017_v61  ;;  %v8497_v9 = vcombine.high %v6029_v3, %v6041_v4 }
 0x2f7   :  { %v8499_v10 = vcombine.high %v6030_v5, %v6042_v6  ;;  %v8498_v17 = vcombine.low %v6030_v5, %v6042_v6  ;;  %v6031_v6 = vld [vmem:[%s12239_s3 + $0x4b0] sm:$0xff] }
 0x2f9   :  { %7254 = vmatpush1.bf16.msra.mxu0 %v8492_v12  ;;  %7295 = vmatpush1.bf16.msra.mxu1 %v8494_v13  ;;  %v6065_v12 = vld [vmem:[%s12239_s3 + $0x5c0] sm:$0xff]  ;;  %v6054_v13 = vld [vmem:[%s12239_s3 + $0x568] sm:$0xff] }
 0x2fa   :  { %7255 = vmatprep.subr.bf16.mxu0 %v8517_v14  ;;  %7296 = vmatprep.subr.bf16.mxu1 %v8519_v16  ;;  %v6066_v14 = vld [vmem:[%s12239_s3 + $0x5c8] sm:$0xff]  ;;  %v8496_v16 = vcombine.low %v6029_v3, %v6041_v4  ;;  %v8521_v18 = vcombine.high %v6053_v11, %v6065_v12 }
 0x2fb   :  { %v8523_v19 = vcombine.high %v6054_v13, %v6066_v14  ;;  %v8522_v15 = vcombine.low %v6054_v13, %v6066_v14  ;;  %v6055_v14 = vld [vmem:[%s12239_s3 + $0x570] sm:$0xff] }
 0x2fd   :  { %7256 = vmatpush1.bf16.msra.mxu0 %v8516_v21  ;;  %7297 = vmatpush1.bf16.msra.mxu1 %v8518_v22  ;;  %v5899_v21 = vld [vmem:[%s12239_s3 + $0x90] sm:$0xff]  ;;  %v5888_v22 = vld [vmem:[%s12239_s3 + $0x38] sm:$0xff] }
 0x2fe   :  { %7323 = vmatprep.subr.bf16.mxu0 %v8353_v23  ;;  %7364 = vmatprep.subr.bf16.mxu1 %v8355_v24  ;;  %v5900_v23 = vld [vmem:[%s12239_s3 + $0x98] sm:$0xff]  ;;  %v8520_v24 = vcombine.low %v6053_v11, %v6065_v12  ;;  %v8357_v25 = vcombine.high %v5887_v20, %v5899_v21 }
 0x2ff   :  { %v8359_v26 = vcombine.high %v5888_v22, %v5900_v23  ;;  %v8358_v42 = vcombine.low %v5888_v22, %v5900_v23  ;;  %v5889_v23 = vld [vmem:[%s12239_s3 + $0x40] sm:$0xff] }
 0x300   :  { %7274 = vmatmul.mubr.bf16.vlgmr.msra.gmra.mrb[68].mxu0 %v11648_v27  ;;  %7315 = vmatmul.mubr.bf16.vlgmr.msra.gmra.mrb[68].mxu1 %v11648_v27 }
 0x301   :  { %7324 = vmatpush1.bf16.msra.mxu0 %v8352_v35  ;;  %7365 = vmatpush1.bf16.msra.mxu1 %v8354_v38  ;;  %v5923_v35 = vld [vmem:[%s12239_s3 + $0x150] sm:$0xff]  ;;  %v5912_v38 = vld [vmem:[%s12239_s3 + $0xf8] sm:$0xff] }
 0x302   :  { %7325 = vmatprep.subr.bf16.mxu0 %v8377_v39  ;;  %7366 = vmatprep.subr.bf16.mxu1 %v8379_v40  ;;  %v5924_v39 = vld [vmem:[%s12239_s3 + $0x158] sm:$0xff]  ;;  %v8356_v40 = vcombine.low %v5887_v20, %v5899_v21  ;;  %v8381_v43 = vcombine.high %v5911_v28, %v5923_v35 }
 0x303   :  { %7355 = vmatprep.mubr.bf16.mxu0 %v9789_v32  ;;  %7396 = vmatprep.mubr.bf16.mxu1 %v9789_v32  ;;  %v8383_v44 = vcombine.high %v5912_v38, %v5924_v39  ;;  %v8382_v30 = vcombine.low %v5912_v38, %v5924_v39  ;;  %v5913_v39 = vld [vmem:[%s12239_s3 + $0x100] sm:$0xff] }
 0x305   :  { %7326 = vmatpush1.bf16.msra.mxu0 %v8376_v46  ;;  %7367 = vmatpush1.bf16.msra.mxu1 %v8378_v47  ;;  %v5947_v46 = vld [vmem:[%s12239_s3 + $0x210] sm:$0xff]  ;;  %v5936_v47 = vld [vmem:[%s12239_s3 + $0x1b8] sm:$0xff] }
 0x306   :  { %7327 = vmatprep.subr.bf16.mxu0 %v8401_v48  ;;  %7368 = vmatprep.subr.bf16.mxu1 %v8403_v29  ;;  %v5948_v48 = vld [vmem:[%s12239_s3 + $0x218] sm:$0xff]  ;;  %v8380_v29 = vcombine.low %v5911_v28, %v5923_v35  ;;  %v8405_v31 = vcombine.high %v5935_v45, %v5947_v46 }
 0x307   :  { %v8407_v34 = vcombine.high %v5936_v47, %v5948_v48  ;;  %v8406_v52 = vcombine.low %v5936_v47, %v5948_v48  ;;  %v5937_v48 = vld [vmem:[%s12239_s3 + $0x1c0] sm:$0xff] }
 0x309   :  { %7328 = vmatpush1.bf16.msra.mxu0 %v8400_v37  ;;  %7369 = vmatpush1.bf16.msra.mxu1 %v8402_v49  ;;  %v5971_v37 = vld [vmem:[%s12239_s3 + $0x2d0] sm:$0xff]  ;;  %v5960_v49 = vld [vmem:[%s12239_s3 + $0x278] sm:$0xff] }
 0x30a   :  { %7329 = vmatprep.subr.bf16.mxu0 %v8425_v50  ;;  %7370 = vmatprep.subr.bf16.mxu1 %v8427_v51  ;;  %v5972_v50 = vld [vmem:[%s12239_s3 + $0x2d8] sm:$0xff]  ;;  %v8404_v51 = vcombine.low %v5935_v45, %v5947_v46  ;;  %v8429_v53 = vcombine.high %v5959_v36, %v5971_v37 }
 0x30b   :  { %v8431_v54 = vcombine.high %v5960_v49, %v5972_v50  ;;  %v8430_v60 = vcombine.low %v5960_v49, %v5972_v50  ;;  %v5961_v50 = vld [vmem:[%s12239_s3 + $0x280] sm:$0xff] }
 0x30d   :  { %7330 = vmatpush1.bf16.msra.mxu0 %v8424_v56  ;;  %7371 = vmatpush1.bf16.msra.mxu1 %v8426_v57  ;;  %v5995_v56 = vld [vmem:[%s12239_s3 + $0x390] sm:$0xff]  ;;  %v5984_v57 = vld [vmem:[%s12239_s3 + $0x338] sm:$0xff] }
 0x30e   :  { %7331 = vmatprep.subr.bf16.mxu0 %v8449_v58  ;;  %7372 = vmatprep.subr.bf16.mxu1 %v8451_v59  ;;  %v5996_v58 = vld [vmem:[%s12239_s3 + $0x398] sm:$0xff]  ;;  %v8428_v59 = vcombine.low %v5959_v36, %v5971_v37  ;;  %v8453_v61 = vcombine.high %v5983_v55, %v5995_v56 }
 0x30f   :  { %v8455_v62 = vcombine.high %v5984_v57, %v5996_v58  ;;  %v8454_v3 = vcombine.low %v5984_v57, %v5996_v58  ;;  %v5985_v58 = vld [vmem:[%s12239_s3 + $0x340] sm:$0xff] }
 0x311   :  { %7332 = vmatpush1.bf16.msra.mxu0 %v8448_v0  ;;  %7373 = vmatpush1.bf16.msra.mxu1 %v8450_v41  ;;  %v6019_v0 = vld [vmem:[%s12239_s3 + $0x450] sm:$0xff]  ;;  %v6008_v41 = vld [vmem:[%s12239_s3 + $0x3f8] sm:$0xff] }
 0x312   :  { %7333 = vmatprep.subr.bf16.mxu0 %v8473_v1  ;;  %7374 = vmatprep.subr.bf16.mxu1 %v8475_v2  ;;  %v6020_v1 = vld [vmem:[%s12239_s3 + $0x458] sm:$0xff]  ;;  %v8452_v2 = vcombine.low %v5983_v55, %v5995_v56  ;;  %v8477_v4 = vcombine.high %v6007_v63, %v6019_v0 }
 0x313   :  { %v8479_v5 = vcombine.high %v6008_v41, %v6020_v1  ;;  %v8478_v11 = vcombine.low %v6008_v41, %v6020_v1  ;;  %v6009_v1 = vld [vmem:[%s12239_s3 + $0x400] sm:$0xff] }
 0x315   :  { %7334 = vmatpush1.bf16.msra.mxu0 %v8472_v7  ;;  %7375 = vmatpush1.bf16.msra.mxu1 %v8474_v8  ;;  %v6043_v7 = vld [vmem:[%s12239_s3 + $0x510] sm:$0xff]  ;;  %v6032_v8 = vld [vmem:[%s12239_s3 + $0x4b8] sm:$0xff] }
 0x316   :  { %7335 = vmatprep.subr.bf16.mxu0 %v8497_v9  ;;  %7376 = vmatprep.subr.bf16.mxu1 %v8499_v10  ;;  %v6044_v9 = vld [vmem:[%s12239_s3 + $0x518] sm:$0xff]  ;;  %v8476_v10 = vcombine.low %v6007_v63, %v6019_v0  ;;  %v8501_v12 = vcombine.high %v6031_v6, %v6043_v7 }
 0x317   :  { %v8503_v13 = vcombine.high %v6032_v8, %v6044_v9  ;;  %v8502_v20 = vcombine.low %v6032_v8, %v6044_v9  ;;  %v6033_v9 = vld [vmem:[%s12239_s3 + $0x4c0] sm:$0xff] }
 0x319   :  { %7336 = vmatpush1.bf16.msra.mxu0 %v8496_v16  ;;  %7377 = vmatpush1.bf16.msra.mxu1 %v8498_v17  ;;  %v6067_v16 = vld [vmem:[%s12239_s3 + $0x5d0] sm:$0xff]  ;;  %v6056_v17 = vld [vmem:[%s12239_s3 + $0x578] sm:$0xff] }
 0x31a   :  { %7337 = vmatprep.subr.bf16.mxu0 %v8521_v18  ;;  %7378 = vmatprep.subr.bf16.mxu1 %v8523_v19  ;;  %v6068_v18 = vld [vmem:[%s12239_s3 + $0x5d8] sm:$0xff]  ;;  %v8500_v19 = vcombine.low %v6031_v6, %v6043_v7  ;;  %v8525_v21 = vcombine.high %v6055_v14, %v6067_v16 }
 0x31b   :  { %v8527_v22 = vcombine.high %v6056_v17, %v6068_v18  ;;  %v8526_v28 = vcombine.low %v6056_v17, %v6068_v18  ;;  %v6057_v18 = vld [vmem:[%s12239_s3 + $0x580] sm:$0xff] }
 0x31d   :  { %7338 = vmatpush1.bf16.msra.mxu0 %v8520_v24  ;;  %7379 = vmatpush1.bf16.msra.mxu1 %v8522_v15  ;;  %v5901_v24 = vld [vmem:[%s12239_s3 + $0xa0] sm:$0xff]  ;;  %v5890_v15 = vld [vmem:[%s12239_s3 + $0x48] sm:$0xff] }
 0x31e   :  { %7405 = vmatprep.subr.bf16.mxu0 %v8357_v25  ;;  %7446 = vmatprep.subr.bf16.mxu1 %v8359_v26  ;;  %v5902_v25 = vld [vmem:[%s12239_s3 + $0xa8] sm:$0xff]  ;;  %v8524_v26 = vcombine.low %v6055_v14, %v6067_v16  ;;  %v8361_v35 = vcombine.high %v5889_v23, %v5901_v24 }
 0x31f   :  { %v8363_v38 = vcombine.high %v5890_v15, %v5902_v25  ;;  %v8362_v45 = vcombine.low %v5890_v15, %v5902_v25  ;;  %v5891_v25 = vld [vmem:[%s12239_s3 + $0x50] sm:$0xff] }
 0x320   :  { %7356 = vmatmul.mubr.bf16.vlgmr.msra.gmra.mrb[72].mxu0 %v11648_v27  ;;  %7397 = vmatmul.mubr.bf16.vlgmr.msra.gmra.mrb[72].mxu1 %v11648_v27 }
 0x321   :  { %7406 = vmatpush1.bf16.msra.mxu0 %v8356_v40  ;;  %7447 = vmatpush1.bf16.msra.mxu1 %v8358_v42  ;;  %v5925_v40 = vld [vmem:[%s12239_s3 + $0x160] sm:$0xff]  ;;  %v5914_v42 = vld [vmem:[%s12239_s3 + $0x108] sm:$0xff] }
 0x322   :  { %7407 = vmatprep.subr.bf16.mxu0 %v8381_v43  ;;  %7448 = vmatprep.subr.bf16.mxu1 %v8383_v44  ;;  %v5926_v43 = vld [vmem:[%s12239_s3 + $0x168] sm:$0xff]  ;;  %v8360_v44 = vcombine.low %v5889_v23, %v5901_v24  ;;  %v8385_v46 = vcombine.high %v5913_v39, %v5925_v40 }
 0x323   :  { %7437 = vmatprep.mubr.bf16.mxu0 %v9789_v32  ;;  %7478 = vmatprep.mubr.bf16.mxu1 %v9789_v32  ;;  %v8387_v47 = vcombine.high %v5914_v42, %v5926_v43  ;;  %v8386_v36 = vcombine.low %v5914_v42, %v5926_v43  ;;  %v5915_v43 = vld [vmem:[%s12239_s3 + $0x110] sm:$0xff] }
 0x325   :  { %7408 = vmatpush1.bf16.msra.mxu0 %v8380_v29  ;;  %7449 = vmatpush1.bf16.msra.mxu1 %v8382_v30  ;;  %v5949_v29 = vld [vmem:[%s12239_s3 + $0x220] sm:$0xff]  ;;  %v5938_v30 = vld [vmem:[%s12239_s3 + $0x1c8] sm:$0xff] }
 0x326   :  { %7409 = vmatprep.subr.bf16.mxu0 %v8405_v31  ;;  %7450 = vmatprep.subr.bf16.mxu1 %v8407_v34  ;;  %v5950_v31 = vld [vmem:[%s12239_s3 + $0x228] sm:$0xff]  ;;  %v8384_v34 = vcombine.low %v5913_v39, %v5925_v40  ;;  %v8409_v37 = vcombine.high %v5937_v48, %v5949_v29 }
 0x327   :  { %v8411_v49 = vcombine.high %v5938_v30, %v5950_v31  ;;  %v8410_v55 = vcombine.low %v5938_v30, %v5950_v31  ;;  %v5939_v31 = vld [vmem:[%s12239_s3 + $0x1d0] sm:$0xff] }
 0x329   :  { %7410 = vmatpush1.bf16.msra.mxu0 %v8404_v51  ;;  %7451 = vmatpush1.bf16.msra.mxu1 %v8406_v52  ;;  %v5973_v51 = vld [vmem:[%s12239_s3 + $0x2e0] sm:$0xff]  ;;  %v5962_v52 = vld [vmem:[%s12239_s3 + $0x288] sm:$0xff] }
 0x32a   :  { %7411 = vmatprep.subr.bf16.mxu0 %v8429_v53  ;;  %7452 = vmatprep.subr.bf16.mxu1 %v8431_v54  ;;  %v5974_v53 = vld [vmem:[%s12239_s3 + $0x2e8] sm:$0xff]  ;;  %v8408_v54 = vcombine.low %v5937_v48, %v5949_v29  ;;  %v8433_v56 = vcombine.high %v5961_v50, %v5973_v51 }
 0x32b   :  { %v8435_v57 = vcombine.high %v5962_v52, %v5974_v53  ;;  %v8434_v63 = vcombine.low %v5962_v52, %v5974_v53  ;;  %v5963_v53 = vld [vmem:[%s12239_s3 + $0x290] sm:$0xff] }
 0x32d   :  { %7412 = vmatpush1.bf16.msra.mxu0 %v8428_v59  ;;  %7453 = vmatpush1.bf16.msra.mxu1 %v8430_v60  ;;  %v5997_v59 = vld [vmem:[%s12239_s3 + $0x3a0] sm:$0xff]  ;;  %v5986_v60 = vld [vmem:[%s12239_s3 + $0x348] sm:$0xff] }
 0x32e   :  { %7413 = vmatprep.subr.bf16.mxu0 %v8453_v61  ;;  %7454 = vmatprep.subr.bf16.mxu1 %v8455_v62  ;;  %v5998_v61 = vld [vmem:[%s12239_s3 + $0x3a8] sm:$0xff]  ;;  %v8432_v62 = vcombine.low %v5961_v50, %v5973_v51  ;;  %v8457_v0 = vcombine.high %v5985_v58, %v5997_v59 }
 0x32f   :  { %v8459_v41 = vcombine.high %v5986_v60, %v5998_v61  ;;  %v8458_v6 = vcombine.low %v5986_v60, %v5998_v61  ;;  %v5987_v61 = vld [vmem:[%s12239_s3 + $0x350] sm:$0xff] }
 0x331   :  { %7414 = vmatpush1.bf16.msra.mxu0 %v8452_v2  ;;  %7455 = vmatpush1.bf16.msra.mxu1 %v8454_v3  ;;  %v6021_v2 = vld [vmem:[%s12239_s3 + $0x460] sm:$0xff]  ;;  %v6010_v3 = vld [vmem:[%s12239_s3 + $0x408] sm:$0xff] }
 0x332   :  { %7415 = vmatprep.subr.bf16.mxu0 %v8477_v4  ;;  %7456 = vmatprep.subr.bf16.mxu1 %v8479_v5  ;;  %v6022_v4 = vld [vmem:[%s12239_s3 + $0x468] sm:$0xff]  ;;  %v8456_v5 = vcombine.low %v5985_v58, %v5997_v59  ;;  %v8481_v7 = vcombine.high %v6009_v1, %v6021_v2 }
 0x333   :  { %v8483_v8 = vcombine.high %v6010_v3, %v6022_v4  ;;  %v8482_v14 = vcombine.low %v6010_v3, %v6022_v4  ;;  %v6011_v3 = vld [vmem:[%s12239_s3 + $0x410] sm:$0xff] }
 0x334   :  { %v6023_v4 = vld [vmem:[%s12239_s3 + $0x470] sm:$0xff] }
 0x335   :  { %7416 = vmatpush1.bf16.msra.mxu0 %v8476_v10  ;;  %7457 = vmatpush1.bf16.msra.mxu1 %v8478_v11  ;;  %v6045_v10 = vld [vmem:[%s12239_s3 + $0x520] sm:$0xff]  ;;  %v6034_v11 = vld [vmem:[%s12239_s3 + $0x4c8] sm:$0xff] }
 0x336   :  { %7417 = vmatprep.subr.bf16.mxu0 %v8501_v12  ;;  %7458 = vmatprep.subr.bf16.mxu1 %v8503_v13  ;;  %v6046_v12 = vld [vmem:[%s12239_s3 + $0x528] sm:$0xff]  ;;  %v8480_v13 = vcombine.low %v6009_v1, %v6021_v2  ;;  %v8505_v16 = vcombine.high %v6033_v9, %v6045_v10 }
 0x337   :  { %v8507_v17 = vcombine.high %v6034_v11, %v6046_v12  ;;  %v8506_v23 = vcombine.low %v6034_v11, %v6046_v12  ;;  %v6035_v11 = vld [vmem:[%s12239_s3 + $0x4d0] sm:$0xff] }
 0x338   :  { %v6047_v12 = vld [vmem:[%s12239_s3 + $0x530] sm:$0xff] }
 0x339   :  { %7418 = vmatpush1.bf16.msra.mxu0 %v8500_v19  ;;  %7459 = vmatpush1.bf16.msra.mxu1 %v8502_v20  ;;  %v6069_v19 = vld [vmem:[%s12239_s3 + $0x5e0] sm:$0xff]  ;;  %v6058_v20 = vld [vmem:[%s12239_s3 + $0x588] sm:$0xff] }
 0x33a   :  { %7419 = vmatprep.subr.bf16.mxu0 %v8525_v21  ;;  %7460 = vmatprep.subr.bf16.mxu1 %v8527_v22  ;;  %v6070_v21 = vld [vmem:[%s12239_s3 + $0x5e8] sm:$0xff]  ;;  %v8504_v22 = vcombine.low %v6033_v9, %v6045_v10  ;;  %v8529_v24 = vcombine.high %v6057_v18, %v6069_v19  ;;  %v8485_v9 = vcombine.high %v6011_v3, %v6023_v4 }
 0x33b   :  { %v8531_v15 = vcombine.high %v6058_v20, %v6070_v21  ;;  %v8530_v39 = vcombine.low %v6058_v20, %v6070_v21  ;;  %v6059_v20 = vld [vmem:[%s12239_s3 + $0x590] sm:$0xff] }
 0x33c   :  { %v6071_v21 = vld [vmem:[%s12239_s3 + $0x5f0] sm:$0xff] }
 0x33d   :  { %7420 = vmatpush1.bf16.msra.mxu0 %v8524_v26  ;;  %7461 = vmatpush1.bf16.msra.mxu1 %v8526_v28  ;;  %v5903_v26 = vld [vmem:[%s12239_s3 + $0xb0] sm:$0xff]  ;;  %v5892_v28 = vld [vmem:[%s12239_s3 + $0x58] sm:$0xff] }
 0x33e   :  { %7487 = vmatprep.subr.bf16.mxu0 %v8361_v35  ;;  %7528 = vmatprep.subr.bf16.mxu1 %v8363_v38  ;;  %v5904_v35 = vld [vmem:[%s12239_s3 + $0xb8] sm:$0xff]  ;;  %v8528_v38 = vcombine.low %v6057_v18, %v6069_v19  ;;  %v8365_v40 = vcombine.high %v5891_v25, %v5903_v26  ;;  %v8509_v18 = vcombine.high %v6035_v11, %v6047_v12 }
 0x33f   :  { %v8367_v42 = vcombine.high %v5892_v28, %v5904_v35  ;;  %v8366_v48 = vcombine.low %v5892_v28, %v5904_v35  ;;  %v8532_v28 = vcombine.low %v6059_v20, %v6071_v21 }
 0x340   :  { %7438 = vmatmul.mubr.bf16.vlgmr.msra.gmra.mrb[76].mxu0 %v11648_v27  ;;  %7479 = vmatmul.mubr.bf16.vlgmr.msra.gmra.mrb[76].mxu1 %v11648_v27 }
 0x341   :  { %7488 = vmatpush1.bf16.msra.mxu0 %v8360_v44  ;;  %7529 = vmatpush1.bf16.msra.mxu1 %v8362_v45  ;;  %v5927_v44 = vld [vmem:[%s12239_s3 + $0x170] sm:$0xff]  ;;  %v5916_v45 = vld [vmem:[%s12239_s3 + $0x118] sm:$0xff] }
 0x342   :  { %7489 = vmatprep.subr.bf16.mxu0 %v8385_v46  ;;  %7530 = vmatprep.subr.bf16.mxu1 %v8387_v47  ;;  %v5928_v46 = vld [vmem:[%s12239_s3 + $0x178] sm:$0xff]  ;;  %v8364_v47 = vcombine.low %v5891_v25, %v5903_v26  ;;  %v8389_v29 = vcombine.high %v5915_v43, %v5927_v44  ;;  %v8533_v25 = vcombine.high %v6059_v20, %v6071_v21 }
 0x343   :  { %7519 = vmatprep.mubr.bf16.mxu0 %v9789_v32  ;;  %7560 = vmatprep.mubr.bf16.mxu1 %v9789_v32  ;;  %v8391_v30 = vcombine.high %v5916_v45, %v5928_v46  ;;  %v8390_v50 = vcombine.low %v5916_v45, %v5928_v46 }
 0x345   :  { %7490 = vmatpush1.bf16.msra.mxu0 %v8384_v34  ;;  %7531 = vmatpush1.bf16.msra.mxu1 %v8386_v36  ;;  %v5951_v34 = vld [vmem:[%s12239_s3 + $0x230] sm:$0xff]  ;;  %v5940_v36 = vld [vmem:[%s12239_s3 + $0x1d8] sm:$0xff] }
 0x346   :  { %7491 = vmatprep.subr.bf16.mxu0 %v8409_v37  ;;  %7532 = vmatprep.subr.bf16.mxu1 %v8411_v49  ;;  %v5952_v37 = vld [vmem:[%s12239_s3 + $0x238] sm:$0xff]  ;;  %v8388_v49 = vcombine.low %v5915_v43, %v5927_v44  ;;  %v8413_v51 = vcombine.high %v5939_v31, %v5951_v34  ;;  %v12147_v43 = vsub.s32 3, %v9923_v33  ;;  %v9790_v44 = vmov 1983009808  }
 0x347   :  { %v8415_v52 = vcombine.high %v5940_v36, %v5952_v37  ;;  %v8414_v58 = vcombine.low %v5940_v36, %v5952_v37  ;;  %v7702_v45 = vunpack.c.l.s4 %v9790_v44 }
 0x349   :  { %7492 = vmatpush1.bf16.msra.mxu0 %v8408_v54  ;;  %7533 = vmatpush1.bf16.msra.mxu1 %v8410_v55  ;;  %v5975_v54 = vld [vmem:[%s12239_s3 + $0x2f0] sm:$0xff]  ;;  %v5964_v55 = vld [vmem:[%s12239_s3 + $0x298] sm:$0xff] }
 0x34a   :  { %7493 = vmatprep.subr.bf16.mxu0 %v8433_v56  ;;  %7534 = vmatprep.subr.bf16.mxu1 %v8435_v57  ;;  %v5976_v56 = vld [vmem:[%s12239_s3 + $0x2f8] sm:$0xff]  ;;  %v8412_v57 = vcombine.low %v5939_v31, %v5951_v34  ;;  %v8437_v59 = vcombine.high %v5963_v53, %v5975_v54  ;;  %v7703_v31 = vunpack.c.0.s8 %v7702_v45 }
 0x34b   :  { %v8439_v60 = vcombine.high %v5964_v55, %v5976_v56 }
 0x34d   :  { %7494 = vmatpush1.bf16.msra.mxu0 %v8432_v62  ;;  %7535 = vmatpush1.bf16.msra.mxu1 %v8434_v63  ;;  %v5999_v62 = vld [vmem:[%s12239_s3 + $0x3b0] sm:$0xff]  ;;  %v6000_v63 = vld [vmem:[%s12239_s3 + $0x3b8] sm:$0xff] }
 0x34e   :  { %7495 = vmatprep.subr.bf16.mxu0 %v8457_v0  ;;  %7536 = vmatprep.subr.bf16.mxu1 %v8459_v41  ;;  %v8436_v0 = vcombine.low %v5963_v53, %v5975_v54  ;;  %v8438_v41 = vcombine.low %v5964_v55, %v5976_v56  ;;  %v8461_v1 = vcombine.high %v5987_v61, %v5999_v62 }
 0x351   :  { %7496 = vmatpush1.bf16.msra.mxu0 %v8456_v5  ;;  %7537 = vmatpush1.bf16.msra.mxu1 %v8458_v6  ;;  %v6012_v5 = vld [vmem:[%s12239_s3 + $0x418] sm:$0xff] }
 0x352   :  { %7497 = vmatprep.subr.bf16.mxu0 %v8481_v7  ;;  %7538 = vmatprep.subr.bf16.mxu1 %v8483_v8  ;;  %v6024_v6 = vld [vmem:[%s12239_s3 + $0x478] sm:$0xff]  ;;  %v8460_v7 = vcombine.low %v5987_v61, %v5999_v62 }
 0x353   :  { %v8487_v10 = vcombine.high %v6012_v5, %v6024_v6 }
 0x355   :  { %7498 = vmatpush1.bf16.msra.mxu0 %v8480_v13  ;;  %7539 = vmatpush1.bf16.msra.mxu1 %v8482_v14  ;;  %v6036_v13 = vld [vmem:[%s12239_s3 + $0x4d8] sm:$0xff] }
 0x356   :  { %7499 = vmatprep.subr.bf16.mxu0 %v8505_v16  ;;  %7540 = vmatprep.subr.bf16.mxu1 %v8507_v17  ;;  %v6048_v14 = vld [vmem:[%s12239_s3 + $0x538] sm:$0xff]  ;;  %v8484_v16 = vcombine.low %v6011_v3, %v6023_v4  ;;  %v8486_v17 = vcombine.low %v6012_v5, %v6024_v6  ;;  %v12171_v3 = vsub.s32 7, %v9923_v33 }
 0x357   :  { %v8511_v19 = vcombine.high %v6036_v13, %v6048_v14 }
 0x359   :  { %7500 = vmatpush1.bf16.msra.mxu0 %v8504_v22  ;;  %7541 = vmatpush1.bf16.msra.mxu1 %v8506_v23  ;;  %v6060_v22 = vld [vmem:[%s12239_s3 + $0x598] sm:$0xff] }
 0x35a   :  { %7501 = vmatprep.subr.bf16.mxu0 %v8529_v24  ;;  %7542 = vmatprep.subr.bf16.mxu1 %v8531_v15  ;;  %v6072_v23 = vld [vmem:[%s12239_s3 + $0x5f8] sm:$0xff]  ;;  %v8508_v24 = vcombine.low %v6035_v11, %v6047_v12  ;;  %v8510_v15 = vcombine.low %v6036_v13, %v6048_v14 }
 0x35b   :  { %v8535_v26 = vcombine.high %v6060_v22, %v6072_v23  ;;  %v8534_v35 = vcombine.low %v6060_v22, %v6072_v23 }
 0x35d   :  { %7502 = vmatpush1.bf16.msra.mxu0 %v8528_v38  ;;  %7543 = vmatpush1.bf16.msra.mxu1 %v8530_v39  ;;  %v12135_v38 = vsub.s32 0, %v9923_v33  ;;  %v12138_v39 = vsub.s32 2, %v9923_v33 }
 0x35e   :  { %7569 = vmatprep.subr.bf16.mxu0 %v8365_v40  ;;  %7610 = vmatprep.subr.bf16.mxu1 %v8367_v42  ;;  %v6073_v40 = vld [vmem:[%s12240_s4] sm:$0xff]  ;;  %v12144_v42 = vsub.s32 1, %v9923_v33 }
 0x35f   :  { %v6090_v46 = vrot.slane %v6073_v40, %v12138_v39 }
 0x360   :  { %7520 = vmatmul.mubr.bf16.vlgmr.msra.gmra.mrb[80].mxu0 %v11648_v27  ;;  %7561 = vmatmul.mubr.bf16.vlgmr.msra.gmra.mrb[80].mxu1 %v11648_v27 }
 0x361   :  { %7570 = vmatpush1.bf16.msra.mxu0 %v8364_v47  ;;  %7611 = vmatpush1.bf16.msra.mxu1 %v8366_v48  ;;  %v6086_v47 = vrot.slane %v6073_v40, %v12144_v42  ;;  %v6094_v48 = vrot.slane %v6073_v40, %v12147_v43 }
 0x362   :  { %7571 = vmatprep.subr.bf16.mxu0 %v8389_v29  ;;  %7612 = vmatprep.subr.bf16.mxu1 %v8391_v30 }
 0x363   :  { %7601 = vmatprep.mubr.bf16.mxu0 %v9789_v32  ;;  %7642 = vmatprep.mubr.bf16.mxu1 %v9789_v32  ;;  %v5988_v32 = vld [vmem:[%s12239_s3 + $0x358] sm:$0xff] }
 0x364   :  { %v8463_v2 = vcombine.high %v5988_v32, %v6000_v63  ;;  %v8462_v8 = vcombine.low %v5988_v32, %v6000_v63 }
 0x365   :  { %7572 = vmatpush1.bf16.msra.mxu0 %v8388_v49  ;;  %7613 = vmatpush1.bf16.msra.mxu1 %v8390_v50 }
 0x366   :  { %7573 = vmatprep.subr.bf16.mxu0 %v8413_v51  ;;  %7614 = vmatprep.subr.bf16.mxu1 %v8415_v52 }
 0x369   :  { %7574 = vmatpush1.bf16.msra.mxu0 %v8412_v57  ;;  %7615 = vmatpush1.bf16.msra.mxu1 %v8414_v58 }
 0x36a   :  { %7575 = vmatprep.subr.bf16.mxu0 %v8437_v59  ;;  %7616 = vmatprep.subr.bf16.mxu1 %v8439_v60  ;;  %v12154_v59 = vsub.s32 %v7703_v31, %v9923_v33 }
 0x36d   :  { %7576 = vmatpush1.bf16.msra.mxu0 %v8436_v0  ;;  %7617 = vmatpush1.bf16.msra.mxu1 %v8438_v41  ;;  %v12162_v41 = vsub.s32 4, %v9923_v33 }
 0x36e   :  { %7577 = vmatprep.subr.bf16.mxu0 %v8461_v1  ;;  %7618 = vmatprep.subr.bf16.mxu1 %v8463_v2  ;;  %v12165_v1 = vsub.s32 6, %v9923_v33  ;;  %v12168_v2 = vsub.s32 5, %v9923_v33 }
 0x36f   :  { %v6098_v4 = vrot.slane %v6073_v40, %v12162_v41 }
 0x370   :  { %v6106_v5 = vrot.slane %v6073_v40, %v12165_v1  ;;  %v6102_v6 = vrot.slane %v6073_v40, %v12168_v2 }
 0x371   :  { %7578 = vmatpush1.bf16.msra.mxu0 %v8460_v7  ;;  %7619 = vmatpush1.bf16.msra.mxu1 %v8462_v8  ;;  %v6110_v7 = vrot.slane %v6073_v40, %v12171_v3 }
 0x372   :  { %7579 = vmatprep.subr.bf16.mxu0 %v8485_v9  ;;  %7620 = vmatprep.subr.bf16.mxu1 %v8487_v10 }
 0x375   :  { %7580 = vmatpush1.bf16.msra.mxu0 %v8484_v16  ;;  %7621 = vmatpush1.bf16.msra.mxu1 %v8486_v17 }
 0x376   :  { %7581 = vmatprep.subr.bf16.mxu0 %v8509_v18  ;;  %7622 = vmatprep.subr.bf16.mxu1 %v8511_v19 }
 0x379   :  { %7582 = vmatpush1.bf16.msra.mxu0 %v8508_v24  ;;  %7623 = vmatpush1.bf16.msra.mxu1 %v8510_v15 }
 0x37a   :  { %7583 = vmatprep.subr.bf16.mxu0 %v8533_v25  ;;  %7624 = vmatprep.subr.bf16.mxu1 %v8535_v26 }
 0x37d   :  { %7584 = vmatpush1.bf16.msra.mxu0 %v8532_v28  ;;  %7625 = vmatpush1.bf16.msra.mxu1 %v8534_v35 }
 0x380   :  { %7602 = vmatmul.mubr.bf16.vlgmr.msra.gmra.mrb[84].mxu0 %v11648_v27  ;;  %7643 = vmatmul.mubr.bf16.vlgmr.msra.gmra.mrb[84].mxu1 %v11648_v27  ;;  %v6082_v27 = vrot.slane %v6073_v40, %v12135_v38 }
 0x3b3   :  { %v7193_v29 = vpop.f32.mrb[64].mxu0  ;;  %v7234_v30 = vpop.f32.mrb[64].mxu1 }
 0x3b4   :  { %v7194_v34 = vadd.f32 %v7193_v29, %v6082_v27  ;;  %v7235_v36 = vadd.f32 %v7234_v30, %v6090_v46  ;;  %v7195_v37 = vpop.f32.mrb[65].mxu0  ;;  %v7236_v49 = vpop.f32.mrb[65].mxu1 }
 0x3b5   :  { %v7196_v50 = vadd.f32 %v7195_v37, %v6086_v47  ;;  %v7237_v51 = vadd.f32 %v7236_v49, %v6094_v48  ;;  %v7197_v52 = vpop.f32.mrb[66].mxu0  ;;  %v7238_v53 = vpop.f32.mrb[66].mxu1 }
 0x3b6   :  { %v7651_v54 = vmax.f32 %v7194_v34, 0.0  ;;  %v7653_v55 = vmax.f32 %v7235_v36, 0.0  ;;  %v7198_v56 = vpop.f32.mrb[67].mxu0  ;;  %v7239_v57 = vpop.f32.mrb[67].mxu1 }
 0x3b7   :  { %v7652_v58 = vmax.f32 %v7196_v50, 0.0  ;;  %v7654_v60 = vmax.f32 %v7237_v51, 0.0 }
 0x3b9   :  { %v7699_v61 = vcombine.low %v7651_v54, %v7652_v58  ;;  %v7700_v62 = vcombine.low %v7653_v55, %v7654_v60 }
 0x3bb   :  { %v7707_v32 = vrot.slane %v7699_v61, %v12154_v59  ;;  %v7714_v63 = vrot.slane %v7700_v62, %v12154_v59 }
 0x3bd   :  { %v7715_v0 = vcombine.low %v7707_v32, %v7714_v63 }
 0x3bf   :  { %7807 = vst [vmem:[%s12242_s6] sm:$0xff] %v7715_v0 }
 0x3d3   :  { %v7275_v8 = vpop.f32.mrb[68].mxu0  ;;  %v7316_v9 = vpop.f32.mrb[68].mxu1 }
 0x3d4   :  { %v7276_v10 = vadd.f32 %v7275_v8, %v6098_v4  ;;  %v7317_v11 = vadd.f32 %v7316_v9, %v6106_v5  ;;  %v7277_v12 = vpop.f32.mrb[69].mxu0  ;;  %v7318_v13 = vpop.f32.mrb[69].mxu1 }
 0x3d5   :  { %v7278_v14 = vadd.f32 %v7277_v12, %v6102_v6  ;;  %v7319_v16 = vadd.f32 %v7318_v13, %v6110_v7  ;;  %v7279_v17 = vpop.f32.mrb[70].mxu0  ;;  %v7320_v18 = vpop.f32.mrb[70].mxu1 }
 0x3d6   :  { %v7655_v33 = vmax.f32 %v7276_v10, 0.0  ;;  %v7657_v19 = vmax.f32 %v7317_v11, 0.0  ;;  %v7280_v20 = vpop.f32.mrb[71].mxu0  ;;  %v7321_v21 = vpop.f32.mrb[71].mxu1 }
 0x3d7   :  { %v7656_v22 = vmax.f32 %v7278_v14, 0.0  ;;  %v7658_v23 = vmax.f32 %v7319_v16, 0.0 }
 0x3d9   :  { %v7716_v24 = vcombine.low %v7655_v33, %v7656_v22  ;;  %v7717_v15 = vcombine.low %v7657_v19, %v7658_v23 }
 0x3db   :  { %v7724_v25 = vrot.slane %v7716_v24, %v12154_v59  ;;  %v7731_v26 = vrot.slane %v7717_v15, %v12154_v59 }
 0x3dd   :  { %v7732_v28 = vcombine.low %v7724_v25, %v7731_v26 }
 0x3df   :  { %7808 = vst [vmem:[%s12242_s6 + $0x8] sm:$0xff] %v7732_v28 }
 0x3e0   :  { %9775 = shalt.err (!%p9772_p4)
}
 0x3e1   :  { %s9776_s20 = scalar_lea.hbm %s12241_s5, 32 }
 0x3e2   :  { %p9777_p5 = scmp.ne.s32.totalorder %s12241_s5, %s9776_s20  ;;  %p9780_p6 = scmp.lt.u32.totalorder %s9776_s20, %s12241_s5 }
 0x3e4   :  { %p9782_p7 = pnand %p9780_p6, %p9777_p5 }
 0x3e6   :  { %9785 = shalt.err (!%p9782_p7)
}
 0x3e7   :  { %7822 = dma.vmem_to_hbm [thread:$0]  %s7820_s15, 32, %s12241_s5, [#allocation3]   ;;  %v6074_v35 = vld [vmem:[%s12240_s4 + $0x8] sm:$0xff]  ;;  %v6075_v15 = vld [vmem:[%s12240_s4 + $0x10] sm:$0xff] }
 0x3e8   :  { %v6114_v40 = vrot.slane %v6074_v35, %v12135_v38  ;;  %v6122_v44 = vrot.slane %v6074_v35, %v12138_v39  ;;  %v6118_v45 = vrot.slane %v6074_v35, %v12144_v42  ;;  %v6126_v27 = vrot.slane %v6074_v35, %v12147_v43 }
 0x3e9   :  { %v6130_v62 = vrot.slane %v6074_v35, %v12162_v41  ;;  %v6138_v32 = vrot.slane %v6074_v35, %v12165_v1  ;;  %v6134_v63 = vrot.slane %v6074_v35, %v12168_v2  ;;  %v6142_v0 = vrot.slane %v6074_v35, %v12171_v3 }
 0x3ea   :  { %v6146_v25 = vrot.slane %v6075_v15, %v12135_v38  ;;  %v6154_v26 = vrot.slane %v6075_v15, %v12138_v39  ;;  %v6150_v28 = vrot.slane %v6075_v15, %v12144_v42  ;;  %v6158_v35 = vrot.slane %v6075_v15, %v12147_v43 }
 0x3f3   :  { %v7357_v46 = vpop.f32.mrb[72].mxu0  ;;  %v7398_v47 = vpop.f32.mrb[72].mxu1 }
 0x3f4   :  { %v7358_v48 = vadd.f32 %v7357_v46, %v6114_v40  ;;  %v7399_v29 = vadd.f32 %v7398_v47, %v6122_v44  ;;  %v7359_v30 = vpop.f32.mrb[73].mxu0  ;;  %v7400_v31 = vpop.f32.mrb[73].mxu1 }
 0x3f5   :  { %v7360_v34 = vadd.f32 %v7359_v30, %v6118_v45  ;;  %v7401_v36 = vadd.f32 %v7400_v31, %v6126_v27  ;;  %v7361_v37 = vpop.f32.mrb[74].mxu0  ;;  %v7402_v49 = vpop.f32.mrb[74].mxu1 }
 0x3f6   :  { %v7659_v50 = vmax.f32 %v7358_v48, 0.0  ;;  %v7661_v51 = vmax.f32 %v7399_v29, 0.0  ;;  %v7362_v52 = vpop.f32.mrb[75].mxu0  ;;  %v7403_v53 = vpop.f32.mrb[75].mxu1 }
 0x3f7   :  { %v7660_v54 = vmax.f32 %v7360_v34, 0.0  ;;  %v7662_v55 = vmax.f32 %v7401_v36, 0.0  ;;  %v6162_v53 = vrot.slane %v6075_v15, %v12162_v41 }
 0x3f9   :  { %v7733_v56 = vcombine.low %v7659_v50, %v7660_v54  ;;  %v7734_v57 = vcombine.low %v7661_v51, %v7662_v55  ;;  %v6170_v54 = vrot.slane %v6075_v15, %v12165_v1  ;;  %v6166_v55 = vrot.slane %v6075_v15, %v12168_v2 }
 0x3fb   :  { %v7741_v58 = vrot.slane %v7733_v56, %v12154_v59  ;;  %v7748_v60 = vrot.slane %v7734_v57, %v12154_v59  ;;  %v6174_v56 = vrot.slane %v6075_v15, %v12171_v3 }
 0x3fd   :  { %v7749_v61 = vcombine.low %v7741_v58, %v7748_v60 }
 0x3ff   :  { %7809 = vst [vmem:[%s12242_s6 + $0x10] sm:$0xff] %v7749_v61 }
 0x413   :  { %v7439_v4 = vpop.f32.mrb[76].mxu0  ;;  %v7480_v5 = vpop.f32.mrb[76].mxu1 }
 0x414   :  { %v7440_v6 = vadd.f32 %v7439_v4, %v6130_v62  ;;  %v7481_v7 = vadd.f32 %v7480_v5, %v6138_v32  ;;  %v7441_v8 = vpop.f32.mrb[77].mxu0  ;;  %v7482_v9 = vpop.f32.mrb[77].mxu1 }
 0x415   :  { %v7442_v10 = vadd.f32 %v7441_v8, %v6134_v63  ;;  %v7483_v11 = vadd.f32 %v7482_v9, %v6142_v0  ;;  %v7443_v12 = vpop.f32.mrb[78].mxu0  ;;  %v7484_v13 = vpop.f32.mrb[78].mxu1 }
 0x416   :  { %v7663_v14 = vmax.f32 %v7440_v6, 0.0  ;;  %v7665_v16 = vmax.f32 %v7481_v7, 0.0  ;;  %v7444_v17 = vpop.f32.mrb[79].mxu0  ;;  %v7485_v18 = vpop.f32.mrb[79].mxu1 }
 0x417   :  { %v7664_v33 = vmax.f32 %v7442_v10, 0.0  ;;  %v7666_v19 = vmax.f32 %v7483_v11, 0.0 }
 0x419   :  { %v7750_v20 = vcombine.low %v7663_v14, %v7664_v33  ;;  %v7751_v21 = vcombine.low %v7665_v16, %v7666_v19 }
 0x41b   :  { %v7758_v22 = vrot.slane %v7750_v20, %v12154_v59  ;;  %v7765_v23 = vrot.slane %v7751_v21, %v12154_v59 }
 0x41d   :  { %v7766_v24 = vcombine.low %v7758_v22, %v7765_v23 }
 0x41f   :  { %7810 = vst [vmem:[%s12242_s6 + $0x18] sm:$0xff] %v7766_v24 }
 0x433   :  { %v7521_v40 = vpop.f32.mrb[80].mxu0  ;;  %v7562_v44 = vpop.f32.mrb[80].mxu1 }
 0x434   :  { %v7522_v45 = vadd.f32 %v7521_v40, %v6146_v25  ;;  %v7563_v27 = vadd.f32 %v7562_v44, %v6154_v26  ;;  %v7523_v46 = vpop.f32.mrb[81].mxu0  ;;  %v7564_v47 = vpop.f32.mrb[81].mxu1 }
 0x435   :  { %v7524_v48 = vadd.f32 %v7523_v46, %v6150_v28  ;;  %v7565_v29 = vadd.f32 %v7564_v47, %v6158_v35  ;;  %v7525_v30 = vpop.f32.mrb[82].mxu0  ;;  %v7566_v31 = vpop.f32.mrb[82].mxu1 }
 0x436   :  { %v7667_v34 = vmax.f32 %v7522_v45, 0.0  ;;  %v7669_v36 = vmax.f32 %v7563_v27, 0.0  ;;  %v7526_v37 = vpop.f32.mrb[83].mxu0  ;;  %v7567_v38 = vpop.f32.mrb[83].mxu1 }
 0x437   :  { %v7668_v49 = vmax.f32 %v7524_v48, 0.0  ;;  %v7670_v39 = vmax.f32 %v7565_v29, 0.0 }
 0x439   :  { %v7767_v50 = vcombine.low %v7667_v34, %v7668_v49  ;;  %v7768_v42 = vcombine.low %v7669_v36, %v7670_v39 }
 0x43b   :  { %v7775_v43 = vrot.slane %v7767_v50, %v12154_v59  ;;  %v7782_v51 = vrot.slane %v7768_v42, %v12154_v59 }
 0x43d   :  { %v7783_v52 = vcombine.low %v7775_v43, %v7782_v51 }
 0x43f   :  { %7811 = vst [vmem:[%s12242_s6 + $0x20] sm:$0xff] %v7783_v52 }
 0x453   :  { %v7603_v57 = vpop.f32.mrb[84].mxu0  ;;  %v7644_v58 = vpop.f32.mrb[84].mxu1 }
 0x454   :  { %v7604_v60 = vadd.f32 %v7603_v57, %v6162_v53  ;;  %v7645_v61 = vadd.f32 %v7644_v58, %v6170_v54  ;;  %v7605_v62 = vpop.f32.mrb[85].mxu0  ;;  %v7646_v32 = vpop.f32.mrb[85].mxu1 }
 0x455   :  { %v7606_v63 = vadd.f32 %v7605_v62, %v6166_v55  ;;  %v7647_v0 = vadd.f32 %v7646_v32, %v6174_v56  ;;  %v7607_v4 = vpop.f32.mrb[86].mxu0  ;;  %v7648_v5 = vpop.f32.mrb[86].mxu1 }
 0x456   :  { %v7671_v6 = vmax.f32 %v7604_v60, 0.0  ;;  %v7673_v7 = vmax.f32 %v7645_v61, 0.0  ;;  %v7608_v8 = vpop.f32.mrb[87].mxu0  ;;  %v7649_v41 = vpop.f32.mrb[87].mxu1 }
 0x457   :  { %v7672_v9 = vmax.f32 %v7606_v63, 0.0  ;;  %v7674_v1 = vmax.f32 %v7647_v0, 0.0 }
 0x459   :  { %v7784_v10 = vcombine.low %v7671_v6, %v7672_v9  ;;  %v7785_v2 = vcombine.low %v7673_v7, %v7674_v1 }
 0x45b   :  { %v7792_v3 = vrot.slane %v7784_v10, %v12154_v59  ;;  %v7799_v11 = vrot.slane %v7785_v2, %v12154_v59 }
 0x45d   :  { %v7800_v12 = vcombine.low %v7792_v3, %v7799_v11 }
 0x45f   :  { %7812 = vst [vmem:[%s12242_s6 + $0x28] sm:$0xff] %v7800_v12 }
 0x460   :  { %9786 = dma.done.wait [#allocation3], 32  }
 0x461   :  { %9787 = vsyncadd [#allocation3], 4294967264 }
 0x462   :  { %7830 = vsyncpa [#allocation3], 1 }

</bundles_post_ra>
